<compile_context>
chip_gen: v6e
topology: v6e:2x2x1
jax: 0.10.0
libtpu: 0.0.40
codegen_flags: <defaults>
</compile_context>

<pallas_src>
import functools

import jax
import jax.numpy as jnp
from jax.experimental import pallas as pl
from jax.experimental.pallas import tpu as pltpu

_BN_EPS = 1e-5
_LATENT = 100
_KSIZE = 4

# (cin, cout, stride, pad, use_bn, activation) — mirrors the nn.Sequential.
_LAYER_CFG = [
    (_LATENT, 512, 1, 0, True, "relu"),
    (512, 256, 2, 1, True, "relu"),
    (256, 128, 2, 1, True, "relu"),
    (128, 64, 2, 1, True, "relu"),
    (64, 3, 2, 1, False, "tanh"),
]

_PAR = ((0, 0), (0, 1), (1, 0), (1, 1))  # (py,px) phases == (dy,dx) taps


def _make_stride2_plan():
    """For each output-pixel parity p=(py,px): the 4 (shift_index, weight_index)
    pairs whose matmuls sum to that phase's output."""
    plan = []
    for pidx, (py, px) in enumerate(_PAR):
        taps = []
        for tidx, (dy, dx) in enumerate(_PAR):
            s = (py + dy) * 3 + (px + dx)          # index into the 9-shift stack
            taps.append((s, pidx * 4 + tidx))       # index into the 16-weight stack
        plan.append(tuple(taps))
    return tuple(plan)


_STRIDE2_PLAN = _make_stride2_plan()


# ---------------------------------------------------------------------------
# Pallas kernels (single invocation per layer, everything VMEM-resident)
# ---------------------------------------------------------------------------
def _phase_matmul_bn_relu_kernel(xs_ref, w_ref, g_ref, b_ref, o_ref, acc_ref,
                                 *, plan):
    """xs_ref: (S, M, K) bf16 shifted-input views; w_ref: (T, K, N) bf16
    sub-weights; g/b_ref: (1,1,N) f32 BN gamma/beta; o_ref: (P, M, N) bf16;
    acc_ref: (P, M, N) f32 scratch.  BN stats are taken over ALL phases and
    rows (the full B*OH*OW batch), so they are exact training-mode stats."""
    for p, taps in enumerate(plan):
        acc = None
        for (si, wi) in taps:
            d = jnp.dot(xs_ref[si], w_ref[wi],
                        preferred_element_type=jnp.float32)
            acc = d if acc is None else acc + d
        acc_ref[p] = acc
    y = acc_ref[...]
    mean = jnp.mean(y, axis=(0, 1), keepdims=True)
    var = jnp.mean(jnp.square(y - mean), axis=(0, 1), keepdims=True)
    y = (y - mean) * jax.lax.rsqrt(var + _BN_EPS)
    y = y * g_ref[...] + b_ref[...]
    o_ref[...] = jnp.maximum(y, 0.0).astype(o_ref.dtype)


def _phase_matmul_bias_tanh_kernel(xs_ref, w_ref, b_ref, o_ref, *, plan):
    """Channel-major variant for the last layer (lane dim = B*H*W, dense).
    xs_ref: (S, K, M) bf16; w_ref: (T, N, K) bf16; b_ref: (1, N, 1) f32;
    o_ref: (P, N, M) f32.  No BN -> epilogue is per-phase, no scratch."""
    for p, taps in enumerate(plan):
        acc = None
        for (si, wi) in taps:
            d = jnp.dot(w_ref[wi], xs_ref[si],
                        preferred_element_type=jnp.float32)
            acc = d if acc is None else acc + d
        o_ref[p] = jnp.tanh(acc + b_ref[0])


def _vmem_spec():
    return pl.BlockSpec(memory_space=pltpu.MemorySpace.VMEM)


def _run_phase_bn_relu(xs, wstk, gamma, beta, plan):
    _, M, _ = xs.shape
    N = wstk.shape[-1]
    P = len(plan)
    return pl.pallas_call(
        functools.partial(_phase_matmul_bn_relu_kernel, plan=plan),
        out_shape=jax.ShapeDtypeStruct((P, M, N), jnp.bfloat16),
        in_specs=[_vmem_spec() for _ in range(4)],
        out_specs=_vmem_spec(),
        scratch_shapes=[pltpu.VMEM((P, M, N), jnp.float32)],
    )(xs, wstk, gamma, beta)


# ---------------------------------------------------------------------------
# XLA-side (cheap, sub-MiB) data plumbing around the kernels
# ---------------------------------------------------------------------------
def _shift_stack(x):
    """(B,H,W,C) bf16 -> (9, B*H*W, C): the nine one-pixel-shifted views of the
    zero-padded input, flattened row-major (replaces the 16*Cin im2col)."""
    B, H, W, C = x.shape
    xp = jnp.pad(x, ((0, 0), (1, 1), (1, 1), (0, 0)))
    views = [xp[:, sy:sy + H, sx:sx + W, :].reshape(B * H * W, C)
             for sy in range(3) for sx in range(3)]
    return jnp.stack(views, axis=0)


def _project_layer(x_flat, p):
    """Layer 1: latent (B, Cin) bf16 -> (B, 4, 4, Cout) bf16."""
    B = x_flat.shape[0]
    Cout = p["w"].shape[-1]
    xs = x_flat.reshape(1, B, -1)
    plan = tuple(((0, s),) for s in range(_KSIZE * _KSIZE))
    out = _run_phase_bn_relu(xs, p["w"], p["gamma"], p["beta"], plan)  # (16,B,N)
    return out.reshape(_KSIZE, _KSIZE, B, Cout).transpose(2, 0, 1, 3)


def _upsample_bn_relu_layer(x, p):
    """Stride-2 ConvT + BN + ReLU: (B,H,W,Cin) bf16 -> (B,2H,2W,Cout) bf16."""
    B, H, W, _ = x.shape
    Cout = p["w"].shape[-1]
    xs = _shift_stack(x)                                               # (9,M,Cin)
    out = _run_phase_bn_relu(xs, p["w"], p["gamma"], p["beta"],
                             _STRIDE2_PLAN)                            # (4,M,N)
    y = out.reshape(2, 2, B, H, W, Cout).transpose(2, 3, 0, 4, 1, 5)
    return y.reshape(B, 2 * H, 2 * W, Cout)


def _upsample_tanh_layer(x, p):
    """Last layer: (B,H,W,Cin) bf16 -> NCHW (B,Cout,2H,2W) f32."""
    B, H, W, _ = x.shape
    Cout = p["w"].shape[1]
    M = B * H * W
    xs_t = _shift_stack(x).transpose(0, 2, 1)                          # (9,Cin,M)
    out = pl.pallas_call(
        functools.partial(_phase_matmul_bias_tanh_kernel, plan=_STRIDE2_PLAN),
        out_shape=jax.ShapeDtypeStruct((4, Cout, M), jnp.float32),
        in_specs=[_vmem_spec() for _ in range(3)],
        out_specs=_vmem_spec(),
    )(xs_t, p["w"], p["bias"])
    y = out.reshape(2, 2, Cout, B, H, W).transpose(3, 2, 4, 0, 5, 1)
    return y.reshape(B, Cout, 2 * H, 2 * W)


def generator_forward(z_nchw, kparams):
    """z: (B, 100, 1, 1) f32 -> (B, 3, 64, 64) f32, matching the nn.Module."""
    B = z_nchw.shape[0]
    x = z_nchw.reshape(B, _LATENT).astype(jnp.bfloat16)
    x = _project_layer(x, kparams[0])              # (B, 4, 4, 512)
    for li in (1, 2, 3):
        x = _upsample_bn_relu_layer(x, kparams[li])
    return _upsample_tanh_layer(x, kparams[4])     # (B, 3, 64, 64)


# ---------------------------------------------------------------------------
# Parameter generation (PyTorch layout) and conversion to kernel layout
# ---------------------------------------------------------------------------
def _stride2_weight_stack(w_pt, channels_major):
    """PyTorch ConvTranspose2d weight (Cin,Cout,4,4) -> (16, Cin, Cout)
    [(Cout,Cin) if channels_major] sub-kernel stack ordered (phase, tap);
    kernel tap index ky = 3 - py - 2*dy (derived from oy = 2*iy - 1 + ky)."""
    mats = []
    for (py, px) in _PAR:
        for (dy, dx) in _PAR:
            m = w_pt[:, :, 3 - py - 2 * dy, 3 - px - 2 * dx]
            mats.append(m.T if channels_major else m)
    return jnp.stack(mats, axis=0)


def _stride1_weight_stack(w_pt):
    """(Cin,Cout,4,4) -> (16, Cin, Cout); slot s = oy*4+ox (1x1 input)."""
    mats = [w_pt[:, :, oy, ox] for oy in range(_KSIZE) for ox in range(_KSIZE)]
    return jnp.stack(mats, axis=0)


def init_raw_params(key):
    raw = []
    for cin, cout, *_ in _LAYER_CFG:
        key, kw, kb, kg, kbt = jax.random.split(key, 5)
        raw.append(dict(
            w=0.02 * jax.random.normal(kw, (cin, cout, _KSIZE, _KSIZE),
                                       jnp.float32),
            bias=0.1 * jax.random.normal(kb, (cout,), jnp.float32),
            gamma=1.0 + 0.1 * jax.random.normal(kg, (cout,), jnp.float32),
            beta=0.1 * jax.random.normal(kbt, (cout,), jnp.float32),
        ))
    return raw


def prepare_params(raw):
    prepared = []
    for rp, cfg in zip(raw, _LAYER_CFG):
        _, cout, stride, _, use_bn, _ = cfg
        if stride == 1:
            wstk = _stride1_weight_stack(rp["w"])
        else:
            wstk = _stride2_weight_stack(rp["w"], channels_major=not use_bn)
        entry = {"w": wstk.astype(jnp.bfloat16)}
        if use_bn:
            # Conv bias dropped: training-mode BN subtracts the batch mean,
            # which cancels a per-channel bias exactly.
            entry["gamma"] = rp["gamma"].reshape(1, 1, cout)
            entry["beta"] = rp["beta"].reshape(1, 1, cout)
        else:
            entry["bias"] = rp["bias"].reshape(1, cout, 1)
        prepared.append(entry)
    return prepared


# ---------------------------------------------------------------------------
# Pure-XLA reference (per-layer correctness check of each Pallas kernel)
# ---------------------------------------------------------------------------
def _reference_layer(x, raw, cfg):
    _, _, stride, pad, use_bn, _ = cfg
    q = _KSIZE - 1 - pad
    w_hwio = jnp.transpose(jnp.flip(raw["w"], (2, 3)),
                           (2, 3, 0, 1)).astype(jnp.bfloat16)
    y = jax.lax.conv_general_dilated(
        x.astype(jnp.bfloat16), w_hwio,
        window_strides=(1, 1), padding=((q, q), (q, q)),
        lhs_dilation=(stride, stride),
        dimension_numbers=("NHWC", "HWIO", "NHWC"),
        preferred_element_type=jnp.float32)
    y = y + raw["bias"].reshape(1, 1, 1, -1)
    if use_bn:
        mean = jnp.mean(y, axis=(0, 1, 2), keepdims=True)
        var = jnp.mean(jnp.square(y - mean), axis=(0, 1, 2), keepdims=True)
        y = (y - mean) * jax.lax.rsqrt(var + _BN_EPS)
        y = y * raw["gamma"].reshape(1, 1, 1, -1) + raw["beta"].reshape(1, 1, 1, -1)
        return jnp.maximum(y, 0.0)
    return jnp.tanh(y)


if __name__ == "__main__":
    key = jax.random.PRNGKey(0)
    kz, kparam_key = jax.random.split(key)
    # Generator input: latent (B, 100, 1, 1); output (B, 3, 64, 64).
    z = jax.random.normal(kz, (2, _LATENT, 1, 1), jnp.float32)
    raw = init_raw_params(kparam_key)
    kparams = prepare_params(raw)

    # Per-layer validation of each fused Pallas kernel against the XLA
    # reference (same bf16 inputs/weights, f32 accumulation; reference keeps
    # the conv bias to confirm BN cancels it).
    x_nhwc = jnp.transpose(z, (0, 2, 3, 1)).astype(jnp.bfloat16)
    n_layers = len(_LAYER_CFG)
    for li, (rp, lp, cfg) in enumerate(zip(raw, kparams, _LAYER_CFG)):
        y_ref = _reference_layer(x_nhwc, rp, cfg)
        if li == 0:
            y_ker = _project_layer(x_nhwc.reshape(x_nhwc.shape[0], -1), lp)
        elif li < n_layers - 1:
            y_ker = _upsample_bn_relu_layer(x_nhwc, lp)
        else:
            y_ker = jnp.transpose(_upsample_tanh_layer(x_nhwc, lp), (0, 2, 3, 1))
        err = float(jnp.max(jnp.abs(y_ker.astype(jnp.float32) - y_ref)))
        assert err < 3e-2, (li, err)
        x_nhwc = y_ker.astype(jnp.bfloat16)

    y = jax.jit(generator_forward)(z, kparams)
    jax.block_until_ready(y)
    assert y.shape == (2, 3, 64, 64), y.shape
    assert bool(jnp.all(jnp.abs(y) <= 1.0))      # tanh output range
    print("KERNEL_OK")
</pallas_src>

<mosaic_0001>
module attributes {stable_mosaic.version = 11 : i64} {
  func.func @_phase_matmul_bn_relu_kernel(%arg0: memref<1x2x100xbf16, #tpu.memory_space<vmem>>, %arg1: memref<16x100x512xbf16, #tpu.memory_space<vmem>>, %arg2: memref<1x1x512xf32, #tpu.memory_space<vmem>>, %arg3: memref<1x1x512xf32, #tpu.memory_space<vmem>>, %arg4: memref<16x2x512xbf16, #tpu.memory_space<vmem>>, %arg5: memref<16x2x512xf32, #tpu.memory_space<vmem>>) attributes {dimension_semantics = [], scalar_prefetch = 0 : i64, scratch_operands = 1 : i64, tpu.core_type = #tpu.core_type<tc>} {
    %c0 = arith.constant 0 : index
    %c0_0 = arith.constant 0 : index
    %c0_1 = arith.constant 0 : index
    %0 = vector.load %arg0[%c0, %c0_0, %c0_1] : memref<1x2x100xbf16, #tpu.memory_space<vmem>>, vector<1x2x100xbf16>
    %1 = vector.shape_cast %0 : vector<1x2x100xbf16> to vector<2x100xbf16>
    %c0_2 = arith.constant 0 : index
    %c0_3 = arith.constant 0 : index
    %c0_4 = arith.constant 0 : index
    %2 = vector.load %arg1[%c0_2, %c0_3, %c0_4] : memref<16x100x512xbf16, #tpu.memory_space<vmem>>, vector<1x100x512xbf16>
    %3 = vector.shape_cast %2 : vector<1x100x512xbf16> to vector<100x512xbf16>
    %cst = arith.constant dense<0.000000e+00> : vector<2x512xf32>
    %4 = tpu.matmul %1, %3, %cst {dimension_numbers = #tpu.dot_dimension_numbers<[1], [0], [0], [1], [0, 0, 1, 1], [], []>} : vector<2x100xbf16>, vector<100x512xbf16>, vector<2x512xf32> -> vector<2x512xf32>
    %c0_5 = arith.constant 0 : index
    %c0_6 = arith.constant 0 : index
    %c0_7 = arith.constant 0 : index
    %5 = vector.load %arg5[%c0_5, %c0_6, %c0_7] : memref<16x2x512xf32, #tpu.memory_space<vmem>>, vector<1x2x512xf32>
    %6 = vector.shape_cast %5 : vector<1x2x512xf32> to vector<2x512xf32>
    %7 = vector.shape_cast %4 : vector<2x512xf32> to vector<1x2x512xf32>
    tpu.vector_store %arg5[%c0_5, %c0_6, %c0_7], %7 {strides = array<i32>} : memref<16x2x512xf32, #tpu.memory_space<vmem>>, vector<1x2x512xf32>,
    %c0_8 = arith.constant 0 : index
    %c0_9 = arith.constant 0 : index
    %c0_10 = arith.constant 0 : index
    %8 = vector.load %arg0[%c0_8, %c0_9, %c0_10] : memref<1x2x100xbf16, #tpu.memory_space<vmem>>, vector<1x2x100xbf16>
    %9 = vector.shape_cast %8 : vector<1x2x100xbf16> to vector<2x100xbf16>
    %c1 = arith.constant 1 : index
    %c0_11 = arith.constant 0 : index
    %c0_12 = arith.constant 0 : index
    %10 = vector.load %arg1[%c1, %c0_11, %c0_12] : memref<16x100x512xbf16, #tpu.memory_space<vmem>>, vector<1x100x512xbf16>
    %11 = vector.shape_cast %10 : vector<1x100x512xbf16> to vector<100x512xbf16>
    %cst_13 = arith.constant dense<0.000000e+00> : vector<2x512xf32>
    %12 = tpu.matmul %9, %11, %cst_13 {dimension_numbers = #tpu.dot_dimension_numbers<[1], [0], [0], [1], [0, 0, 1, 1], [], []>} : vector<2x100xbf16>, vector<100x512xbf16>, vector<2x512xf32> -> vector<2x512xf32>
    %c1_14 = arith.constant 1 : index
    %c0_15 = arith.constant 0 : index
    %c0_16 = arith.constant 0 : index
    %13 = vector.load %arg5[%c1_14, %c0_15, %c0_16] : memref<16x2x512xf32, #tpu.memory_space<vmem>>, vector<1x2x512xf32>
    %14 = vector.shape_cast %13 : vector<1x2x512xf32> to vector<2x512xf32>
    %15 = vector.shape_cast %12 : vector<2x512xf32> to vector<1x2x512xf32>
    tpu.vector_store %arg5[%c1_14, %c0_15, %c0_16], %15 {strides = array<i32>} : memref<16x2x512xf32, #tpu.memory_space<vmem>>, vector<1x2x512xf32>,
    %c0_17 = arith.constant 0 : index
    %c0_18 = arith.constant 0 : index
    %c0_19 = arith.constant 0 : index
    %16 = vector.load %arg0[%c0_17, %c0_18, %c0_19] : memref<1x2x100xbf16, #tpu.memory_space<vmem>>, vector<1x2x100xbf16>
    %17 = vector.shape_cast %16 : vector<1x2x100xbf16> to vector<2x100xbf16>
    %c2 = arith.constant 2 : index
    %c0_20 = arith.constant 0 : index
    %c0_21 = arith.constant 0 : index
    %18 = vector.load %arg1[%c2, %c0_20, %c0_21] : memref<16x100x512xbf16, #tpu.memory_space<vmem>>, vector<1x100x512xbf16>
    %19 = vector.shape_cast %18 : vector<1x100x512xbf16> to vector<100x512xbf16>
    %cst_22 = arith.constant dense<0.000000e+00> : vector<2x512xf32>
    %20 = tpu.matmul %17, %19, %cst_22 {dimension_numbers = #tpu.dot_dimension_numbers<[1], [0], [0], [1], [0, 0, 1, 1], [], []>} : vector<2x100xbf16>, vector<100x512xbf16>, vector<2x512xf32> -> vector<2x512xf32>
    %c2_23 = arith.constant 2 : index
    %c0_24 = arith.constant 0 : index
    %c0_25 = arith.constant 0 : index
    %21 = vector.load %arg5[%c2_23, %c0_24, %c0_25] : memref<16x2x512xf32, #tpu.memory_space<vmem>>, vector<1x2x512xf32>
    %22 = vector.shape_cast %21 : vector<1x2x512xf32> to vector<2x512xf32>
    %23 = vector.shape_cast %20 : vector<2x512xf32> to vector<1x2x512xf32>
    tpu.vector_store %arg5[%c2_23, %c0_24, %c0_25], %23 {strides = array<i32>} : memref<16x2x512xf32, #tpu.memory_space<vmem>>, vector<1x2x512xf32>,
    %c0_26 = arith.constant 0 : index
    %c0_27 = arith.constant 0 : index
    %c0_28 = arith.constant 0 : index
    %24 = vector.load %arg0[%c0_26, %c0_27, %c0_28] : memref<1x2x100xbf16, #tpu.memory_space<vmem>>, vector<1x2x100xbf16>
    %25 = vector.shape_cast %24 : vector<1x2x100xbf16> to vector<2x100xbf16>
    %c3 = arith.constant 3 : index
    %c0_29 = arith.constant 0 : index
    %c0_30 = arith.constant 0 : index
    %26 = vector.load %arg1[%c3, %c0_29, %c0_30] : memref<16x100x512xbf16, #tpu.memory_space<vmem>>, vector<1x100x512xbf16>
    %27 = vector.shape_cast %26 : vector<1x100x512xbf16> to vector<100x512xbf16>
    %cst_31 = arith.constant dense<0.000000e+00> : vector<2x512xf32>
    %28 = tpu.matmul %25, %27, %cst_31 {dimension_numbers = #tpu.dot_dimension_numbers<[1], [0], [0], [1], [0, 0, 1, 1], [], []>} : vector<2x100xbf16>, vector<100x512xbf16>, vector<2x512xf32> -> vector<2x512xf32>
    %c3_32 = arith.constant 3 : index
    %c0_33 = arith.constant 0 : index
    %c0_34 = arith.constant 0 : index
    %29 = vector.load %arg5[%c3_32, %c0_33, %c0_34] : memref<16x2x512xf32, #tpu.memory_space<vmem>>, vector<1x2x512xf32>
    %30 = vector.shape_cast %29 : vector<1x2x512xf32> to vector<2x512xf32>
    %31 = vector.shape_cast %28 : vector<2x512xf32> to vector<1x2x512xf32>
    tpu.vector_store %arg5[%c3_32, %c0_33, %c0_34], %31 {strides = array<i32>} : memref<16x2x512xf32, #tpu.memory_space<vmem>>, vector<1x2x512xf32>,
    %c0_35 = arith.constant 0 : index
    %c0_36 = arith.constant 0 : index
    %c0_37 = arith.constant 0 : index
    %32 = vector.load %arg0[%c0_35, %c0_36, %c0_37] : memref<1x2x100xbf16, #tpu.memory_space<vmem>>, vector<1x2x100xbf16>
    %33 = vector.shape_cast %32 : vector<1x2x100xbf16> to vector<2x100xbf16>
    %c4 = arith.constant 4 : index
    %c0_38 = arith.constant 0 : index
    %c0_39 = arith.constant 0 : index
    %34 = vector.load %arg1[%c4, %c0_38, %c0_39] : memref<16x100x512xbf16, #tpu.memory_space<vmem>>, vector<1x100x512xbf16>
    %35 = vector.shape_cast %34 : vector<1x100x512xbf16> to vector<100x512xbf16>
    %cst_40 = arith.constant dense<0.000000e+00> : vector<2x512xf32>
    %36 = tpu.matmul %33, %35, %cst_40 {dimension_numbers = #tpu.dot_dimension_numbers<[1], [0], [0], [1], [0, 0, 1, 1], [], []>} : vector<2x100xbf16>, vector<100x512xbf16>, vector<2x512xf32> -> vector<2x512xf32>
    %c4_41 = arith.constant 4 : index
    %c0_42 = arith.constant 0 : index
    %c0_43 = arith.constant 0 : index
    %37 = vector.load %arg5[%c4_41, %c0_42, %c0_43] : memref<16x2x512xf32, #tpu.memory_space<vmem>>, vector<1x2x512xf32>
    %38 = vector.shape_cast %37 : vector<1x2x512xf32> to vector<2x512xf32>
    %39 = vector.shape_cast %36 : vector<2x512xf32> to vector<1x2x512xf32>
    tpu.vector_store %arg5[%c4_41, %c0_42, %c0_43], %39 {strides = array<i32>} : memref<16x2x512xf32, #tpu.memory_space<vmem>>, vector<1x2x512xf32>,
    %c0_44 = arith.constant 0 : index
    %c0_45 = arith.constant 0 : index
    %c0_46 = arith.constant 0 : index
    %40 = vector.load %arg0[%c0_44, %c0_45, %c0_46] : memref<1x2x100xbf16, #tpu.memory_space<vmem>>, vector<1x2x100xbf16>
    %41 = vector.shape_cast %40 : vector<1x2x100xbf16> to vector<2x100xbf16>
    %c5 = arith.constant 5 : index
    %c0_47 = arith.constant 0 : index
    %c0_48 = arith.constant 0 : index
    %42 = vector.load %arg1[%c5, %c0_47, %c0_48] : memref<16x100x512xbf16, #tpu.memory_space<vmem>>, vector<1x100x512xbf16>
    %43 = vector.shape_cast %42 : vector<1x100x512xbf16> to vector<100x512xbf16>
    %cst_49 = arith.constant dense<0.000000e+00> : vector<2x512xf32>
    %44 = tpu.matmul %41, %43, %cst_49 {dimension_numbers = #tpu.dot_dimension_numbers<[1], [0], [0], [1], [0, 0, 1, 1], [], []>} : vector<2x100xbf16>, vector<100x512xbf16>, vector<2x512xf32> -> vector<2x512xf32>
    %c5_50 = arith.constant 5 : index
    %c0_51 = arith.constant 0 : index
    %c0_52 = arith.constant 0 : index
    %45 = vector.load %arg5[%c5_50, %c0_51, %c0_52] : memref<16x2x512xf32, #tpu.memory_space<vmem>>, vector<1x2x512xf32>
    %46 = vector.shape_cast %45 : vector<1x2x512xf32> to vector<2x512xf32>
    %47 = vector.shape_cast %44 : vector<2x512xf32> to vector<1x2x512xf32>
    tpu.vector_store %arg5[%c5_50, %c0_51, %c0_52], %47 {strides = array<i32>} : memref<16x2x512xf32, #tpu.memory_space<vmem>>, vector<1x2x512xf32>,
    %c0_53 = arith.constant 0 : index
    %c0_54 = arith.constant 0 : index
    %c0_55 = arith.constant 0 : index
    %48 = vector.load %arg0[%c0_53, %c0_54, %c0_55] : memref<1x2x100xbf16, #tpu.memory_space<vmem>>, vector<1x2x100xbf16>
    %49 = vector.shape_cast %48 : vector<1x2x100xbf16> to vector<2x100xbf16>
    %c6 = arith.constant 6 : index
    %c0_56 = arith.constant 0 : index
    %c0_57 = arith.constant 0 : index
    %50 = vector.load %arg1[%c6, %c0_56, %c0_57] : memref<16x100x512xbf16, #tpu.memory_space<vmem>>, vector<1x100x512xbf16>
    %51 = vector.shape_cast %50 : vector<1x100x512xbf16> to vector<100x512xbf16>
    %cst_58 = arith.constant dense<0.000000e+00> : vector<2x512xf32>
    %52 = tpu.matmul %49, %51, %cst_58 {dimension_numbers = #tpu.dot_dimension_numbers<[1], [0], [0], [1], [0, 0, 1, 1], [], []>} : vector<2x100xbf16>, vector<100x512xbf16>, vector<2x512xf32> -> vector<2x512xf32>
    %c6_59 = arith.constant 6 : index
    %c0_60 = arith.constant 0 : index
    %c0_61 = arith.constant 0 : index
    %53 = vector.load %arg5[%c6_59, %c0_60, %c0_61] : memref<16x2x512xf32, #tpu.memory_space<vmem>>, vector<1x2x512xf32>
    %54 = vector.shape_cast %53 : vector<1x2x512xf32> to vector<2x512xf32>
    %55 = vector.shape_cast %52 : vector<2x512xf32> to vector<1x2x512xf32>
    tpu.vector_store %arg5[%c6_59, %c0_60, %c0_61], %55 {strides = array<i32>} : memref<16x2x512xf32, #tpu.memory_space<vmem>>, vector<1x2x512xf32>,
    %c0_62 = arith.constant 0 : index
    %c0_63 = arith.constant 0 : index
    %c0_64 = arith.constant 0 : index
    %56 = vector.load %arg0[%c0_62, %c0_63, %c0_64] : memref<1x2x100xbf16, #tpu.memory_space<vmem>>, vector<1x2x100xbf16>
    %57 = vector.shape_cast %56 : vector<1x2x100xbf16> to vector<2x100xbf16>
    %c7 = arith.constant 7 : index
    %c0_65 = arith.constant 0 : index
    %c0_66 = arith.constant 0 : index
    %58 = vector.load %arg1[%c7, %c0_65, %c0_66] : memref<16x100x512xbf16, #tpu.memory_space<vmem>>, vector<1x100x512xbf16>
    %59 = vector.shape_cast %58 : vector<1x100x512xbf16> to vector<100x512xbf16>
    %cst_67 = arith.constant dense<0.000000e+00> : vector<2x512xf32>
    %60 = tpu.matmul %57, %59, %cst_67 {dimension_numbers = #tpu.dot_dimension_numbers<[1], [0], [0], [1], [0, 0, 1, 1], [], []>} : vector<2x100xbf16>, vector<100x512xbf16>, vector<2x512xf32> -> vector<2x512xf32>
    %c7_68 = arith.constant 7 : index
    %c0_69 = arith.constant 0 : index
    %c0_70 = arith.constant 0 : index
    %61 = vector.load %arg5[%c7_68, %c0_69, %c0_70] : memref<16x2x512xf32, #tpu.memory_space<vmem>>, vector<1x2x512xf32>
    %62 = vector.shape_cast %61 : vector<1x2x512xf32> to vector<2x512xf32>
    %63 = vector.shape_cast %60 : vector<2x512xf32> to vector<1x2x512xf32>
    tpu.vector_store %arg5[%c7_68, %c0_69, %c0_70], %63 {strides = array<i32>} : memref<16x2x512xf32, #tpu.memory_space<vmem>>, vector<1x2x512xf32>,
    %c0_71 = arith.constant 0 : index
    %c0_72 = arith.constant 0 : index
    %c0_73 = arith.constant 0 : index
    %64 = vector.load %arg0[%c0_71, %c0_72, %c0_73] : memref<1x2x100xbf16, #tpu.memory_space<vmem>>, vector<1x2x100xbf16>
    %65 = vector.shape_cast %64 : vector<1x2x100xbf16> to vector<2x100xbf16>
    %c8 = arith.constant 8 : index
    %c0_74 = arith.constant 0 : index
    %c0_75 = arith.constant 0 : index
    %66 = vector.load %arg1[%c8, %c0_74, %c0_75] : memref<16x100x512xbf16, #tpu.memory_space<vmem>>, vector<1x100x512xbf16>
    %67 = vector.shape_cast %66 : vector<1x100x512xbf16> to vector<100x512xbf16>
    %cst_76 = arith.constant dense<0.000000e+00> : vector<2x512xf32>
    %68 = tpu.matmul %65, %67, %cst_76 {dimension_numbers = #tpu.dot_dimension_numbers<[1], [0], [0], [1], [0, 0, 1, 1], [], []>} : vector<2x100xbf16>, vector<100x512xbf16>, vector<2x512xf32> -> vector<2x512xf32>
    %c8_77 = arith.constant 8 : index
    %c0_78 = arith.constant 0 : index
    %c0_79 = arith.constant 0 : index
    %69 = vector.load %arg5[%c8_77, %c0_78, %c0_79] : memref<16x2x512xf32, #tpu.memory_space<vmem>>, vector<1x2x512xf32>
    %70 = vector.shape_cast %69 : vector<1x2x512xf32> to vector<2x512xf32>
    %71 = vector.shape_cast %68 : vector<2x512xf32> to vector<1x2x512xf32>
    tpu.vector_store %arg5[%c8_77, %c0_78, %c0_79], %71 {strides = array<i32>} : memref<16x2x512xf32, #tpu.memory_space<vmem>>, vector<1x2x512xf32>,
    %c0_80 = arith.constant 0 : index
    %c0_81 = arith.constant 0 : index
    %c0_82 = arith.constant 0 : index
    %72 = vector.load %arg0[%c0_80, %c0_81, %c0_82] : memref<1x2x100xbf16, #tpu.memory_space<vmem>>, vector<1x2x100xbf16>
    %73 = vector.shape_cast %72 : vector<1x2x100xbf16> to vector<2x100xbf16>
    %c9 = arith.constant 9 : index
    %c0_83 = arith.constant 0 : index
    %c0_84 = arith.constant 0 : index
    %74 = vector.load %arg1[%c9, %c0_83, %c0_84] : memref<16x100x512xbf16, #tpu.memory_space<vmem>>, vector<1x100x512xbf16>
    %75 = vector.shape_cast %74 : vector<1x100x512xbf16> to vector<100x512xbf16>
    %cst_85 = arith.constant dense<0.000000e+00> : vector<2x512xf32>
    %76 = tpu.matmul %73, %75, %cst_85 {dimension_numbers = #tpu.dot_dimension_numbers<[1], [0], [0], [1], [0, 0, 1, 1], [], []>} : vector<2x100xbf16>, vector<100x512xbf16>, vector<2x512xf32> -> vector<2x512xf32>
    %c9_86 = arith.constant 9 : index
    %c0_87 = arith.constant 0 : index
    %c0_88 = arith.constant 0 : index
    %77 = vector.load %arg5[%c9_86, %c0_87, %c0_88] : memref<16x2x512xf32, #tpu.memory_space<vmem>>, vector<1x2x512xf32>
    %78 = vector.shape_cast %77 : vector<1x2x512xf32> to vector<2x512xf32>
    %79 = vector.shape_cast %76 : vector<2x512xf32> to vector<1x2x512xf32>
    tpu.vector_store %arg5[%c9_86, %c0_87, %c0_88], %79 {strides = array<i32>} : memref<16x2x512xf32, #tpu.memory_space<vmem>>, vector<1x2x512xf32>,
    %c0_89 = arith.constant 0 : index
    %c0_90 = arith.constant 0 : index
    %c0_91 = arith.constant 0 : index
    %80 = vector.load %arg0[%c0_89, %c0_90, %c0_91] : memref<1x2x100xbf16, #tpu.memory_space<vmem>>, vector<1x2x100xbf16>
    %81 = vector.shape_cast %80 : vector<1x2x100xbf16> to vector<2x100xbf16>
    %c10 = arith.constant 10 : index
    %c0_92 = arith.constant 0 : index
    %c0_93 = arith.constant 0 : index
    %82 = vector.load %arg1[%c10, %c0_92, %c0_93] : memref<16x100x512xbf16, #tpu.memory_space<vmem>>, vector<1x100x512xbf16>
    %83 = vector.shape_cast %82 : vector<1x100x512xbf16> to vector<100x512xbf16>
    %cst_94 = arith.constant dense<0.000000e+00> : vector<2x512xf32>
    %84 = tpu.matmul %81, %83, %cst_94 {dimension_numbers = #tpu.dot_dimension_numbers<[1], [0], [0], [1], [0, 0, 1, 1], [], []>} : vector<2x100xbf16>, vector<100x512xbf16>, vector<2x512xf32> -> vector<2x512xf32>
    %c10_95 = arith.constant 10 : index
    %c0_96 = arith.constant 0 : index
    %c0_97 = arith.constant 0 : index
    %85 = vector.load %arg5[%c10_95, %c0_96, %c0_97] : memref<16x2x512xf32, #tpu.memory_space<vmem>>, vector<1x2x512xf32>
    %86 = vector.shape_cast %85 : vector<1x2x512xf32> to vector<2x512xf32>
    %87 = vector.shape_cast %84 : vector<2x512xf32> to vector<1x2x512xf32>
    tpu.vector_store %arg5[%c10_95, %c0_96, %c0_97], %87 {strides = array<i32>} : memref<16x2x512xf32, #tpu.memory_space<vmem>>, vector<1x2x512xf32>,
    %c0_98 = arith.constant 0 : index
    %c0_99 = arith.constant 0 : index
    %c0_100 = arith.constant 0 : index
    %88 = vector.load %arg0[%c0_98, %c0_99, %c0_100] : memref<1x2x100xbf16, #tpu.memory_space<vmem>>, vector<1x2x100xbf16>
    %89 = vector.shape_cast %88 : vector<1x2x100xbf16> to vector<2x100xbf16>
    %c11 = arith.constant 11 : index
    %c0_101 = arith.constant 0 : index
    %c0_102 = arith.constant 0 : index
    %90 = vector.load %arg1[%c11, %c0_101, %c0_102] : memref<16x100x512xbf16, #tpu.memory_space<vmem>>, vector<1x100x512xbf16>
    %91 = vector.shape_cast %90 : vector<1x100x512xbf16> to vector<100x512xbf16>
    %cst_103 = arith.constant dense<0.000000e+00> : vector<2x512xf32>
    %92 = tpu.matmul %89, %91, %cst_103 {dimension_numbers = #tpu.dot_dimension_numbers<[1], [0], [0], [1], [0, 0, 1, 1], [], []>} : vector<2x100xbf16>, vector<100x512xbf16>, vector<2x512xf32> -> vector<2x512xf32>
    %c11_104 = arith.constant 11 : index
    %c0_105 = arith.constant 0 : index
    %c0_106 = arith.constant 0 : index
    %93 = vector.load %arg5[%c11_104, %c0_105, %c0_106] : memref<16x2x512xf32, #tpu.memory_space<vmem>>, vector<1x2x512xf32>
    %94 = vector.shape_cast %93 : vector<1x2x512xf32> to vector<2x512xf32>
    %95 = vector.shape_cast %92 : vector<2x512xf32> to vector<1x2x512xf32>
    tpu.vector_store %arg5[%c11_104, %c0_105, %c0_106], %95 {strides = array<i32>} : memref<16x2x512xf32, #tpu.memory_space<vmem>>, vector<1x2x512xf32>,
    %c0_107 = arith.constant 0 : index
    %c0_108 = arith.constant 0 : index
    %c0_109 = arith.constant 0 : index
    %96 = vector.load %arg0[%c0_107, %c0_108, %c0_109] : memref<1x2x100xbf16, #tpu.memory_space<vmem>>, vector<1x2x100xbf16>
    %97 = vector.shape_cast %96 : vector<1x2x100xbf16> to vector<2x100xbf16>
    %c12 = arith.constant 12 : index
    %c0_110 = arith.constant 0 : index
    %c0_111 = arith.constant 0 : index
    %98 = vector.load %arg1[%c12, %c0_110, %c0_111] : memref<16x100x512xbf16, #tpu.memory_space<vmem>>, vector<1x100x512xbf16>
    %99 = vector.shape_cast %98 : vector<1x100x512xbf16> to vector<100x512xbf16>
    %cst_112 = arith.constant dense<0.000000e+00> : vector<2x512xf32>
    %100 = tpu.matmul %97, %99, %cst_112 {dimension_numbers = #tpu.dot_dimension_numbers<[1], [0], [0], [1], [0, 0, 1, 1], [], []>} : vector<2x100xbf16>, vector<100x512xbf16>, vector<2x512xf32> -> vector<2x512xf32>
    %c12_113 = arith.constant 12 : index
    %c0_114 = arith.constant 0 : index
    %c0_115 = arith.constant 0 : index
    %101 = vector.load %arg5[%c12_113, %c0_114, %c0_115] : memref<16x2x512xf32, #tpu.memory_space<vmem>>, vector<1x2x512xf32>
    %102 = vector.shape_cast %101 : vector<1x2x512xf32> to vector<2x512xf32>
    %103 = vector.shape_cast %100 : vector<2x512xf32> to vector<1x2x512xf32>
    tpu.vector_store %arg5[%c12_113, %c0_114, %c0_115], %103 {strides = array<i32>} : memref<16x2x512xf32, #tpu.memory_space<vmem>>, vector<1x2x512xf32>,
    %c0_116 = arith.constant 0 : index
    %c0_117 = arith.constant 0 : index
    %c0_118 = arith.constant 0 : index
    %104 = vector.load %arg0[%c0_116, %c0_117, %c0_118] : memref<1x2x100xbf16, #tpu.memory_space<vmem>>, vector<1x2x100xbf16>
    %105 = vector.shape_cast %104 : vector<1x2x100xbf16> to vector<2x100xbf16>
    %c13 = arith.constant 13 : index
    %c0_119 = arith.constant 0 : index
    %c0_120 = arith.constant 0 : index
    %106 = vector.load %arg1[%c13, %c0_119, %c0_120] : memref<16x100x512xbf16, #tpu.memory_space<vmem>>, vector<1x100x512xbf16>
    %107 = vector.shape_cast %106 : vector<1x100x512xbf16> to vector<100x512xbf16>
    %cst_121 = arith.constant dense<0.000000e+00> : vector<2x512xf32>
    %108 = tpu.matmul %105, %107, %cst_121 {dimension_numbers = #tpu.dot_dimension_numbers<[1], [0], [0], [1], [0, 0, 1, 1], [], []>} : vector<2x100xbf16>, vector<100x512xbf16>, vector<2x512xf32> -> vector<2x512xf32>
    %c13_122 = arith.constant 13 : index
    %c0_123 = arith.constant 0 : index
    %c0_124 = arith.constant 0 : index
    %109 = vector.load %arg5[%c13_122, %c0_123, %c0_124] : memref<16x2x512xf32, #tpu.memory_space<vmem>>, vector<1x2x512xf32>
    %110 = vector.shape_cast %109 : vector<1x2x512xf32> to vector<2x512xf32>
    %111 = vector.shape_cast %108 : vector<2x512xf32> to vector<1x2x512xf32>
    tpu.vector_store %arg5[%c13_122, %c0_123, %c0_124], %111 {strides = array<i32>} : memref<16x2x512xf32, #tpu.memory_space<vmem>>, vector<1x2x512xf32>,
    %c0_125 = arith.constant 0 : index
    %c0_126 = arith.constant 0 : index
    %c0_127 = arith.constant 0 : index
    %112 = vector.load %arg0[%c0_125, %c0_126, %c0_127] : memref<1x2x100xbf16, #tpu.memory_space<vmem>>, vector<1x2x100xbf16>
    %113 = vector.shape_cast %112 : vector<1x2x100xbf16> to vector<2x100xbf16>
    %c14 = arith.constant 14 : index
    %c0_128 = arith.constant 0 : index
    %c0_129 = arith.constant 0 : index
    %114 = vector.load %arg1[%c14, %c0_128, %c0_129] : memref<16x100x512xbf16, #tpu.memory_space<vmem>>, vector<1x100x512xbf16>
    %115 = vector.shape_cast %114 : vector<1x100x512xbf16> to vector<100x512xbf16>
    %cst_130 = arith.constant dense<0.000000e+00> : vector<2x512xf32>
    %116 = tpu.matmul %113, %115, %cst_130 {dimension_numbers = #tpu.dot_dimension_numbers<[1], [0], [0], [1], [0, 0, 1, 1], [], []>} : vector<2x100xbf16>, vector<100x512xbf16>, vector<2x512xf32> -> vector<2x512xf32>
    %c14_131 = arith.constant 14 : index
    %c0_132 = arith.constant 0 : index
    %c0_133 = arith.constant 0 : index
    %117 = vector.load %arg5[%c14_131, %c0_132, %c0_133] : memref<16x2x512xf32, #tpu.memory_space<vmem>>, vector<1x2x512xf32>
    %118 = vector.shape_cast %117 : vector<1x2x512xf32> to vector<2x512xf32>
    %119 = vector.shape_cast %116 : vector<2x512xf32> to vector<1x2x512xf32>
    tpu.vector_store %arg5[%c14_131, %c0_132, %c0_133], %119 {strides = array<i32>} : memref<16x2x512xf32, #tpu.memory_space<vmem>>, vector<1x2x512xf32>,
    %c0_134 = arith.constant 0 : index
    %c0_135 = arith.constant 0 : index
    %c0_136 = arith.constant 0 : index
    %120 = vector.load %arg0[%c0_134, %c0_135, %c0_136] : memref<1x2x100xbf16, #tpu.memory_space<vmem>>, vector<1x2x100xbf16>
    %121 = vector.shape_cast %120 : vector<1x2x100xbf16> to vector<2x100xbf16>
    %c15 = arith.constant 15 : index
    %c0_137 = arith.constant 0 : index
    %c0_138 = arith.constant 0 : index
    %122 = vector.load %arg1[%c15, %c0_137, %c0_138] : memref<16x100x512xbf16, #tpu.memory_space<vmem>>, vector<1x100x512xbf16>
    %123 = vector.shape_cast %122 : vector<1x100x512xbf16> to vector<100x512xbf16>
    %cst_139 = arith.constant dense<0.000000e+00> : vector<2x512xf32>
    %124 = tpu.matmul %121, %123, %cst_139 {dimension_numbers = #tpu.dot_dimension_numbers<[1], [0], [0], [1], [0, 0, 1, 1], [], []>} : vector<2x100xbf16>, vector<100x512xbf16>, vector<2x512xf32> -> vector<2x512xf32>
    %c15_140 = arith.constant 15 : index
    %c0_141 = arith.constant 0 : index
    %c0_142 = arith.constant 0 : index
    %125 = vector.load %arg5[%c15_140, %c0_141, %c0_142] : memref<16x2x512xf32, #tpu.memory_space<vmem>>, vector<1x2x512xf32>
    %126 = vector.shape_cast %125 : vector<1x2x512xf32> to vector<2x512xf32>
    %127 = vector.shape_cast %124 : vector<2x512xf32> to vector<1x2x512xf32>
    tpu.vector_store %arg5[%c15_140, %c0_141, %c0_142], %127 {strides = array<i32>} : memref<16x2x512xf32, #tpu.memory_space<vmem>>, vector<1x2x512xf32>,
    %c0_143 = arith.constant 0 : index
    %c0_144 = arith.constant 0 : index
    %c0_145 = arith.constant 0 : index
    %128 = vector.load %arg5[%c0_143, %c0_144, %c0_145] : memref<16x2x512xf32, #tpu.memory_space<vmem>>, vector<16x2x512xf32>
    %cst_146 = arith.constant dense<0.000000e+00> : vector<512xf32>
    %129 = vector.multi_reduction <add>, %128, %cst_146 [0, 1] : vector<16x2x512xf32> to vector<512xf32>
    %130 = vector.shape_cast %129 : vector<512xf32> to vector<1x1x512xf32>
    %cst_147 = arith.constant 3.200000e+01 : f32
    %131 = vector.broadcast %cst_147 : f32 to vector<1x1x512xf32>
    %132 = arith.divf %130, %131 : vector<1x1x512xf32>
    %133 = vector.broadcast %132 : vector<1x1x512xf32> to vector<16x2x512xf32>
    %134 = arith.subf %128, %133 : vector<16x2x512xf32>
    %135 = arith.mulf %134, %134 : vector<16x2x512xf32>
    %cst_148 = arith.constant dense<0.000000e+00> : vector<512xf32>
    %136 = vector.multi_reduction <add>, %135, %cst_148 [0, 1] : vector<16x2x512xf32> to vector<512xf32>
    %137 = vector.shape_cast %136 : vector<512xf32> to vector<1x1x512xf32>
    %cst_149 = arith.constant 3.200000e+01 : f32
    %138 = vector.broadcast %cst_149 : f32 to vector<1x1x512xf32>
    %139 = arith.divf %137, %138 : vector<1x1x512xf32>
    %140 = vector.broadcast %132 : vector<1x1x512xf32> to vector<16x2x512xf32>
    %141 = arith.subf %128, %140 : vector<16x2x512xf32>
    %cst_150 = arith.constant 9.99999974E-6 : f32
    %142 = vector.broadcast %cst_150 : f32 to vector<1x1x512xf32>
    %143 = arith.addf %139, %142 : vector<1x1x512xf32>
    %144 = math.rsqrt %143 : vector<1x1x512xf32>
    %145 = vector.broadcast %144 : vector<1x1x512xf32> to vector<16x2x512xf32>
    %146 = arith.mulf %141, %145 : vector<16x2x512xf32>
    %c0_151 = arith.constant 0 : index
    %c0_152 = arith.constant 0 : index
    %c0_153 = arith.constant 0 : index
    %147 = vector.load %arg2[%c0_151, %c0_152, %c0_153] : memref<1x1x512xf32, #tpu.memory_space<vmem>>, vector<1x1x512xf32>
    %148 = vector.broadcast %147 : vector<1x1x512xf32> to vector<16x2x512xf32>
    %149 = arith.mulf %146, %148 : vector<16x2x512xf32>
    %c0_154 = arith.constant 0 : index
    %c0_155 = arith.constant 0 : index
    %c0_156 = arith.constant 0 : index
    %150 = vector.load %arg3[%c0_154, %c0_155, %c0_156] : memref<1x1x512xf32, #tpu.memory_space<vmem>>, vector<1x1x512xf32>
    %151 = vector.broadcast %150 : vector<1x1x512xf32> to vector<16x2x512xf32>
    %152 = arith.addf %149, %151 : vector<16x2x512xf32>
    %cst_157 = arith.constant 0.000000e+00 : f32
    %153 = vector.broadcast %cst_157 : f32 to vector<16x2x512xf32>
    %154 = arith.maximumf %152, %153 : vector<16x2x512xf32>
    %155 = arith.truncf %154 : vector<16x2x512xf32> to vector<16x2x512xbf16>
    %c0_158 = arith.constant 0 : index
    %c0_159 = arith.constant 0 : index
    %c0_160 = arith.constant 0 : index
    %156 = vector.load %arg4[%c0_158, %c0_159, %c0_160] : memref<16x2x512xbf16, #tpu.memory_space<vmem>>, vector<16x2x512xbf16>
    tpu.vector_store %arg4[%c0_158, %c0_159, %c0_160], %155 {strides = array<i32>} : memref<16x2x512xbf16, #tpu.memory_space<vmem>>, vector<16x2x512xbf16>,
    return
  }
}

</mosaic_0001>

<bundles_post_ra>
// kernel: tpu_custom_call.1
= control target key start
LH: loop header
LB: loop body
LE: loop exit
PB: predicated region body
PF: predicated region fallthrough
CT: control target
= control target key end

     0   :  { %vm180_vm0 = vcmask 1041408   ;;  %v8282_v14 = vmov 0   ;;  %vm176_vm1 = vcmask 818176   ;;  %s10806_s0 = inlined_call_operand.vmem [shape: bf16[1,2,100], index: 0, kind: input, shape index: {}]   ;;  %s10807_s1 = inlined_call_operand.vmem [shape: bf16[16,100,512], index: 1, kind: input, shape index: {}]   ;;  %s10808_s2 = inlined_call_operand.vmem [shape: f32[1,1,512], index: 2, kind: input, shape index: {}]   ;;  %s10809_s3 = inlined_call_operand.vmem [shape: f32[1,1,512], index: 3, kind: input, shape index: {}]   ;;  %s10810_s4 = inlined_call_operand.hbm [shape: bf16[16,2,512], index: 4, kind: output, shape index: {}]  }
   0x1   :  { %v44_v0 = vld [vmem:[%s10807_s1 + $0xc0] sm:$0x33]  ;;  %v45_v1 = vld [vmem:[%s10807_s1 + $0xc8] sm:$0x33]  ;;  %225 = vmatprep.mubr.bf16.mxu0 %v8282_v14  ;;  %266 = vmatprep.mubr.bf16.mxu1 %v8282_v14  ;;  %v6696_v31 = vld [vmem:[%s10807_s1 + $0x190] sm:$0x33] }
   0x2   :  { %v6665_v2 = vcombine.high %v44_v0, %v44_v0  ;;  %v6667_v3 = vcombine.high %v45_v1, %v45_v1  ;;  %v6664_v4 = vcombine.low %v44_v0, %v44_v0  ;;  %v6666_v5 = vcombine.low %v45_v1, %v45_v1  ;;  %v7616_v6 = vld [vmem:[%s10807_s1 + $0xa4] ss:$16 sps:$4 sm:$0xff]   ;;  %v7618_v7 = vld [vmem:[%s10807_s1 + $0xac] ss:$16 sps:$4 sm:$0xff]   ;;  %v7620_v8 = vld [vmem:[%s10807_s1 + $0xa0] ss:$16 sps:$4 sm:$0xff]  }
   0x3   :  { %v7621_v11 = vld [vmem:[%s10807_s1 + $0xa8] ss:$16 sps:$4 sm:$0xff]   ;;  %v7622_v12 = vld [vmem:[%s10807_s1 + $0x84] ss:$16 sps:$4 sm:$0xff]   ;;  %v7624_v13 = vld [vmem:[%s10807_s1 + $0x8c] ss:$16 sps:$4 sm:$0xff]   ;;  %v6723_v35 = vcombine.high %v6696_v31, %v6696_v31  ;;  %v6722_v37 = vcombine.low %v6696_v31, %v6696_v31 }
   0x4   :  { %6668 = vmatprep.subr.msk.bf16.mxu0 %vm180_vm0, %v6665_v2  ;;  %6670 = vmatprep.subr.msk.bf16.mxu1 %vm180_vm0, %v6667_v3  ;;  %v182_v9 = vsel %vm180_vm0, %v6664_v4, 0  ;;  %v188_v10 = vsel %vm180_vm0, %v6666_v5, 0  ;;  %v7626_v15 = vld [vmem:[%s10807_s1 + $0x80] ss:$16 sps:$4 sm:$0xff]   ;;  %v7627_v16 = vld [vmem:[%s10807_s1 + $0x88] ss:$16 sps:$4 sm:$0xff]  }
   0x5   :  { %196 = vmatpush1.bf16.msra.mxu0 %v182_v9  ;;  %237 = vmatpush1.bf16.msra.mxu1 %v188_v10  ;;  %v7628_v17 = vld [vmem:[%s10807_s1 + $0x64] ss:$16 sps:$4 sm:$0xff]   ;;  %v7630_v18 = vld [vmem:[%s10807_s1 + $0x6c] ss:$16 sps:$4 sm:$0xff]   ;;  %v7632_v19 = vld [vmem:[%s10807_s1 + $0x60] ss:$16 sps:$4 sm:$0xff]  }
   0x6   :  { %197 = vmatprep.subr.bf16.mxu0 %v7616_v6  ;;  %238 = vmatprep.subr.bf16.mxu1 %v7618_v7  ;;  %v7633_v20 = vld [vmem:[%s10807_s1 + $0x68] ss:$16 sps:$4 sm:$0xff]   ;;  %v7634_v21 = vld [vmem:[%s10807_s1 + $0x44] ss:$16 sps:$4 sm:$0xff]   ;;  %v7636_v22 = vld [vmem:[%s10807_s1 + $0x4c] ss:$16 sps:$4 sm:$0xff]  }
   0x7   :  { %v7638_v23 = vld [vmem:[%s10807_s1 + $0x40] ss:$16 sps:$4 sm:$0xff]   ;;  %v7639_v24 = vld [vmem:[%s10807_s1 + $0x48] ss:$16 sps:$4 sm:$0xff]   ;;  %v7640_v25 = vld [vmem:[%s10807_s1 + $0x24] ss:$16 sps:$4 sm:$0xff]  }
   0x8   :  { %v7642_v26 = vld [vmem:[%s10807_s1 + $0x2c] ss:$16 sps:$4 sm:$0xff]   ;;  %v7644_v27 = vld [vmem:[%s10807_s1 + $0x20] ss:$16 sps:$4 sm:$0xff]   ;;  %v7645_v28 = vld [vmem:[%s10807_s1 + $0x28] ss:$16 sps:$4 sm:$0xff]  }
   0x9   :  { %198 = vmatpush1.bf16.msra.mxu0 %v7620_v8  ;;  %239 = vmatpush1.bf16.msra.mxu1 %v7621_v11  ;;  %v7646_v29 = vld [vmem:[%s10807_s1 + $0x4] ss:$16 sps:$4 sm:$0xff]   ;;  %v7648_v30 = vld [vmem:[%s10807_s1 + $0xc] ss:$16 sps:$4 sm:$0xff]   ;;  %v7650_v33 = vld [vmem:[%s10807_s1] ss:$16 sps:$4 sm:$0xff]  }
   0xa   :  { %199 = vmatprep.subr.bf16.mxu0 %v7622_v12  ;;  %240 = vmatprep.subr.bf16.mxu1 %v7624_v13  ;;  %v6697_v32 = vld [vmem:[%s10807_s1 + $0x198] sm:$0x33]  ;;  %v19_v39 = vld [vmem:[%s10806_s0] sm:$0x1]  ;;  %v7658_v40 = vld [vmem:[%s10807_s1 + $0x174] ss:$16 sps:$4 sm:$0xff]  }
   0xb   :  { %v7651_v34 = vld [vmem:[%s10807_s1 + $0x8] ss:$16 sps:$4 sm:$0xff]   ;;  %v6725_v36 = vcombine.high %v6697_v32, %v6697_v32  ;;  %v6724_v38 = vcombine.low %v6697_v32, %v6697_v32  ;;  %v460_v41 = vsel %vm180_vm0, %v6722_v37, 0  ;;  %v7661_v43 = vld [vmem:[%s10807_s1 + $0x17c] ss:$16 sps:$4 sm:$0xff]  }
   0xc   :  { %v7656_v44 = vld [vmem:[%s10807_s1 + $0x170] ss:$16 sps:$4 sm:$0xff]   ;;  %v7659_v45 = vld [vmem:[%s10807_s1 + $0x178] ss:$16 sps:$4 sm:$0xff]   ;;  %v7664_v46 = vld [vmem:[%s10807_s1 + $0x154] ss:$16 sps:$4 sm:$0xff]  }
   0xd   :  { %200 = vmatpush1.bf16.msra.mxu0 %v7626_v15  ;;  %241 = vmatpush1.bf16.msra.mxu1 %v7627_v16  ;;  %v466_v42 = vsel %vm180_vm0, %v6724_v38, 0  ;;  %v7667_v47 = vld [vmem:[%s10807_s1 + $0x15c] ss:$16 sps:$4 sm:$0xff]   ;;  %v7662_v48 = vld [vmem:[%s10807_s1 + $0x150] ss:$16 sps:$4 sm:$0xff]  }
   0xe   :  { %201 = vmatprep.subr.bf16.mxu0 %v7628_v17  ;;  %242 = vmatprep.subr.bf16.mxu1 %v7630_v18  ;;  %v7665_v49 = vld [vmem:[%s10807_s1 + $0x158] ss:$16 sps:$4 sm:$0xff]   ;;  %v7670_v50 = vld [vmem:[%s10807_s1 + $0x134] ss:$16 sps:$4 sm:$0xff]   ;;  %v7673_v51 = vld [vmem:[%s10807_s1 + $0x13c] ss:$16 sps:$4 sm:$0xff]  }
   0xf   :  { %v7668_v52 = vld [vmem:[%s10807_s1 + $0x130] ss:$16 sps:$4 sm:$0xff]   ;;  %v7671_v53 = vld [vmem:[%s10807_s1 + $0x138] ss:$16 sps:$4 sm:$0xff]   ;;  %v7676_v54 = vld [vmem:[%s10807_s1 + $0x114] ss:$16 sps:$4 sm:$0xff]  }
  0x10   :  { %v7679_v55 = vld [vmem:[%s10807_s1 + $0x11c] ss:$16 sps:$4 sm:$0xff]   ;;  %v7674_v56 = vld [vmem:[%s10807_s1 + $0x110] ss:$16 sps:$4 sm:$0xff]   ;;  %v7677_v57 = vld [vmem:[%s10807_s1 + $0x118] ss:$16 sps:$4 sm:$0xff]  }
  0x11   :  { %202 = vmatpush1.bf16.msra.mxu0 %v7632_v19  ;;  %243 = vmatpush1.bf16.msra.mxu1 %v7633_v20  ;;  %v7682_v58 = vld [vmem:[%s10807_s1 + $0xf4] ss:$16 sps:$4 sm:$0xff]   ;;  %v7685_v59 = vld [vmem:[%s10807_s1 + $0xfc] ss:$16 sps:$4 sm:$0xff]   ;;  %v7680_v60 = vld [vmem:[%s10807_s1 + $0xf0] ss:$16 sps:$4 sm:$0xff]  }
  0x12   :  { %203 = vmatprep.subr.bf16.mxu0 %v7634_v21  ;;  %244 = vmatprep.subr.bf16.mxu1 %v7636_v22  ;;  %v7683_v61 = vld [vmem:[%s10807_s1 + $0xf8] ss:$16 sps:$4 sm:$0xff]   ;;  %v7688_v62 = vld [vmem:[%s10807_s1 + $0xd4] ss:$16 sps:$4 sm:$0xff]   ;;  %v7691_v63 = vld [vmem:[%s10807_s1 + $0xdc] ss:$16 sps:$4 sm:$0xff]  }
  0x13   :  { %v6754_v0 = vld [vmem:[%s10807_s1 + $0x260] sm:$0x33]  ;;  %v6755_v1 = vld [vmem:[%s10807_s1 + $0x268] sm:$0x33] }
  0x14   :  { %v7686_v2 = vld [vmem:[%s10807_s1 + $0xd0] ss:$16 sps:$4 sm:$0xff]   ;;  %v7689_v3 = vld [vmem:[%s10807_s1 + $0xd8] ss:$16 sps:$4 sm:$0xff]   ;;  %v6781_v4 = vcombine.high %v6754_v0, %v6754_v0  ;;  %v6783_v5 = vcombine.high %v6755_v1, %v6755_v1  ;;  %v6780_v6 = vcombine.low %v6754_v0, %v6754_v0  ;;  %v6782_v7 = vcombine.low %v6755_v1, %v6755_v1  ;;  %v7698_v9 = vld [vmem:[%s10807_s1 + $0x244] ss:$16 sps:$4 sm:$0xff]  }
  0x15   :  { %204 = vmatpush1.bf16.msra.mxu0 %v7638_v23  ;;  %245 = vmatpush1.bf16.msra.mxu1 %v7639_v24  ;;  %v298_v8 = vld [vmem:[%s10806_s0] sm:$0x1]  ;;  %v7701_v12 = vld [vmem:[%s10807_s1 + $0x24c] ss:$16 sps:$4 sm:$0xff]   ;;  %v7699_v15 = vld [vmem:[%s10807_s1 + $0x248] ss:$16 sps:$4 sm:$0xff]  }
  0x16   :  { %205 = vmatprep.subr.bf16.mxu0 %v7640_v25  ;;  %246 = vmatprep.subr.bf16.mxu1 %v7642_v26  ;;  %v739_v10 = vsel %vm180_vm0, %v6780_v6, 0  ;;  %v745_v11 = vsel %vm180_vm0, %v6782_v7, 0  ;;  %v7696_v13 = vld [vmem:[%s10807_s1 + $0x240] ss:$16 sps:$4 sm:$0xff]   ;;  %v7704_v16 = vld [vmem:[%s10807_s1 + $0x224] ss:$16 sps:$4 sm:$0xff]  }
  0x17   :  { %v7707_v17 = vld [vmem:[%s10807_s1 + $0x22c] ss:$16 sps:$4 sm:$0xff]   ;;  %v7702_v18 = vld [vmem:[%s10807_s1 + $0x220] ss:$16 sps:$4 sm:$0xff]   ;;  %v7705_v19 = vld [vmem:[%s10807_s1 + $0x228] ss:$16 sps:$4 sm:$0xff]  }
  0x18   :  { %v7710_v20 = vld [vmem:[%s10807_s1 + $0x204] ss:$16 sps:$4 sm:$0xff]   ;;  %v7713_v21 = vld [vmem:[%s10807_s1 + $0x20c] ss:$16 sps:$4 sm:$0xff]   ;;  %v7708_v22 = vld [vmem:[%s10807_s1 + $0x200] ss:$16 sps:$4 sm:$0xff]  }
  0x19   :  { %206 = vmatpush1.bf16.msra.mxu0 %v7644_v27  ;;  %247 = vmatpush1.bf16.msra.mxu1 %v7645_v28  ;;  %v7711_v23 = vld [vmem:[%s10807_s1 + $0x208] ss:$16 sps:$4 sm:$0xff]   ;;  %v7716_v24 = vld [vmem:[%s10807_s1 + $0x1e4] ss:$16 sps:$4 sm:$0xff]   ;;  %v7719_v25 = vld [vmem:[%s10807_s1 + $0x1ec] ss:$16 sps:$4 sm:$0xff]  }
  0x1a   :  { %207 = vmatprep.subr.bf16.mxu0 %v7646_v29  ;;  %248 = vmatprep.subr.bf16.mxu1 %v7648_v30  ;;  %v7714_v26 = vld [vmem:[%s10807_s1 + $0x1e0] ss:$16 sps:$4 sm:$0xff]   ;;  %v7717_v27 = vld [vmem:[%s10807_s1 + $0x1e8] ss:$16 sps:$4 sm:$0xff]   ;;  %v7722_v28 = vld [vmem:[%s10807_s1 + $0x1c4] ss:$16 sps:$4 sm:$0xff]  }
  0x1b   :  { %v7725_v29 = vld [vmem:[%s10807_s1 + $0x1cc] ss:$16 sps:$4 sm:$0xff]   ;;  %v7720_v30 = vld [vmem:[%s10807_s1 + $0x1c0] ss:$16 sps:$4 sm:$0xff]   ;;  %v7723_v31 = vld [vmem:[%s10807_s1 + $0x1c8] ss:$16 sps:$4 sm:$0xff]  }
  0x1c   :  { %v7728_v32 = vld [vmem:[%s10807_s1 + $0x1a4] ss:$16 sps:$4 sm:$0xff]   ;;  %v7729_v37 = vld [vmem:[%s10807_s1 + $0x1a8] ss:$16 sps:$4 sm:$0xff]  }
  0x1d   :  { %208 = vmatpush1.bf16.msra.mxu0 %v7650_v33  ;;  %249 = vmatpush1.bf16.msra.mxu1 %v7651_v34  ;;  %v7731_v33 = vld [vmem:[%s10807_s1 + $0x1ac] ss:$16 sps:$4 sm:$0xff]   ;;  %v6812_v34 = vld [vmem:[%s10807_s1 + $0x330] sm:$0x33]  ;;  %v7763_v0 = vld [vmem:[%s10807_s1 + $0x298] ss:$16 sps:$4 sm:$0xff]  }
  0x1e   :  { %6726 = vmatprep.subr.msk.bf16.mxu0 %vm180_vm0, %v6723_v35  ;;  %6728 = vmatprep.subr.msk.bf16.mxu1 %vm180_vm0, %v6725_v36  ;;  %v6813_v35 = vld [vmem:[%s10807_s1 + $0x338] sm:$0x33]  ;;  %v7726_v36 = vld [vmem:[%s10807_s1 + $0x1a0] ss:$16 sps:$4 sm:$0xff]   ;;  %v6839_v38 = vcombine.high %v6812_v34, %v6812_v34  ;;  %v7768_v1 = vld [vmem:[%s10807_s1 + $0x274] ss:$16 sps:$4 sm:$0xff]  }
  0x1f   :  { %v7769_v6 = vld [vmem:[%s10807_s1 + $0x278] ss:$16 sps:$4 sm:$0xff]  }
  0x20   :  { %6669 = vmatmul.mubr.msk.bf16.vlgmr.msra.gmra.mxu0 %vm176_vm1, %v19_v39  ;;  %6671 = vmatmul.mubr.msk.bf16.vlgmr.msra.gmra.mxu1 %vm176_vm1, %v19_v39  ;;  %v6841_v39 = vcombine.high %v6813_v35, %v6813_v35 }
  0x21   :  { %474 = vmatpush1.bf16.msra.mxu0 %v460_v41  ;;  %515 = vmatpush1.bf16.msra.mxu1 %v466_v42  ;;  %v6840_v41 = vcombine.low %v6813_v35, %v6813_v35  ;;  %v577_v42 = vld [vmem:[%s10806_s0] sm:$0x1]  ;;  %v7808_v35 = vld [vmem:[%s10807_s1 + $0x344] ss:$16 sps:$4 sm:$0xff]  }
  0x22   :  { %475 = vmatprep.subr.bf16.mxu0 %v7658_v40  ;;  %516 = vmatprep.subr.bf16.mxu1 %v7661_v43  ;;  %v6838_v40 = vcombine.low %v6812_v34, %v6812_v34  ;;  %v7738_v43 = vld [vmem:[%s10807_s1 + $0x314] ss:$16 sps:$4 sm:$0xff]   ;;  %v7803_v34 = vld [vmem:[%s10807_s1 + $0x368] ss:$16 sps:$4 sm:$0xff]  }
  0x23   :  { %503 = vmatprep.mubr.bf16.mxu0 %v8282_v14  ;;  %544 = vmatprep.mubr.bf16.mxu1 %v8282_v14 }
  0x25   :  { %476 = vmatpush1.bf16.msra.mxu0 %v7656_v44  ;;  %517 = vmatpush1.bf16.msra.mxu1 %v7659_v45  ;;  %v1018_v44 = vsel %vm180_vm0, %v6838_v40, 0  ;;  %v1024_v45 = vsel %vm180_vm0, %v6840_v41, 0  ;;  %v7809_v40 = vld [vmem:[%s10807_s1 + $0x348] ss:$16 sps:$4 sm:$0xff]  }
  0x26   :  { %477 = vmatprep.subr.bf16.mxu0 %v7664_v46  ;;  %518 = vmatprep.subr.bf16.mxu1 %v7667_v47  ;;  %v7741_v46 = vld [vmem:[%s10807_s1 + $0x31c] ss:$16 sps:$4 sm:$0xff]   ;;  %v7736_v47 = vld [vmem:[%s10807_s1 + $0x310] ss:$16 sps:$4 sm:$0xff]  }
  0x29   :  { %478 = vmatpush1.bf16.msra.mxu0 %v7662_v48  ;;  %519 = vmatpush1.bf16.msra.mxu1 %v7665_v49  ;;  %v7739_v48 = vld [vmem:[%s10807_s1 + $0x318] ss:$16 sps:$4 sm:$0xff]   ;;  %v7744_v49 = vld [vmem:[%s10807_s1 + $0x2f4] ss:$16 sps:$4 sm:$0xff]  }
  0x2a   :  { %479 = vmatprep.subr.bf16.mxu0 %v7670_v50  ;;  %520 = vmatprep.subr.bf16.mxu1 %v7673_v51  ;;  %v7747_v50 = vld [vmem:[%s10807_s1 + $0x2fc] ss:$16 sps:$4 sm:$0xff]   ;;  %v7742_v51 = vld [vmem:[%s10807_s1 + $0x2f0] ss:$16 sps:$4 sm:$0xff]  }
  0x2d   :  { %480 = vmatpush1.bf16.msra.mxu0 %v7668_v52  ;;  %521 = vmatpush1.bf16.msra.mxu1 %v7671_v53  ;;  %v7745_v52 = vld [vmem:[%s10807_s1 + $0x2f8] ss:$16 sps:$4 sm:$0xff]   ;;  %v7750_v53 = vld [vmem:[%s10807_s1 + $0x2d4] ss:$16 sps:$4 sm:$0xff]  }
  0x2e   :  { %481 = vmatprep.subr.bf16.mxu0 %v7676_v54  ;;  %522 = vmatprep.subr.bf16.mxu1 %v7679_v55  ;;  %v7753_v54 = vld [vmem:[%s10807_s1 + $0x2dc] ss:$16 sps:$4 sm:$0xff]   ;;  %v7748_v55 = vld [vmem:[%s10807_s1 + $0x2d0] ss:$16 sps:$4 sm:$0xff]  }
  0x31   :  { %482 = vmatpush1.bf16.msra.mxu0 %v7674_v56  ;;  %523 = vmatpush1.bf16.msra.mxu1 %v7677_v57  ;;  %v7751_v56 = vld [vmem:[%s10807_s1 + $0x2d8] ss:$16 sps:$4 sm:$0xff]   ;;  %v7756_v57 = vld [vmem:[%s10807_s1 + $0x2b4] ss:$16 sps:$4 sm:$0xff]  }
  0x32   :  { %483 = vmatprep.subr.bf16.mxu0 %v7682_v58  ;;  %524 = vmatprep.subr.bf16.mxu1 %v7685_v59  ;;  %v7759_v58 = vld [vmem:[%s10807_s1 + $0x2bc] ss:$16 sps:$4 sm:$0xff]   ;;  %v7754_v59 = vld [vmem:[%s10807_s1 + $0x2b0] ss:$16 sps:$4 sm:$0xff]  }
  0x35   :  { %484 = vmatpush1.bf16.msra.mxu0 %v7680_v60  ;;  %525 = vmatpush1.bf16.msra.mxu1 %v7683_v61  ;;  %v7757_v60 = vld [vmem:[%s10807_s1 + $0x2b8] ss:$16 sps:$4 sm:$0xff]   ;;  %v7762_v61 = vld [vmem:[%s10807_s1 + $0x294] ss:$16 sps:$4 sm:$0xff]  }
  0x36   :  { %485 = vmatprep.subr.bf16.mxu0 %v7688_v62  ;;  %526 = vmatprep.subr.bf16.mxu1 %v7691_v63  ;;  %v7765_v62 = vld [vmem:[%s10807_s1 + $0x29c] ss:$16 sps:$4 sm:$0xff]   ;;  %v7760_v63 = vld [vmem:[%s10807_s1 + $0x290] ss:$16 sps:$4 sm:$0xff]  }
  0x39   :  { %486 = vmatpush1.bf16.msra.mxu0 %v7686_v2  ;;  %527 = vmatpush1.bf16.msra.mxu1 %v7689_v3  ;;  %v7771_v2 = vld [vmem:[%s10807_s1 + $0x27c] ss:$16 sps:$4 sm:$0xff]   ;;  %v6870_v3 = vld [vmem:[%s10807_s1 + $0x400] sm:$0x33] }
  0x3a   :  { %6784 = vmatprep.subr.msk.bf16.mxu0 %vm180_vm0, %v6781_v4  ;;  %6786 = vmatprep.subr.msk.bf16.mxu1 %vm180_vm0, %v6783_v5  ;;  %v6871_v4 = vld [vmem:[%s10807_s1 + $0x408] sm:$0x33]  ;;  %v7766_v5 = vld [vmem:[%s10807_s1 + $0x270] ss:$16 sps:$4 sm:$0xff]   ;;  %v6897_v7 = vcombine.high %v6870_v3, %v6870_v3 }
  0x3c   :  { %6727 = vmatmul.mubr.msk.bf16.vlgmr.msra.gmra.mxu0 %vm176_vm1, %v298_v8  ;;  %6729 = vmatmul.mubr.msk.bf16.vlgmr.msra.gmra.mxu1 %vm176_vm1, %v298_v8  ;;  %v6899_v8 = vcombine.high %v6871_v4, %v6871_v4 }
  0x3d   :  { %753 = vmatpush1.bf16.msra.mxu0 %v739_v10  ;;  %794 = vmatpush1.bf16.msra.mxu1 %v745_v11  ;;  %v6898_v10 = vcombine.low %v6871_v4, %v6871_v4  ;;  %v856_v11 = vld [vmem:[%s10806_s0] sm:$0x1]  ;;  %v7848_v4 = vld [vmem:[%s10807_s1 + $0x414] ss:$16 sps:$4 sm:$0xff]  }
  0x3e   :  { %754 = vmatprep.subr.bf16.mxu0 %v7698_v9  ;;  %795 = vmatprep.subr.bf16.mxu1 %v7701_v12  ;;  %v6896_v9 = vcombine.low %v6870_v3, %v6870_v3  ;;  %v7778_v12 = vld [vmem:[%s10807_s1 + $0x3e4] ss:$16 sps:$4 sm:$0xff]   ;;  %v7843_v3 = vld [vmem:[%s10807_s1 + $0x438] ss:$16 sps:$4 sm:$0xff]  }
  0x3f   :  { %782 = vmatprep.mubr.bf16.mxu0 %v8282_v14  ;;  %823 = vmatprep.mubr.bf16.mxu1 %v8282_v14 }
  0x41   :  { %755 = vmatpush1.bf16.msra.mxu0 %v7696_v13  ;;  %796 = vmatpush1.bf16.msra.mxu1 %v7699_v15  ;;  %v1297_v13 = vsel %vm180_vm0, %v6896_v9, 0  ;;  %v1303_v15 = vsel %vm180_vm0, %v6898_v10, 0  ;;  %v7849_v9 = vld [vmem:[%s10807_s1 + $0x418] ss:$16 sps:$4 sm:$0xff]  }
  0x42   :  { %756 = vmatprep.subr.bf16.mxu0 %v7704_v16  ;;  %797 = vmatprep.subr.bf16.mxu1 %v7707_v17  ;;  %v7781_v16 = vld [vmem:[%s10807_s1 + $0x3ec] ss:$16 sps:$4 sm:$0xff]   ;;  %v7776_v17 = vld [vmem:[%s10807_s1 + $0x3e0] ss:$16 sps:$4 sm:$0xff]  }
  0x45   :  { %757 = vmatpush1.bf16.msra.mxu0 %v7702_v18  ;;  %798 = vmatpush1.bf16.msra.mxu1 %v7705_v19  ;;  %v7779_v18 = vld [vmem:[%s10807_s1 + $0x3e8] ss:$16 sps:$4 sm:$0xff]   ;;  %v7784_v19 = vld [vmem:[%s10807_s1 + $0x3c4] ss:$16 sps:$4 sm:$0xff]  }
  0x46   :  { %758 = vmatprep.subr.bf16.mxu0 %v7710_v20  ;;  %799 = vmatprep.subr.bf16.mxu1 %v7713_v21  ;;  %v7787_v20 = vld [vmem:[%s10807_s1 + $0x3cc] ss:$16 sps:$4 sm:$0xff]   ;;  %v7782_v21 = vld [vmem:[%s10807_s1 + $0x3c0] ss:$16 sps:$4 sm:$0xff]  }
  0x49   :  { %759 = vmatpush1.bf16.msra.mxu0 %v7708_v22  ;;  %800 = vmatpush1.bf16.msra.mxu1 %v7711_v23  ;;  %v7785_v22 = vld [vmem:[%s10807_s1 + $0x3c8] ss:$16 sps:$4 sm:$0xff]   ;;  %v7790_v23 = vld [vmem:[%s10807_s1 + $0x3a4] ss:$16 sps:$4 sm:$0xff]  }
  0x4a   :  { %760 = vmatprep.subr.bf16.mxu0 %v7716_v24  ;;  %801 = vmatprep.subr.bf16.mxu1 %v7719_v25  ;;  %v7793_v24 = vld [vmem:[%s10807_s1 + $0x3ac] ss:$16 sps:$4 sm:$0xff]   ;;  %v7788_v25 = vld [vmem:[%s10807_s1 + $0x3a0] ss:$16 sps:$4 sm:$0xff]  }
  0x4d   :  { %761 = vmatpush1.bf16.msra.mxu0 %v7714_v26  ;;  %802 = vmatpush1.bf16.msra.mxu1 %v7717_v27  ;;  %v7791_v26 = vld [vmem:[%s10807_s1 + $0x3a8] ss:$16 sps:$4 sm:$0xff]   ;;  %v7796_v27 = vld [vmem:[%s10807_s1 + $0x384] ss:$16 sps:$4 sm:$0xff]  }
  0x4e   :  { %762 = vmatprep.subr.bf16.mxu0 %v7722_v28  ;;  %803 = vmatprep.subr.bf16.mxu1 %v7725_v29  ;;  %v7799_v28 = vld [vmem:[%s10807_s1 + $0x38c] ss:$16 sps:$4 sm:$0xff]   ;;  %v7794_v29 = vld [vmem:[%s10807_s1 + $0x380] ss:$16 sps:$4 sm:$0xff]  }
  0x51   :  { %763 = vmatpush1.bf16.msra.mxu0 %v7720_v30  ;;  %804 = vmatpush1.bf16.msra.mxu1 %v7723_v31  ;;  %v7797_v30 = vld [vmem:[%s10807_s1 + $0x388] ss:$16 sps:$4 sm:$0xff]   ;;  %v7802_v31 = vld [vmem:[%s10807_s1 + $0x364] ss:$16 sps:$4 sm:$0xff]  }
  0x52   :  { %764 = vmatprep.subr.bf16.mxu0 %v7728_v32  ;;  %805 = vmatprep.subr.bf16.mxu1 %v7731_v33  ;;  %v7805_v32 = vld [vmem:[%s10807_s1 + $0x36c] ss:$16 sps:$4 sm:$0xff]   ;;  %v7800_v33 = vld [vmem:[%s10807_s1 + $0x360] ss:$16 sps:$4 sm:$0xff]  }
  0x55   :  { %765 = vmatpush1.bf16.msra.mxu0 %v7726_v36  ;;  %806 = vmatpush1.bf16.msra.mxu1 %v7729_v37  ;;  %v7811_v36 = vld [vmem:[%s10807_s1 + $0x34c] ss:$16 sps:$4 sm:$0xff]   ;;  %v6928_v37 = vld [vmem:[%s10807_s1 + $0x4d0] sm:$0x33] }
  0x56   :  { %6842 = vmatprep.subr.msk.bf16.mxu0 %vm180_vm0, %v6839_v38  ;;  %6844 = vmatprep.subr.msk.bf16.mxu1 %vm180_vm0, %v6841_v39  ;;  %v6929_v38 = vld [vmem:[%s10807_s1 + $0x4d8] sm:$0x33]  ;;  %v7806_v39 = vld [vmem:[%s10807_s1 + $0x340] ss:$16 sps:$4 sm:$0xff]   ;;  %v6955_v41 = vcombine.high %v6928_v37, %v6928_v37 }
  0x58   :  { %6785 = vmatmul.mubr.msk.bf16.vlgmr.msra.gmra.mxu0 %vm176_vm1, %v577_v42  ;;  %6787 = vmatmul.mubr.msk.bf16.vlgmr.msra.gmra.mxu1 %vm176_vm1, %v577_v42  ;;  %v6957_v42 = vcombine.high %v6929_v38, %v6929_v38 }
  0x59   :  { %1032 = vmatpush1.bf16.msra.mxu0 %v1018_v44  ;;  %1073 = vmatpush1.bf16.msra.mxu1 %v1024_v45  ;;  %v6956_v44 = vcombine.low %v6929_v38, %v6929_v38  ;;  %v1135_v45 = vld [vmem:[%s10806_s0] sm:$0x1]  ;;  %v7888_v38 = vld [vmem:[%s10807_s1 + $0x4e4] ss:$16 sps:$4 sm:$0xff]  }
  0x5a   :  { %1033 = vmatprep.subr.bf16.mxu0 %v7738_v43  ;;  %1074 = vmatprep.subr.bf16.mxu1 %v7741_v46  ;;  %v6954_v43 = vcombine.low %v6928_v37, %v6928_v37  ;;  %v7818_v46 = vld [vmem:[%s10807_s1 + $0x4b4] ss:$16 sps:$4 sm:$0xff]   ;;  %v7883_v37 = vld [vmem:[%s10807_s1 + $0x508] ss:$16 sps:$4 sm:$0xff]  }
  0x5b   :  { %1061 = vmatprep.mubr.bf16.mxu0 %v8282_v14  ;;  %1102 = vmatprep.mubr.bf16.mxu1 %v8282_v14 }
  0x5d   :  { %1034 = vmatpush1.bf16.msra.mxu0 %v7736_v47  ;;  %1075 = vmatpush1.bf16.msra.mxu1 %v7739_v48  ;;  %v1576_v47 = vsel %vm180_vm0, %v6954_v43, 0  ;;  %v1582_v48 = vsel %vm180_vm0, %v6956_v44, 0  ;;  %v7889_v43 = vld [vmem:[%s10807_s1 + $0x4e8] ss:$16 sps:$4 sm:$0xff]  }
  0x5e   :  { %1035 = vmatprep.subr.bf16.mxu0 %v7744_v49  ;;  %1076 = vmatprep.subr.bf16.mxu1 %v7747_v50  ;;  %v7821_v49 = vld [vmem:[%s10807_s1 + $0x4bc] ss:$16 sps:$4 sm:$0xff]   ;;  %v7816_v50 = vld [vmem:[%s10807_s1 + $0x4b0] ss:$16 sps:$4 sm:$0xff]  }
  0x61   :  { %1036 = vmatpush1.bf16.msra.mxu0 %v7742_v51  ;;  %1077 = vmatpush1.bf16.msra.mxu1 %v7745_v52  ;;  %v7819_v51 = vld [vmem:[%s10807_s1 + $0x4b8] ss:$16 sps:$4 sm:$0xff]   ;;  %v7824_v52 = vld [vmem:[%s10807_s1 + $0x494] ss:$16 sps:$4 sm:$0xff]  }
  0x62   :  { %1037 = vmatprep.subr.bf16.mxu0 %v7750_v53  ;;  %1078 = vmatprep.subr.bf16.mxu1 %v7753_v54  ;;  %v7827_v53 = vld [vmem:[%s10807_s1 + $0x49c] ss:$16 sps:$4 sm:$0xff]   ;;  %v7822_v54 = vld [vmem:[%s10807_s1 + $0x490] ss:$16 sps:$4 sm:$0xff]  }
  0x65   :  { %1038 = vmatpush1.bf16.msra.mxu0 %v7748_v55  ;;  %1079 = vmatpush1.bf16.msra.mxu1 %v7751_v56  ;;  %v7825_v55 = vld [vmem:[%s10807_s1 + $0x498] ss:$16 sps:$4 sm:$0xff]   ;;  %v7830_v56 = vld [vmem:[%s10807_s1 + $0x474] ss:$16 sps:$4 sm:$0xff]  }
  0x66   :  { %1039 = vmatprep.subr.bf16.mxu0 %v7756_v57  ;;  %1080 = vmatprep.subr.bf16.mxu1 %v7759_v58  ;;  %v7833_v57 = vld [vmem:[%s10807_s1 + $0x47c] ss:$16 sps:$4 sm:$0xff]   ;;  %v7828_v58 = vld [vmem:[%s10807_s1 + $0x470] ss:$16 sps:$4 sm:$0xff]  }
  0x69   :  { %1040 = vmatpush1.bf16.msra.mxu0 %v7754_v59  ;;  %1081 = vmatpush1.bf16.msra.mxu1 %v7757_v60  ;;  %v7831_v59 = vld [vmem:[%s10807_s1 + $0x478] ss:$16 sps:$4 sm:$0xff]   ;;  %v7836_v60 = vld [vmem:[%s10807_s1 + $0x454] ss:$16 sps:$4 sm:$0xff]  }
  0x6a   :  { %1041 = vmatprep.subr.bf16.mxu0 %v7762_v61  ;;  %1082 = vmatprep.subr.bf16.mxu1 %v7765_v62  ;;  %v7839_v61 = vld [vmem:[%s10807_s1 + $0x45c] ss:$16 sps:$4 sm:$0xff]   ;;  %v7834_v62 = vld [vmem:[%s10807_s1 + $0x450] ss:$16 sps:$4 sm:$0xff]  }
  0x6d   :  { %1042 = vmatpush1.bf16.msra.mxu0 %v7760_v63  ;;  %1083 = vmatpush1.bf16.msra.mxu1 %v7763_v0  ;;  %v7837_v63 = vld [vmem:[%s10807_s1 + $0x458] ss:$16 sps:$4 sm:$0xff]   ;;  %v7842_v0 = vld [vmem:[%s10807_s1 + $0x434] ss:$16 sps:$4 sm:$0xff]  }
  0x6e   :  { %1043 = vmatprep.subr.bf16.mxu0 %v7768_v1  ;;  %1084 = vmatprep.subr.bf16.mxu1 %v7771_v2  ;;  %v7845_v1 = vld [vmem:[%s10807_s1 + $0x43c] ss:$16 sps:$4 sm:$0xff]   ;;  %v7840_v2 = vld [vmem:[%s10807_s1 + $0x430] ss:$16 sps:$4 sm:$0xff]  }
  0x71   :  { %1044 = vmatpush1.bf16.msra.mxu0 %v7766_v5  ;;  %1085 = vmatpush1.bf16.msra.mxu1 %v7769_v6  ;;  %v7851_v5 = vld [vmem:[%s10807_s1 + $0x41c] ss:$16 sps:$4 sm:$0xff]   ;;  %v6986_v6 = vld [vmem:[%s10807_s1 + $0x5a0] sm:$0x33] }
  0x72   :  { %6900 = vmatprep.subr.msk.bf16.mxu0 %vm180_vm0, %v6897_v7  ;;  %6902 = vmatprep.subr.msk.bf16.mxu1 %vm180_vm0, %v6899_v8  ;;  %v6987_v7 = vld [vmem:[%s10807_s1 + $0x5a8] sm:$0x33]  ;;  %v7846_v8 = vld [vmem:[%s10807_s1 + $0x410] ss:$16 sps:$4 sm:$0xff]   ;;  %v7013_v10 = vcombine.high %v6986_v6, %v6986_v6 }
  0x74   :  { %6843 = vmatmul.mubr.msk.bf16.vlgmr.msra.gmra.mxu0 %vm176_vm1, %v856_v11  ;;  %6845 = vmatmul.mubr.msk.bf16.vlgmr.msra.gmra.mxu1 %vm176_vm1, %v856_v11  ;;  %v7015_v11 = vcombine.high %v6987_v7, %v6987_v7 }
  0x75   :  { %1311 = vmatpush1.bf16.msra.mxu0 %v1297_v13  ;;  %1352 = vmatpush1.bf16.msra.mxu1 %v1303_v15  ;;  %v7014_v13 = vcombine.low %v6987_v7, %v6987_v7  ;;  %v1414_v15 = vld [vmem:[%s10806_s0] sm:$0x1]  ;;  %v7928_v7 = vld [vmem:[%s10807_s1 + $0x5b4] ss:$16 sps:$4 sm:$0xff]  }
  0x76   :  { %1312 = vmatprep.subr.bf16.mxu0 %v7778_v12  ;;  %1353 = vmatprep.subr.bf16.mxu1 %v7781_v16  ;;  %v7012_v12 = vcombine.low %v6986_v6, %v6986_v6  ;;  %v7923_v6 = vld [vmem:[%s10807_s1 + $0x5d8] ss:$16 sps:$4 sm:$0xff]  }
  0x77   :  { %1340 = vmatprep.mubr.bf16.mxu0 %v8282_v14  ;;  %1381 = vmatprep.mubr.bf16.mxu1 %v8282_v14 }
  0x78   :  { %v1855_v16 = vsel %vm180_vm0, %v7012_v12, 0  ;;  %v7102_v12 = vld [vmem:[%s10807_s1 + $0x740] sm:$0x33] }
  0x79   :  { %1313 = vmatpush1.bf16.msra.mxu0 %v7776_v17  ;;  %1354 = vmatpush1.bf16.msra.mxu1 %v7779_v18  ;;  %v1861_v17 = vsel %vm180_vm0, %v7014_v13, 0  ;;  %v7858_v18 = vld [vmem:[%s10807_s1 + $0x584] ss:$16 sps:$4 sm:$0xff]   ;;  %v7926_v13 = vld [vmem:[%s10807_s1 + $0x5b0] ss:$16 sps:$4 sm:$0xff]  }
  0x7a   :  { %1314 = vmatprep.subr.bf16.mxu0 %v7784_v19  ;;  %1355 = vmatprep.subr.bf16.mxu1 %v7787_v20  ;;  %v7861_v19 = vld [vmem:[%s10807_s1 + $0x58c] ss:$16 sps:$4 sm:$0xff]   ;;  %v7856_v20 = vld [vmem:[%s10807_s1 + $0x580] ss:$16 sps:$4 sm:$0xff]  }
  0x7d   :  { %1315 = vmatpush1.bf16.msra.mxu0 %v7782_v21  ;;  %1356 = vmatpush1.bf16.msra.mxu1 %v7785_v22  ;;  %v7859_v21 = vld [vmem:[%s10807_s1 + $0x588] ss:$16 sps:$4 sm:$0xff]   ;;  %v7864_v22 = vld [vmem:[%s10807_s1 + $0x564] ss:$16 sps:$4 sm:$0xff]  }
  0x7e   :  { %1316 = vmatprep.subr.bf16.mxu0 %v7790_v23  ;;  %1357 = vmatprep.subr.bf16.mxu1 %v7793_v24  ;;  %v7867_v23 = vld [vmem:[%s10807_s1 + $0x56c] ss:$16 sps:$4 sm:$0xff]   ;;  %v7862_v24 = vld [vmem:[%s10807_s1 + $0x560] ss:$16 sps:$4 sm:$0xff]  }
  0x81   :  { %1317 = vmatpush1.bf16.msra.mxu0 %v7788_v25  ;;  %1358 = vmatpush1.bf16.msra.mxu1 %v7791_v26  ;;  %v7865_v25 = vld [vmem:[%s10807_s1 + $0x568] ss:$16 sps:$4 sm:$0xff]   ;;  %v7870_v26 = vld [vmem:[%s10807_s1 + $0x544] ss:$16 sps:$4 sm:$0xff]  }
  0x82   :  { %1318 = vmatprep.subr.bf16.mxu0 %v7796_v27  ;;  %1359 = vmatprep.subr.bf16.mxu1 %v7799_v28  ;;  %v7873_v27 = vld [vmem:[%s10807_s1 + $0x54c] ss:$16 sps:$4 sm:$0xff]   ;;  %v7868_v28 = vld [vmem:[%s10807_s1 + $0x540] ss:$16 sps:$4 sm:$0xff]  }
  0x85   :  { %1319 = vmatpush1.bf16.msra.mxu0 %v7794_v29  ;;  %1360 = vmatpush1.bf16.msra.mxu1 %v7797_v30  ;;  %v7871_v29 = vld [vmem:[%s10807_s1 + $0x548] ss:$16 sps:$4 sm:$0xff]   ;;  %v7876_v30 = vld [vmem:[%s10807_s1 + $0x524] ss:$16 sps:$4 sm:$0xff]  }
  0x86   :  { %1320 = vmatprep.subr.bf16.mxu0 %v7802_v31  ;;  %1361 = vmatprep.subr.bf16.mxu1 %v7805_v32  ;;  %v7879_v31 = vld [vmem:[%s10807_s1 + $0x52c] ss:$16 sps:$4 sm:$0xff]   ;;  %v7874_v32 = vld [vmem:[%s10807_s1 + $0x520] ss:$16 sps:$4 sm:$0xff]  }
  0x89   :  { %1321 = vmatpush1.bf16.msra.mxu0 %v7800_v33  ;;  %1362 = vmatpush1.bf16.msra.mxu1 %v7803_v34  ;;  %v7877_v33 = vld [vmem:[%s10807_s1 + $0x528] ss:$16 sps:$4 sm:$0xff]   ;;  %v7882_v34 = vld [vmem:[%s10807_s1 + $0x504] ss:$16 sps:$4 sm:$0xff]  }
  0x8a   :  { %1322 = vmatprep.subr.bf16.mxu0 %v7808_v35  ;;  %1363 = vmatprep.subr.bf16.mxu1 %v7811_v36  ;;  %v7885_v35 = vld [vmem:[%s10807_s1 + $0x50c] ss:$16 sps:$4 sm:$0xff]   ;;  %v7880_v36 = vld [vmem:[%s10807_s1 + $0x500] ss:$16 sps:$4 sm:$0xff]  }
  0x8d   :  { %1323 = vmatpush1.bf16.msra.mxu0 %v7806_v39  ;;  %1364 = vmatpush1.bf16.msra.mxu1 %v7809_v40  ;;  %v7891_v39 = vld [vmem:[%s10807_s1 + $0x4ec] ss:$16 sps:$4 sm:$0xff]   ;;  %v7044_v40 = vld [vmem:[%s10807_s1 + $0x670] sm:$0x33] }
  0x8e   :  { %6958 = vmatprep.subr.msk.bf16.mxu0 %vm180_vm0, %v6955_v41  ;;  %6960 = vmatprep.subr.msk.bf16.mxu1 %vm180_vm0, %v6957_v42  ;;  %v7045_v41 = vld [vmem:[%s10807_s1 + $0x678] sm:$0x33]  ;;  %v7886_v42 = vld [vmem:[%s10807_s1 + $0x4e0] ss:$16 sps:$4 sm:$0xff]   ;;  %v7071_v44 = vcombine.high %v7044_v40, %v7044_v40 }
  0x90   :  { %6901 = vmatmul.mubr.msk.bf16.vlgmr.msra.gmra.mxu0 %vm176_vm1, %v1135_v45  ;;  %6903 = vmatmul.mubr.msk.bf16.vlgmr.msra.gmra.mxu1 %vm176_vm1, %v1135_v45  ;;  %v7073_v45 = vcombine.high %v7045_v41, %v7045_v41 }
  0x91   :  { %1590 = vmatpush1.bf16.msra.mxu0 %v1576_v47  ;;  %1631 = vmatpush1.bf16.msra.mxu1 %v1582_v48  ;;  %v7072_v47 = vcombine.low %v7045_v41, %v7045_v41  ;;  %v1693_v48 = vld [vmem:[%s10806_s0] sm:$0x1] }
  0x92   :  { %1591 = vmatprep.subr.bf16.mxu0 %v7818_v46  ;;  %1632 = vmatprep.subr.bf16.mxu1 %v7821_v49  ;;  %v7070_v46 = vcombine.low %v7044_v40, %v7044_v40  ;;  %v7898_v49 = vld [vmem:[%s10807_s1 + $0x654] ss:$16 sps:$4 sm:$0xff]   ;;  %v7939_v40 = vld [vmem:[%s10807_s1 + $0x728] ss:$16 sps:$4 sm:$0xff]  }
  0x93   :  { %1619 = vmatprep.mubr.bf16.mxu0 %v8282_v14  ;;  %1660 = vmatprep.mubr.bf16.mxu1 %v8282_v14 }
  0x95   :  { %1592 = vmatpush1.bf16.msra.mxu0 %v7816_v50  ;;  %1633 = vmatpush1.bf16.msra.mxu1 %v7819_v51  ;;  %v2134_v50 = vsel %vm180_vm0, %v7070_v46, 0  ;;  %v2140_v51 = vsel %vm180_vm0, %v7072_v47, 0  ;;  %v7942_v46 = vld [vmem:[%s10807_s1 + $0x700] ss:$16 sps:$4 sm:$0xff]   ;;  %v7945_v47 = vld [vmem:[%s10807_s1 + $0x708] ss:$16 sps:$4 sm:$0xff]  }
  0x96   :  { %1593 = vmatprep.subr.bf16.mxu0 %v7824_v52  ;;  %1634 = vmatprep.subr.bf16.mxu1 %v7827_v53  ;;  %v7901_v52 = vld [vmem:[%s10807_s1 + $0x65c] ss:$16 sps:$4 sm:$0xff]   ;;  %v7896_v53 = vld [vmem:[%s10807_s1 + $0x650] ss:$16 sps:$4 sm:$0xff]  }
  0x99   :  { %1594 = vmatpush1.bf16.msra.mxu0 %v7822_v54  ;;  %1635 = vmatpush1.bf16.msra.mxu1 %v7825_v55  ;;  %v7899_v54 = vld [vmem:[%s10807_s1 + $0x658] ss:$16 sps:$4 sm:$0xff]   ;;  %v7904_v55 = vld [vmem:[%s10807_s1 + $0x634] ss:$16 sps:$4 sm:$0xff]  }
  0x9a   :  { %1595 = vmatprep.subr.bf16.mxu0 %v7830_v56  ;;  %1636 = vmatprep.subr.bf16.mxu1 %v7833_v57  ;;  %v7907_v56 = vld [vmem:[%s10807_s1 + $0x63c] ss:$16 sps:$4 sm:$0xff]   ;;  %v7902_v57 = vld [vmem:[%s10807_s1 + $0x630] ss:$16 sps:$4 sm:$0xff]  }
  0x9d   :  { %1596 = vmatpush1.bf16.msra.mxu0 %v7828_v58  ;;  %1637 = vmatpush1.bf16.msra.mxu1 %v7831_v59  ;;  %v7905_v58 = vld [vmem:[%s10807_s1 + $0x638] ss:$16 sps:$4 sm:$0xff]   ;;  %v7910_v59 = vld [vmem:[%s10807_s1 + $0x614] ss:$16 sps:$4 sm:$0xff]  }
  0x9e   :  { %1597 = vmatprep.subr.bf16.mxu0 %v7836_v60  ;;  %1638 = vmatprep.subr.bf16.mxu1 %v7839_v61  ;;  %v7913_v60 = vld [vmem:[%s10807_s1 + $0x61c] ss:$16 sps:$4 sm:$0xff]   ;;  %v7908_v61 = vld [vmem:[%s10807_s1 + $0x610] ss:$16 sps:$4 sm:$0xff]  }
  0xa1   :  { %1598 = vmatpush1.bf16.msra.mxu0 %v7834_v62  ;;  %1639 = vmatpush1.bf16.msra.mxu1 %v7837_v63  ;;  %v7911_v62 = vld [vmem:[%s10807_s1 + $0x618] ss:$16 sps:$4 sm:$0xff]   ;;  %v7916_v63 = vld [vmem:[%s10807_s1 + $0x5f4] ss:$16 sps:$4 sm:$0xff]  }
  0xa2   :  { %1599 = vmatprep.subr.bf16.mxu0 %v7842_v0  ;;  %1640 = vmatprep.subr.bf16.mxu1 %v7845_v1  ;;  %v7919_v0 = vld [vmem:[%s10807_s1 + $0x5fc] ss:$16 sps:$4 sm:$0xff]   ;;  %v7914_v1 = vld [vmem:[%s10807_s1 + $0x5f0] ss:$16 sps:$4 sm:$0xff]  }
  0xa5   :  { %1600 = vmatpush1.bf16.msra.mxu0 %v7840_v2  ;;  %1641 = vmatpush1.bf16.msra.mxu1 %v7843_v3  ;;  %v7917_v2 = vld [vmem:[%s10807_s1 + $0x5f8] ss:$16 sps:$4 sm:$0xff]   ;;  %v7922_v3 = vld [vmem:[%s10807_s1 + $0x5d4] ss:$16 sps:$4 sm:$0xff]  }
  0xa6   :  { %1601 = vmatprep.subr.bf16.mxu0 %v7848_v4  ;;  %1642 = vmatprep.subr.bf16.mxu1 %v7851_v5  ;;  %v7925_v4 = vld [vmem:[%s10807_s1 + $0x5dc] ss:$16 sps:$4 sm:$0xff]   ;;  %v7920_v5 = vld [vmem:[%s10807_s1 + $0x5d0] ss:$16 sps:$4 sm:$0xff]  }
  0xa9   :  { %1602 = vmatpush1.bf16.msra.mxu0 %v7846_v8  ;;  %1643 = vmatpush1.bf16.msra.mxu1 %v7849_v9  ;;  %v8283_v8 = vmov 1983009808  }
  0xaa   :  { %7016 = vmatprep.subr.msk.bf16.mxu0 %vm180_vm0, %v7013_v10  ;;  %7018 = vmatprep.subr.msk.bf16.mxu1 %vm180_vm0, %v7015_v11  ;;  %v282_v9 = vunpack.c.l.s4 %v8283_v8  ;;  %v284_v10 = vlaneseq  ;;  %v7931_v11 = vld [vmem:[%s10807_s1 + $0x5bc] ss:$16 sps:$4 sm:$0xff]  }
  0xac   :  { %6959 = vmatmul.mubr.msk.bf16.vlgmr.msra.gmra.mxu0 %vm176_vm1, %v1414_v15  ;;  %6961 = vmatmul.mubr.msk.bf16.vlgmr.msra.gmra.mxu1 %vm176_vm1, %v1414_v15  ;;  %v7929_v15 = vld [vmem:[%s10807_s1 + $0x5b8] ss:$16 sps:$4 sm:$0xff]  }
  0xad   :  { %1869 = vmatpush1.bf16.msra.mxu0 %v1855_v16  ;;  %1910 = vmatpush1.bf16.msra.mxu1 %v1861_v17  ;;  %v7103_v16 = vld [vmem:[%s10807_s1 + $0x748] sm:$0x33]  ;;  %v283_v17 = vunpack.c.0.s8 %v282_v9 }
  0xae   :  { %1870 = vmatprep.subr.bf16.mxu0 %v7858_v18  ;;  %1911 = vmatprep.subr.bf16.mxu1 %v7861_v19  ;;  %v9026_v18 = vshrl.u32 %v284_v10, 7  ;;  %v7129_v19 = vcombine.high %v7102_v12, %v7102_v12 }
  0xaf   :  { %1898 = vmatprep.mubr.bf16.mxu0 %v8282_v14  ;;  %1939 = vmatprep.mubr.bf16.mxu1 %v8282_v14 }
  0xb1   :  { %1871 = vmatpush1.bf16.msra.mxu0 %v7856_v20  ;;  %1912 = vmatpush1.bf16.msra.mxu1 %v7859_v21  ;;  %v7131_v20 = vcombine.high %v7103_v16, %v7103_v16  ;;  %v7128_v21 = vcombine.low %v7102_v12, %v7102_v12 }
  0xb2   :  { %1872 = vmatprep.subr.bf16.mxu0 %v7864_v22  ;;  %1913 = vmatprep.subr.bf16.mxu1 %v7867_v23  ;;  %v7130_v22 = vcombine.low %v7103_v16, %v7103_v16 }
  0xb5   :  { %1873 = vmatpush1.bf16.msra.mxu0 %v7862_v24  ;;  %1914 = vmatpush1.bf16.msra.mxu1 %v7865_v25  ;;  %v9029_v25 = vsub.s32 %v283_v17, %v9026_v18 }
  0xb6   :  { %1874 = vmatprep.subr.bf16.mxu0 %v7870_v26  ;;  %1915 = vmatprep.subr.bf16.mxu1 %v7873_v27  ;;  %v1972_v26 = vld [vmem:[%s10806_s0] sm:$0x1]  ;;  %v7938_v27 = vld [vmem:[%s10807_s1 + $0x724] ss:$16 sps:$4 sm:$0xff]  }
  0xb9   :  { %1875 = vmatpush1.bf16.msra.mxu0 %v7868_v28  ;;  %1916 = vmatpush1.bf16.msra.mxu1 %v7871_v29 }
  0xba   :  { %1876 = vmatprep.subr.bf16.mxu0 %v7876_v30  ;;  %1917 = vmatprep.subr.bf16.mxu1 %v7879_v31  ;;  %v2413_v30 = vsel %vm180_vm0, %v7128_v21, 0  ;;  %v2419_v31 = vsel %vm180_vm0, %v7130_v22, 0 }
  0xbd   :  { %1877 = vmatpush1.bf16.msra.mxu0 %v7874_v32  ;;  %1918 = vmatpush1.bf16.msra.mxu1 %v7877_v33  ;;  %v7941_v32 = vld [vmem:[%s10807_s1 + $0x72c] ss:$16 sps:$4 sm:$0xff]  }
  0xbe   :  { %1878 = vmatprep.subr.bf16.mxu0 %v7882_v34  ;;  %1919 = vmatprep.subr.bf16.mxu1 %v7885_v35 }
  0xc1   :  { %1879 = vmatpush1.bf16.msra.mxu0 %v7880_v36  ;;  %1920 = vmatpush1.bf16.msra.mxu1 %v7883_v37 }
  0xc2   :  { %1880 = vmatprep.subr.bf16.mxu0 %v7888_v38  ;;  %1921 = vmatprep.subr.bf16.mxu1 %v7891_v39  ;;  %v7936_v39 = vld [vmem:[%s10807_s1 + $0x720] ss:$16 sps:$4 sm:$0xff]  }
  0xc5   :  { %1881 = vmatpush1.bf16.msra.mxu0 %v7886_v42  ;;  %1922 = vmatpush1.bf16.msra.mxu1 %v7889_v43  ;;  %v7944_v43 = vld [vmem:[%s10807_s1 + $0x704] ss:$16 sps:$4 sm:$0xff]  }
  0xc6   :  { %7074 = vmatprep.subr.msk.bf16.mxu0 %vm180_vm0, %v7071_v44  ;;  %7076 = vmatprep.subr.msk.bf16.mxu1 %vm180_vm0, %v7073_v45  ;;  %v7947_v44 = vld [vmem:[%s10807_s1 + $0x70c] ss:$16 sps:$4 sm:$0xff]  }
  0xc8   :  { %7017 = vmatmul.mubr.msk.bf16.vlgmr.msra.gmra.mxu0 %vm176_vm1, %v1693_v48  ;;  %7019 = vmatmul.mubr.msk.bf16.vlgmr.msra.gmra.mxu1 %vm176_vm1, %v1693_v48  ;;  %v7950_v48 = vld [vmem:[%s10807_s1 + $0x6e4] ss:$16 sps:$4 sm:$0xff]  }
  0xc9   :  { %2148 = vmatpush1.bf16.msra.mxu0 %v2134_v50  ;;  %2189 = vmatpush1.bf16.msra.mxu1 %v2140_v51  ;;  %v7948_v50 = vld [vmem:[%s10807_s1 + $0x6e0] ss:$16 sps:$4 sm:$0xff]   ;;  %v7951_v51 = vld [vmem:[%s10807_s1 + $0x6e8] ss:$16 sps:$4 sm:$0xff]  }
  0xca   :  { %2149 = vmatprep.subr.bf16.mxu0 %v7898_v49  ;;  %2190 = vmatprep.subr.bf16.mxu1 %v7901_v52  ;;  %v7953_v49 = vld [vmem:[%s10807_s1 + $0x6ec] ss:$16 sps:$4 sm:$0xff]   ;;  %v7956_v52 = vld [vmem:[%s10807_s1 + $0x6c4] ss:$16 sps:$4 sm:$0xff]  }
  0xcb   :  { %2177 = vmatprep.mubr.bf16.mxu0 %v8282_v14  ;;  %2218 = vmatprep.mubr.bf16.mxu1 %v8282_v14 }
  0xcd   :  { %2150 = vmatpush1.bf16.msra.mxu0 %v7896_v53  ;;  %2191 = vmatpush1.bf16.msra.mxu1 %v7899_v54  ;;  %v7959_v53 = vld [vmem:[%s10807_s1 + $0x6cc] ss:$16 sps:$4 sm:$0xff]   ;;  %v7954_v54 = vld [vmem:[%s10807_s1 + $0x6c0] ss:$16 sps:$4 sm:$0xff]  }
  0xce   :  { %2151 = vmatprep.subr.bf16.mxu0 %v7904_v55  ;;  %2192 = vmatprep.subr.bf16.mxu1 %v7907_v56  ;;  %v7957_v55 = vld [vmem:[%s10807_s1 + $0x6c8] ss:$16 sps:$4 sm:$0xff]   ;;  %v7962_v56 = vld [vmem:[%s10807_s1 + $0x6a4] ss:$16 sps:$4 sm:$0xff]  }
  0xd1   :  { %2152 = vmatpush1.bf16.msra.mxu0 %v7902_v57  ;;  %2193 = vmatpush1.bf16.msra.mxu1 %v7905_v58  ;;  %v7965_v57 = vld [vmem:[%s10807_s1 + $0x6ac] ss:$16 sps:$4 sm:$0xff]   ;;  %v7960_v58 = vld [vmem:[%s10807_s1 + $0x6a0] ss:$16 sps:$4 sm:$0xff]  }
  0xd2   :  { %2153 = vmatprep.subr.bf16.mxu0 %v7910_v59  ;;  %2194 = vmatprep.subr.bf16.mxu1 %v7913_v60  ;;  %v7963_v59 = vld [vmem:[%s10807_s1 + $0x6a8] ss:$16 sps:$4 sm:$0xff]   ;;  %v7968_v60 = vld [vmem:[%s10807_s1 + $0x684] ss:$16 sps:$4 sm:$0xff]  }
  0xd5   :  { %2154 = vmatpush1.bf16.msra.mxu0 %v7908_v61  ;;  %2195 = vmatpush1.bf16.msra.mxu1 %v7911_v62  ;;  %v7971_v61 = vld [vmem:[%s10807_s1 + $0x68c] ss:$16 sps:$4 sm:$0xff]   ;;  %v7160_v62 = vld [vmem:[%s10807_s1 + $0x810] sm:$0x33] }
  0xd6   :  { %2155 = vmatprep.subr.bf16.mxu0 %v7916_v63  ;;  %2196 = vmatprep.subr.bf16.mxu1 %v7919_v0  ;;  %v7966_v63 = vld [vmem:[%s10807_s1 + $0x680] ss:$16 sps:$4 sm:$0xff]   ;;  %v7969_v0 = vld [vmem:[%s10807_s1 + $0x688] ss:$16 sps:$4 sm:$0xff]  }
  0xd9   :  { %2156 = vmatpush1.bf16.msra.mxu0 %v7914_v1  ;;  %2197 = vmatpush1.bf16.msra.mxu1 %v7917_v2  ;;  %v7161_v1 = vld [vmem:[%s10807_s1 + $0x818] sm:$0x33]  ;;  %v7187_v2 = vcombine.high %v7160_v62, %v7160_v62 }
  0xda   :  { %2157 = vmatprep.subr.bf16.mxu0 %v7922_v3  ;;  %2198 = vmatprep.subr.bf16.mxu1 %v7925_v4  ;;  %v7189_v3 = vcombine.high %v7161_v1, %v7161_v1  ;;  %v7186_v4 = vcombine.low %v7160_v62, %v7160_v62 }
  0xdd   :  { %2158 = vmatpush1.bf16.msra.mxu0 %v7920_v5  ;;  %2199 = vmatpush1.bf16.msra.mxu1 %v7923_v6  ;;  %v7188_v5 = vcombine.low %v7161_v1, %v7161_v1 }
  0xde   :  { %2159 = vmatprep.subr.bf16.mxu0 %v7928_v7  ;;  %2200 = vmatprep.subr.bf16.mxu1 %v7931_v11 }
  0xe0   :  { %v227_v23 = vpop.f32.mrf.mxu0  ;;  %v268_v24 = vpop.f32.mrf.mxu1 }
  0xe1   :  { %2160 = vmatpush1.bf16.msra.mxu0 %v7926_v13  ;;  %2201 = vmatpush1.bf16.msra.mxu1 %v7929_v15 }
  0xe2   :  { %v229_v28 = vpop.f32.mrf.mxu0  ;;  %v270_v29 = vpop.f32.mrf.mxu1  ;;  %7132 = vmatprep.subr.msk.bf16.mxu0 %vm180_vm0, %v7129_v19  ;;  %7134 = vmatprep.subr.msk.bf16.mxu1 %vm180_vm0, %v7131_v20 }
  0xe3   :  { %v279_v33 = vcombine.low %v227_v23, %v229_v28  ;;  %v280_v34 = vcombine.low %v268_v24, %v270_v29 }
  0xe4   :  { %v231_v35 = vpop.f32.mrf.mxu0  ;;  %v272_v36 = vpop.f32.mrf.mxu1  ;;  %7075 = vmatmul.mubr.msk.bf16.vlgmr.msra.gmra.mxu0 %vm176_vm1, %v1972_v26  ;;  %7077 = vmatmul.mubr.msk.bf16.vlgmr.msra.gmra.mxu1 %vm176_vm1, %v1972_v26 }
  0xe5   :  { %v287_v37 = vrot.slane %v279_v33, %v9029_v25  ;;  %v9048_v38 = vrot.slane %v280_v34, %v9029_v25  ;;  %2427 = vmatpush1.bf16.msra.mxu0 %v2413_v30  ;;  %2468 = vmatpush1.bf16.msra.mxu1 %v2419_v31 }
  0xe6   :  { %v232_v41 = vpop.f32.mrf.mxu0  ;;  %v273_v42 = vpop.f32.mrf.mxu1  ;;  %2428 = vmatprep.subr.bf16.mxu0 %v7938_v27  ;;  %2469 = vmatprep.subr.bf16.mxu1 %v7941_v32 }
  0xe7   :  { %v9063_v45 = vcombine.low %v287_v37, %v9048_v38  ;;  %2456 = vmatprep.mubr.bf16.mxu0 %v8282_v14  ;;  %2497 = vmatprep.mubr.bf16.mxu1 %v8282_v14 }
  0xe9   :  { %2429 = vmatpush1.bf16.msra.mxu0 %v7936_v39  ;;  %2470 = vmatpush1.bf16.msra.mxu1 %v7939_v40 }
  0xea   :  { %2430 = vmatprep.subr.bf16.mxu0 %v7944_v43  ;;  %2471 = vmatprep.subr.bf16.mxu1 %v7947_v44 }
  0xed   :  { %2431 = vmatpush1.bf16.msra.mxu0 %v7942_v46  ;;  %2472 = vmatpush1.bf16.msra.mxu1 %v7945_v47 }
  0xee   :  { %2432 = vmatprep.subr.bf16.mxu0 %v7950_v48  ;;  %2473 = vmatprep.subr.bf16.mxu1 %v7953_v49 }
  0xf1   :  { %2433 = vmatpush1.bf16.msra.mxu0 %v7948_v50  ;;  %2474 = vmatpush1.bf16.msra.mxu1 %v7951_v51 }
  0xf2   :  { %2434 = vmatprep.subr.bf16.mxu0 %v7956_v52  ;;  %2475 = vmatprep.subr.bf16.mxu1 %v7959_v53 }
  0xf5   :  { %2435 = vmatpush1.bf16.msra.mxu0 %v7954_v54  ;;  %2476 = vmatpush1.bf16.msra.mxu1 %v7957_v55 }
  0xf6   :  { %2436 = vmatprep.subr.bf16.mxu0 %v7962_v56  ;;  %2477 = vmatprep.subr.bf16.mxu1 %v7965_v57 }
  0xf9   :  { %2437 = vmatpush1.bf16.msra.mxu0 %v7960_v58  ;;  %2478 = vmatpush1.bf16.msra.mxu1 %v7963_v59 }
  0xfa   :  { %2438 = vmatprep.subr.bf16.mxu0 %v7968_v60  ;;  %2479 = vmatprep.subr.bf16.mxu1 %v7971_v61 }
  0xfb   :  { %9 = vsyncpa [#allocation4], 0  ;;  %v7590_v8 = vcombine.low %v9048_v38, %v9048_v38  ;;  %v2251_v9 = vld [vmem:[%s10806_s0] sm:$0x1]  ;;  %v2692_v12 = vsel %vm180_vm0, %v7186_v4, 0  ;;  %v2698_v13 = vsel %vm180_vm0, %v7188_v5, 0  ;;  %v4522_v20 = vrot.slane %v9063_v45, %v9029_v25 }
  0xfc   :  { %v505_v6 = vpop.f32.mrf.mxu0  ;;  %v546_v7 = vpop.f32.mrf.mxu1  ;;  %v7978_v15 = vld [vmem:[%s10807_s1 + $0x7f4] ss:$16 sps:$4 sm:$0xff]   ;;  %v7981_v16 = vld [vmem:[%s10807_s1 + $0x7fc] ss:$16 sps:$4 sm:$0xff]   ;;  %v7976_v27 = vld [vmem:[%s10807_s1 + $0x7f0] ss:$16 sps:$4 sm:$0xff]  }
  0xfd   :  { %2439 = vmatpush1.bf16.msra.mxu0 %v7966_v63  ;;  %2480 = vmatpush1.bf16.msra.mxu1 %v7969_v0  ;;  %v4529_v23 = vrot.slane %v7590_v8, %v9029_v25  ;;  %v7979_v28 = vld [vmem:[%s10807_s1 + $0x7f8] ss:$16 sps:$4 sm:$0xff]   ;;  %v7984_v31 = vld [vmem:[%s10807_s1 + $0x7d4] ss:$16 sps:$4 sm:$0xff]   ;;  %v7987_v32 = vld [vmem:[%s10807_s1 + $0x7dc] ss:$16 sps:$4 sm:$0xff]   ;;  %v4530_v35 = vcombine.high %v4522_v20, %v4522_v20 }
  0xfe   :  { %v507_v10 = vpop.f32.mrf.mxu0  ;;  %v548_v11 = vpop.f32.mrf.mxu1  ;;  %7190 = vmatprep.subr.msk.bf16.mxu0 %vm180_vm0, %v7187_v2  ;;  %7192 = vmatprep.subr.msk.bf16.mxu1 %vm180_vm0, %v7189_v3  ;;  %v7982_v39 = vld [vmem:[%s10807_s1 + $0x7d0] ss:$16 sps:$4 sm:$0xff]   ;;  %v7985_v40 = vld [vmem:[%s10807_s1 + $0x7d8] ss:$16 sps:$4 sm:$0xff]   ;;  %v4851_v41 = vsel %vm180_vm0, %v4522_v20, 0.0 }
  0xff   :  { %v557_v17 = vcombine.low %v505_v6, %v507_v10  ;;  %v558_v19 = vcombine.low %v546_v7, %v548_v11  ;;  %v4531_v36 = vcombine.high %v4529_v23, %v4529_v23  ;;  %v4925_v42 = vsel %vm180_vm0, %v4529_v23, 0.0  ;;  %v7990_v43 = vld [vmem:[%s10807_s1 + $0x7b4] ss:$16 sps:$4 sm:$0xff]   ;;  %v7993_v44 = vld [vmem:[%s10807_s1 + $0x7bc] ss:$16 sps:$4 sm:$0xff]  }
 0x100   :  { %v509_v21 = vpop.f32.mrf.mxu0  ;;  %v550_v22 = vpop.f32.mrf.mxu1  ;;  %7133 = vmatmul.mubr.msk.bf16.vlgmr.msra.gmra.mxu0 %vm176_vm1, %v2251_v9  ;;  %7135 = vmatmul.mubr.msk.bf16.vlgmr.msra.gmra.mxu1 %vm176_vm1, %v2251_v9  ;;  %v7988_v52 = vld [vmem:[%s10807_s1 + $0x7b0] ss:$16 sps:$4 sm:$0xff]   ;;  %v4888_v53 = vsel %vm180_vm0, %v4530_v35, 0.0  ;;  %v7991_v57 = vld [vmem:[%s10807_s1 + $0x7b8] ss:$16 sps:$4 sm:$0xff]  }
 0x101   :  { %v565_v24 = vrot.slane %v557_v17, %v9029_v25  ;;  %v572_v26 = vrot.slane %v558_v19, %v9029_v25  ;;  %2706 = vmatpush1.bf16.msra.mxu0 %v2692_v12  ;;  %2747 = vmatpush1.bf16.msra.mxu1 %v2698_v13  ;;  %v4962_v54 = vsel %vm180_vm0, %v4531_v36, 0.0  ;;  %v7996_v60 = vld [vmem:[%s10807_s1 + $0x794] ss:$16 sps:$4 sm:$0xff]   ;;  %v7999_v61 = vld [vmem:[%s10807_s1 + $0x79c] ss:$16 sps:$4 sm:$0xff]  }
 0x102   :  { %v510_v29 = vpop.f32.mrf.mxu0  ;;  %v551_v30 = vpop.f32.mrf.mxu1  ;;  %2707 = vmatprep.subr.bf16.mxu0 %v7978_v15  ;;  %2748 = vmatprep.subr.bf16.mxu1 %v7981_v16  ;;  %v7994_v62 = vld [vmem:[%s10807_s1 + $0x790] ss:$16 sps:$4 sm:$0xff]   ;;  %v7997_v63 = vld [vmem:[%s10807_s1 + $0x798] ss:$16 sps:$4 sm:$0xff]   ;;  %v8002_v0 = vld [vmem:[%s10807_s1 + $0x774] ss:$16 sps:$4 sm:$0xff]  }
 0x103   :  { %v9161_v33 = vcombine.low %v565_v24, %v572_v26  ;;  %v7591_v34 = vcombine.low %v572_v26, %v572_v26  ;;  %2735 = vmatprep.mubr.bf16.mxu0 %v8282_v14  ;;  %2776 = vmatprep.mubr.bf16.mxu1 %v8282_v14  ;;  %v8005_v1 = vld [vmem:[%s10807_s1 + $0x77c] ss:$16 sps:$4 sm:$0xff]   ;;  %v8000_v2 = vld [vmem:[%s10807_s1 + $0x770] ss:$16 sps:$4 sm:$0xff]   ;;  %v8003_v3 = vld [vmem:[%s10807_s1 + $0x778] ss:$16 sps:$4 sm:$0xff]  }
 0x104   :  { %v8008_v4 = vld [vmem:[%s10807_s1 + $0x754] ss:$16 sps:$4 sm:$0xff]   ;;  %v8011_v5 = vld [vmem:[%s10807_s1 + $0x75c] ss:$16 sps:$4 sm:$0xff]   ;;  %v8006_v8 = vld [vmem:[%s10807_s1 + $0x750] ss:$16 sps:$4 sm:$0xff]  }
 0x105   :  { %v4539_v37 = vrot.slane %v9161_v33, %v9029_v25  ;;  %v4546_v38 = vrot.slane %v7591_v34, %v9029_v25  ;;  %2708 = vmatpush1.bf16.msra.mxu0 %v7976_v27  ;;  %2749 = vmatpush1.bf16.msra.mxu1 %v7979_v28  ;;  %v7218_v6 = vld [vmem:[%s10807_s1 + $0x8e0] sm:$0x33]  ;;  %v7219_v7 = vld [vmem:[%s10807_s1 + $0x8e8] sm:$0x33] }
 0x106   :  { %2709 = vmatprep.subr.bf16.mxu0 %v7984_v31  ;;  %2750 = vmatprep.subr.bf16.mxu1 %v7987_v32  ;;  %v8009_v9 = vld [vmem:[%s10807_s1 + $0x758] ss:$16 sps:$4 sm:$0xff]   ;;  %v7245_v10 = vcombine.high %v7218_v6, %v7218_v6  ;;  %v7247_v11 = vcombine.high %v7219_v7, %v7219_v7  ;;  %v7244_v12 = vcombine.low %v7218_v6, %v7218_v6  ;;  %v2530_v17 = vld [vmem:[%s10806_s0] sm:$0x1]  ;;  %v8018_v23 = vld [vmem:[%s10807_s1 + $0x8c4] ss:$16 sps:$4 sm:$0xff]  }
 0x107   :  { %v4547_v46 = vcombine.high %v4539_v37, %v4539_v37  ;;  %v4548_v47 = vcombine.high %v4546_v38, %v4546_v38  ;;  %v4852_v48 = vsel %vm180_vm0, %v4539_v37, 0.0  ;;  %v4926_v49 = vsel %vm180_vm0, %v4546_v38, 0.0  ;;  %v8021_v24 = vld [vmem:[%s10807_s1 + $0x8cc] ss:$16 sps:$4 sm:$0xff]   ;;  %v8016_v32 = vld [vmem:[%s10807_s1 + $0x8c0] ss:$16 sps:$4 sm:$0xff]  }
 0x108   :  { %v9184_v50 = vadd.f32 %v4852_v48, %v4851_v41  ;;  %v9186_v51 = vadd.f32 %v4926_v49, %v4925_v42  ;;  %v7246_v13 = vcombine.low %v7219_v7, %v7219_v7  ;;  %v2971_v21 = vsel %vm180_vm0, %v7244_v12, 0  ;;  %v8019_v34 = vld [vmem:[%s10807_s1 + $0x8c8] ss:$16 sps:$4 sm:$0xff]   ;;  %v8024_v37 = vld [vmem:[%s10807_s1 + $0x8a4] ss:$16 sps:$4 sm:$0xff]  }
 0x109   :  { %v4889_v55 = vsel %vm180_vm0, %v4547_v46, 0.0  ;;  %v4963_v56 = vsel %vm180_vm0, %v4548_v47, 0.0  ;;  %2710 = vmatpush1.bf16.msra.mxu0 %v7982_v39  ;;  %2751 = vmatpush1.bf16.msra.mxu1 %v7985_v40  ;;  %v8027_v38 = vld [vmem:[%s10807_s1 + $0x8ac] ss:$16 sps:$4 sm:$0xff]   ;;  %v8030_v46 = vld [vmem:[%s10807_s1 + $0x884] ss:$16 sps:$4 sm:$0xff]  }
 0x10a   :  { %v9198_v58 = vadd.f32 %v4889_v55, %v4888_v53  ;;  %v9200_v59 = vadd.f32 %v4963_v56, %v4962_v54  ;;  %2711 = vmatprep.subr.bf16.mxu0 %v7990_v43  ;;  %2752 = vmatprep.subr.bf16.mxu1 %v7993_v44  ;;  %v2977_v22 = vsel %vm180_vm0, %v7246_v13, 0  ;;  %v8022_v43 = vld [vmem:[%s10807_s1 + $0x8a0] ss:$16 sps:$4 sm:$0xff]   ;;  %v8025_v44 = vld [vmem:[%s10807_s1 + $0x8a8] ss:$16 sps:$4 sm:$0xff]  }
 0x10b   :  { %v8033_v47 = vld [vmem:[%s10807_s1 + $0x88c] ss:$16 sps:$4 sm:$0xff]   ;;  %v7276_v6 = vld [vmem:[%s10807_s1 + $0x9b0] sm:$0x33] }
 0x10c   :  { %v7277_v7 = vld [vmem:[%s10807_s1 + $0x9b8] sm:$0x33]  ;;  %v7302_v12 = vcombine.low %v7276_v6, %v7276_v6 }
 0x10d   :  { %2712 = vmatpush1.bf16.msra.mxu0 %v7988_v52  ;;  %2753 = vmatpush1.bf16.msra.mxu1 %v7991_v57  ;;  %v7304_v13 = vcombine.low %v7277_v7, %v7277_v7 }
 0x10e   :  { %2713 = vmatprep.subr.bf16.mxu0 %v7996_v60  ;;  %2754 = vmatprep.subr.bf16.mxu1 %v7999_v61  ;;  %v8028_v60 = vld [vmem:[%s10807_s1 + $0x880] ss:$16 sps:$4 sm:$0xff]   ;;  %v8031_v61 = vld [vmem:[%s10807_s1 + $0x888] ss:$16 sps:$4 sm:$0xff]  }
 0x111   :  { %2714 = vmatpush1.bf16.msra.mxu0 %v7994_v62  ;;  %2755 = vmatpush1.bf16.msra.mxu1 %v7997_v63  ;;  %v8036_v62 = vld [vmem:[%s10807_s1 + $0x864] ss:$16 sps:$4 sm:$0xff]   ;;  %v8039_v63 = vld [vmem:[%s10807_s1 + $0x86c] ss:$16 sps:$4 sm:$0xff]  }
 0x112   :  { %2715 = vmatprep.subr.bf16.mxu0 %v8002_v0  ;;  %2756 = vmatprep.subr.bf16.mxu1 %v8005_v1  ;;  %v8042_v0 = vld [vmem:[%s10807_s1 + $0x844] ss:$16 sps:$4 sm:$0xff]   ;;  %v8045_v1 = vld [vmem:[%s10807_s1 + $0x84c] ss:$16 sps:$4 sm:$0xff]  }
 0x115   :  { %2716 = vmatpush1.bf16.msra.mxu0 %v8000_v2  ;;  %2757 = vmatpush1.bf16.msra.mxu1 %v8003_v3  ;;  %v8040_v2 = vld [vmem:[%s10807_s1 + $0x840] ss:$16 sps:$4 sm:$0xff]   ;;  %v8043_v3 = vld [vmem:[%s10807_s1 + $0x848] ss:$16 sps:$4 sm:$0xff]  }
 0x116   :  { %2717 = vmatprep.subr.bf16.mxu0 %v8008_v4  ;;  %2758 = vmatprep.subr.bf16.mxu1 %v8011_v5  ;;  %v8048_v4 = vld [vmem:[%s10807_s1 + $0x824] ss:$16 sps:$4 sm:$0xff]   ;;  %v8051_v5 = vld [vmem:[%s10807_s1 + $0x82c] ss:$16 sps:$4 sm:$0xff]  }
 0x118   :  { %v784_v15 = vpop.f32.mrf.mxu0  ;;  %v825_v16 = vpop.f32.mrf.mxu1 }
 0x119   :  { %2718 = vmatpush1.bf16.msra.mxu0 %v8006_v8  ;;  %2759 = vmatpush1.bf16.msra.mxu1 %v8009_v9  ;;  %v8046_v8 = vld [vmem:[%s10807_s1 + $0x820] ss:$16 sps:$4 sm:$0xff]   ;;  %v8049_v9 = vld [vmem:[%s10807_s1 + $0x828] ss:$16 sps:$4 sm:$0xff]  }
 0x11a   :  { %v786_v19 = vpop.f32.mrf.mxu0  ;;  %v827_v20 = vpop.f32.mrf.mxu1  ;;  %7248 = vmatprep.subr.msk.bf16.mxu0 %vm180_vm0, %v7245_v10  ;;  %7250 = vmatprep.subr.msk.bf16.mxu1 %vm180_vm0, %v7247_v11  ;;  %v7303_v10 = vcombine.high %v7276_v6, %v7276_v6  ;;  %v7305_v11 = vcombine.high %v7277_v7, %v7277_v7  ;;  %v8091_v6 = vld [vmem:[%s10807_s1 + $0x8fc] ss:$16 sps:$4 sm:$0xff]   ;;  %v7334_v7 = vld [vmem:[%s10807_s1 + $0xa80] sm:$0x33] }
 0x11b   :  { %v836_v26 = vcombine.low %v784_v15, %v786_v19  ;;  %v837_v27 = vcombine.low %v825_v16, %v827_v20 }
 0x11c   :  { %v788_v28 = vpop.f32.mrf.mxu0  ;;  %v829_v29 = vpop.f32.mrf.mxu1  ;;  %7191 = vmatmul.mubr.msk.bf16.vlgmr.msra.gmra.mxu0 %vm176_vm1, %v2530_v17  ;;  %7193 = vmatmul.mubr.msk.bf16.vlgmr.msra.gmra.mxu1 %vm176_vm1, %v2530_v17  ;;  %v2809_v17 = vld [vmem:[%s10806_s0] sm:$0x1] }
 0x11d   :  { %v844_v30 = vrot.slane %v836_v26, %v9029_v25  ;;  %v851_v31 = vrot.slane %v837_v27, %v9029_v25  ;;  %2985 = vmatpush1.bf16.msra.mxu0 %v2971_v21  ;;  %3026 = vmatpush1.bf16.msra.mxu1 %v2977_v22  ;;  %v3250_v21 = vsel %vm180_vm0, %v7302_v12, 0  ;;  %v3256_v22 = vsel %vm180_vm0, %v7304_v13, 0 }
 0x11e   :  { %v789_v35 = vpop.f32.mrf.mxu0  ;;  %v830_v36 = vpop.f32.mrf.mxu1  ;;  %2986 = vmatprep.subr.bf16.mxu0 %v8018_v23  ;;  %3027 = vmatprep.subr.bf16.mxu1 %v8021_v24  ;;  %v8058_v23 = vld [vmem:[%s10807_s1 + $0x994] ss:$16 sps:$4 sm:$0xff]   ;;  %v8061_v24 = vld [vmem:[%s10807_s1 + $0x99c] ss:$16 sps:$4 sm:$0xff]   ;;  %v7360_v13 = vcombine.low %v7334_v7, %v7334_v7 }
 0x11f   :  { %v9273_v39 = vcombine.low %v844_v30, %v851_v31  ;;  %v7592_v40 = vcombine.low %v851_v31, %v851_v31  ;;  %3014 = vmatprep.mubr.bf16.mxu0 %v8282_v14  ;;  %3055 = vmatprep.mubr.bf16.mxu1 %v8282_v14 }
 0x121   :  { %v4556_v41 = vrot.slane %v9273_v39, %v9029_v25  ;;  %v4563_v42 = vrot.slane %v7592_v40, %v9029_v25  ;;  %2987 = vmatpush1.bf16.msra.mxu0 %v8016_v32  ;;  %3028 = vmatpush1.bf16.msra.mxu1 %v8019_v34  ;;  %v8056_v32 = vld [vmem:[%s10807_s1 + $0x990] ss:$16 sps:$4 sm:$0xff]   ;;  %v8059_v34 = vld [vmem:[%s10807_s1 + $0x998] ss:$16 sps:$4 sm:$0xff]  }
 0x122   :  { %2988 = vmatprep.subr.bf16.mxu0 %v8024_v37  ;;  %3029 = vmatprep.subr.bf16.mxu1 %v8027_v38  ;;  %v8064_v37 = vld [vmem:[%s10807_s1 + $0x974] ss:$16 sps:$4 sm:$0xff]   ;;  %v8067_v38 = vld [vmem:[%s10807_s1 + $0x97c] ss:$16 sps:$4 sm:$0xff]  }
 0x123   :  { %v4564_v48 = vcombine.high %v4556_v41, %v4556_v41  ;;  %v4565_v49 = vcombine.high %v4563_v42, %v4563_v42  ;;  %v4854_v52 = vsel %vm180_vm0, %v4556_v41, 0.0  ;;  %v4928_v53 = vsel %vm180_vm0, %v4563_v42, 0.0 }
 0x124   :  { %v9295_v54 = vadd.f32 %v4854_v52, %v9184_v50  ;;  %v9298_v55 = vadd.f32 %v4928_v53, %v9186_v51 }
 0x125   :  { %v4891_v56 = vsel %vm180_vm0, %v4564_v48, 0.0  ;;  %v4965_v57 = vsel %vm180_vm0, %v4565_v49, 0.0  ;;  %2989 = vmatpush1.bf16.msra.mxu0 %v8022_v43  ;;  %3030 = vmatpush1.bf16.msra.mxu1 %v8025_v44  ;;  %v8062_v44 = vld [vmem:[%s10807_s1 + $0x970] ss:$16 sps:$4 sm:$0xff]   ;;  %v8073_v48 = vld [vmem:[%s10807_s1 + $0x95c] ss:$16 sps:$4 sm:$0xff]  }
 0x126   :  { %v9309_v50 = vadd.f32 %v4891_v56, %v9198_v58  ;;  %v9312_v51 = vadd.f32 %v4965_v57, %v9200_v59  ;;  %2990 = vmatprep.subr.bf16.mxu0 %v8030_v46  ;;  %3031 = vmatprep.subr.bf16.mxu1 %v8033_v47  ;;  %v8034_v58 = vld [vmem:[%s10807_s1 + $0x860] ss:$16 sps:$4 sm:$0xff]   ;;  %v8037_v59 = vld [vmem:[%s10807_s1 + $0x868] ss:$16 sps:$4 sm:$0xff]   ;;  %v8070_v47 = vld [vmem:[%s10807_s1 + $0x954] ss:$16 sps:$4 sm:$0xff]  }
 0x127   :  { %v8065_v46 = vld [vmem:[%s10807_s1 + $0x978] ss:$16 sps:$4 sm:$0xff]  }
 0x129   :  { %2991 = vmatpush1.bf16.msra.mxu0 %v8028_v60  ;;  %3032 = vmatpush1.bf16.msra.mxu1 %v8031_v61 }
 0x12a   :  { %2992 = vmatprep.subr.bf16.mxu0 %v8036_v62  ;;  %3033 = vmatprep.subr.bf16.mxu1 %v8039_v63  ;;  %v8068_v63 = vld [vmem:[%s10807_s1 + $0x950] ss:$16 sps:$4 sm:$0xff]  }
 0x12d   :  { %2993 = vmatpush1.bf16.msra.mxu0 %v8034_v58  ;;  %3034 = vmatpush1.bf16.msra.mxu1 %v8037_v59  ;;  %v8071_v58 = vld [vmem:[%s10807_s1 + $0x958] ss:$16 sps:$4 sm:$0xff]   ;;  %v8076_v59 = vld [vmem:[%s10807_s1 + $0x934] ss:$16 sps:$4 sm:$0xff]  }
 0x12e   :  { %2994 = vmatprep.subr.bf16.mxu0 %v8042_v0  ;;  %3035 = vmatprep.subr.bf16.mxu1 %v8045_v1  ;;  %v8079_v0 = vld [vmem:[%s10807_s1 + $0x93c] ss:$16 sps:$4 sm:$0xff]   ;;  %v8082_v1 = vld [vmem:[%s10807_s1 + $0x914] ss:$16 sps:$4 sm:$0xff]  }
 0x131   :  { %2995 = vmatpush1.bf16.msra.mxu0 %v8040_v2  ;;  %3036 = vmatpush1.bf16.msra.mxu1 %v8043_v3  ;;  %v8085_v2 = vld [vmem:[%s10807_s1 + $0x91c] ss:$16 sps:$4 sm:$0xff]   ;;  %v8080_v3 = vld [vmem:[%s10807_s1 + $0x910] ss:$16 sps:$4 sm:$0xff]  }
 0x132   :  { %2996 = vmatprep.subr.bf16.mxu0 %v8048_v4  ;;  %3037 = vmatprep.subr.bf16.mxu1 %v8051_v5  ;;  %v8083_v4 = vld [vmem:[%s10807_s1 + $0x918] ss:$16 sps:$4 sm:$0xff]   ;;  %v8088_v5 = vld [vmem:[%s10807_s1 + $0x8f4] ss:$16 sps:$4 sm:$0xff]  }
 0x134   :  { %v1063_v15 = vpop.f32.mrf.mxu0  ;;  %v1104_v16 = vpop.f32.mrf.mxu1 }
 0x135   :  { %2997 = vmatpush1.bf16.msra.mxu0 %v8046_v8  ;;  %3038 = vmatpush1.bf16.msra.mxu1 %v8049_v9  ;;  %v7335_v8 = vld [vmem:[%s10807_s1 + $0xa88] sm:$0x33]  ;;  %v8086_v9 = vld [vmem:[%s10807_s1 + $0x8f0] ss:$16 sps:$4 sm:$0xff]  }
 0x136   :  { %v1065_v19 = vpop.f32.mrf.mxu0  ;;  %v1106_v20 = vpop.f32.mrf.mxu1  ;;  %7306 = vmatprep.subr.msk.bf16.mxu0 %vm180_vm0, %v7303_v10  ;;  %7308 = vmatprep.subr.msk.bf16.mxu1 %vm180_vm0, %v7305_v11  ;;  %v8089_v10 = vld [vmem:[%s10807_s1 + $0x8f8] ss:$16 sps:$4 sm:$0xff]   ;;  %v7361_v11 = vcombine.high %v7334_v7, %v7334_v7  ;;  %v7363_v12 = vcombine.high %v7335_v8, %v7335_v8  ;;  %v8128_v7 = vld [vmem:[%s10807_s1 + $0x9c4] ss:$16 sps:$4 sm:$0xff]  }
 0x137   :  { %v1115_v26 = vcombine.low %v1063_v15, %v1065_v19  ;;  %v1116_v27 = vcombine.low %v1104_v16, %v1106_v20  ;;  %v7362_v15 = vcombine.low %v7335_v8, %v7335_v8  ;;  %v3088_v19 = vld [vmem:[%s10806_s0] sm:$0x1]  ;;  %v8131_v8 = vld [vmem:[%s10807_s1 + $0x9cc] ss:$16 sps:$4 sm:$0xff]  }
 0x138   :  { %v1067_v28 = vpop.f32.mrf.mxu0  ;;  %v1108_v29 = vpop.f32.mrf.mxu1  ;;  %7249 = vmatmul.mubr.msk.bf16.vlgmr.msra.gmra.mxu0 %vm176_vm1, %v2809_v17  ;;  %7251 = vmatmul.mubr.msk.bf16.vlgmr.msra.gmra.mxu1 %vm176_vm1, %v2809_v17 }
 0x139   :  { %v1123_v30 = vrot.slane %v1115_v26, %v9029_v25  ;;  %v1130_v31 = vrot.slane %v1116_v27, %v9029_v25  ;;  %3264 = vmatpush1.bf16.msra.mxu0 %v3250_v21  ;;  %3305 = vmatpush1.bf16.msra.mxu1 %v3256_v22  ;;  %v3529_v22 = vsel %vm180_vm0, %v7360_v13, 0  ;;  %v8101_v26 = vld [vmem:[%s10807_s1 + $0xa6c] ss:$16 sps:$4 sm:$0xff]  }
 0x13a   :  { %v1068_v35 = vpop.f32.mrf.mxu0  ;;  %v1109_v36 = vpop.f32.mrf.mxu1  ;;  %3265 = vmatprep.subr.bf16.mxu0 %v8058_v23  ;;  %3306 = vmatprep.subr.bf16.mxu1 %v8061_v24  ;;  %v3535_v23 = vsel %vm180_vm0, %v7362_v15, 0  ;;  %v8098_v24 = vld [vmem:[%s10807_s1 + $0xa64] ss:$16 sps:$4 sm:$0xff]  }
 0x13b   :  { %v9385_v40 = vcombine.low %v1123_v30, %v1130_v31  ;;  %v7593_v41 = vcombine.low %v1130_v31, %v1130_v31  ;;  %3293 = vmatprep.mubr.bf16.mxu0 %v8282_v14  ;;  %3334 = vmatprep.mubr.bf16.mxu1 %v8282_v14  ;;  %v8099_v35 = vld [vmem:[%s10807_s1 + $0xa68] ss:$16 sps:$4 sm:$0xff]  }
 0x13d   :  { %v4573_v42 = vrot.slane %v9385_v40, %v9029_v25  ;;  %v4580_v43 = vrot.slane %v7593_v41, %v9029_v25  ;;  %3266 = vmatpush1.bf16.msra.mxu0 %v8056_v32  ;;  %3307 = vmatpush1.bf16.msra.mxu1 %v8059_v34  ;;  %v8096_v34 = vld [vmem:[%s10807_s1 + $0xa60] ss:$16 sps:$4 sm:$0xff]   ;;  %v8107_v41 = vld [vmem:[%s10807_s1 + $0xa4c] ss:$16 sps:$4 sm:$0xff]  }
 0x13e   :  { %3267 = vmatprep.subr.bf16.mxu0 %v8064_v37  ;;  %3308 = vmatprep.subr.bf16.mxu1 %v8067_v38  ;;  %v8104_v38 = vld [vmem:[%s10807_s1 + $0xa44] ss:$16 sps:$4 sm:$0xff]  }
 0x13f   :  { %v4581_v49 = vcombine.high %v4573_v42, %v4573_v42  ;;  %v4582_v52 = vcombine.high %v4580_v43, %v4580_v43  ;;  %v4856_v53 = vsel %vm180_vm0, %v4573_v42, 0.0  ;;  %v4930_v56 = vsel %vm180_vm0, %v4580_v43, 0.0 }
 0x140   :  { %v9407_v57 = vadd.f32 %v4856_v53, %v9295_v54  ;;  %v9410_v60 = vadd.f32 %v4930_v56, %v9298_v55 }
 0x141   :  { %v4893_v61 = vsel %vm180_vm0, %v4581_v49, 0.0  ;;  %v4967_v62 = vsel %vm180_vm0, %v4582_v52, 0.0  ;;  %3268 = vmatpush1.bf16.msra.mxu0 %v8062_v44  ;;  %3309 = vmatpush1.bf16.msra.mxu1 %v8065_v46  ;;  %v8110_v49 = vld [vmem:[%s10807_s1 + $0xa24] ss:$16 sps:$4 sm:$0xff]   ;;  %v8113_v52 = vld [vmem:[%s10807_s1 + $0xa2c] ss:$16 sps:$4 sm:$0xff]  }
 0x142   :  { %v9421_v54 = vadd.f32 %v4893_v61, %v9309_v50  ;;  %v9424_v55 = vadd.f32 %v4967_v62, %v9312_v51  ;;  %3269 = vmatprep.subr.bf16.mxu0 %v8070_v47  ;;  %3310 = vmatprep.subr.bf16.mxu1 %v8073_v48  ;;  %v8074_v50 = vld [vmem:[%s10807_s1 + $0x930] ss:$16 sps:$4 sm:$0xff]   ;;  %v8077_v51 = vld [vmem:[%s10807_s1 + $0x938] ss:$16 sps:$4 sm:$0xff]  }
 0x143   :  { %v8102_v47 = vld [vmem:[%s10807_s1 + $0xa40] ss:$16 sps:$4 sm:$0xff]   ;;  %v8105_v48 = vld [vmem:[%s10807_s1 + $0xa48] ss:$16 sps:$4 sm:$0xff]  }
 0x145   :  { %3270 = vmatpush1.bf16.msra.mxu0 %v8068_v63  ;;  %3311 = vmatpush1.bf16.msra.mxu1 %v8071_v58 }
 0x146   :  { %3271 = vmatprep.subr.bf16.mxu0 %v8076_v59  ;;  %3312 = vmatprep.subr.bf16.mxu1 %v8079_v0 }
 0x149   :  { %3272 = vmatpush1.bf16.msra.mxu0 %v8074_v50  ;;  %3313 = vmatpush1.bf16.msra.mxu1 %v8077_v51  ;;  %v8108_v50 = vld [vmem:[%s10807_s1 + $0xa20] ss:$16 sps:$4 sm:$0xff]   ;;  %v8111_v51 = vld [vmem:[%s10807_s1 + $0xa28] ss:$16 sps:$4 sm:$0xff]  }
 0x14a   :  { %3273 = vmatprep.subr.bf16.mxu0 %v8082_v1  ;;  %3314 = vmatprep.subr.bf16.mxu1 %v8085_v2  ;;  %v8116_v1 = vld [vmem:[%s10807_s1 + $0xa04] ss:$16 sps:$4 sm:$0xff]   ;;  %v8119_v2 = vld [vmem:[%s10807_s1 + $0xa0c] ss:$16 sps:$4 sm:$0xff]  }
 0x14d   :  { %3274 = vmatpush1.bf16.msra.mxu0 %v8080_v3  ;;  %3315 = vmatpush1.bf16.msra.mxu1 %v8083_v4  ;;  %v8122_v3 = vld [vmem:[%s10807_s1 + $0x9e4] ss:$16 sps:$4 sm:$0xff]   ;;  %v8125_v4 = vld [vmem:[%s10807_s1 + $0x9ec] ss:$16 sps:$4 sm:$0xff]  }
 0x14e   :  { %3275 = vmatprep.subr.bf16.mxu0 %v8088_v5  ;;  %3316 = vmatprep.subr.bf16.mxu1 %v8091_v6  ;;  %v8120_v5 = vld [vmem:[%s10807_s1 + $0x9e0] ss:$16 sps:$4 sm:$0xff]   ;;  %v8123_v6 = vld [vmem:[%s10807_s1 + $0x9e8] ss:$16 sps:$4 sm:$0xff]  }
 0x150   :  { %v1342_v16 = vpop.f32.mrf.mxu0  ;;  %v1383_v17 = vpop.f32.mrf.mxu1 }
 0x151   :  { %3276 = vmatpush1.bf16.msra.mxu0 %v8086_v9  ;;  %3317 = vmatpush1.bf16.msra.mxu1 %v8089_v10  ;;  %v7392_v9 = vld [vmem:[%s10807_s1 + $0xb50] sm:$0x33]  ;;  %v7393_v10 = vld [vmem:[%s10807_s1 + $0xb58] sm:$0x33] }
 0x152   :  { %v1344_v20 = vpop.f32.mrf.mxu0  ;;  %v1385_v21 = vpop.f32.mrf.mxu1  ;;  %7364 = vmatprep.subr.msk.bf16.mxu0 %vm180_vm0, %v7361_v11  ;;  %7366 = vmatprep.subr.msk.bf16.mxu1 %vm180_vm0, %v7363_v12  ;;  %v8126_v11 = vld [vmem:[%s10807_s1 + $0x9c0] ss:$16 sps:$4 sm:$0xff]   ;;  %v8129_v12 = vld [vmem:[%s10807_s1 + $0x9c8] ss:$16 sps:$4 sm:$0xff]   ;;  %v7419_v13 = vcombine.high %v7392_v9, %v7392_v9  ;;  %v7421_v15 = vcombine.high %v7393_v10, %v7393_v10 }
 0x153   :  { %v1394_v27 = vcombine.low %v1342_v16, %v1344_v20  ;;  %v1395_v28 = vcombine.low %v1383_v17, %v1385_v21  ;;  %v7418_v16 = vcombine.low %v7392_v9, %v7392_v9  ;;  %v7420_v17 = vcombine.low %v7393_v10, %v7393_v10  ;;  %v3367_v21 = vld [vmem:[%s10806_s0] sm:$0x1]  ;;  %v8163_v9 = vld [vmem:[%s10807_s1 + $0xab8] ss:$16 sps:$4 sm:$0xff]   ;;  %v8168_v10 = vld [vmem:[%s10807_s1 + $0xa94] ss:$16 sps:$4 sm:$0xff]  }
 0x154   :  { %v1346_v29 = vpop.f32.mrf.mxu0  ;;  %v1387_v30 = vpop.f32.mrf.mxu1  ;;  %7307 = vmatmul.mubr.msk.bf16.vlgmr.msra.gmra.mxu0 %vm176_vm1, %v3088_v19  ;;  %7309 = vmatmul.mubr.msk.bf16.vlgmr.msra.gmra.mxu1 %vm176_vm1, %v3088_v19 }
 0x155   :  { %v1402_v31 = vrot.slane %v1394_v27, %v9029_v25  ;;  %v1409_v32 = vrot.slane %v1395_v28, %v9029_v25  ;;  %3543 = vmatpush1.bf16.msra.mxu0 %v3529_v22  ;;  %3584 = vmatpush1.bf16.msra.mxu1 %v3535_v23  ;;  %v8138_v27 = vld [vmem:[%s10807_s1 + $0xb34] ss:$16 sps:$4 sm:$0xff]   ;;  %v8141_v28 = vld [vmem:[%s10807_s1 + $0xb3c] ss:$16 sps:$4 sm:$0xff]  }
 0x156   :  { %v1347_v36 = vpop.f32.mrf.mxu0  ;;  %v1388_v37 = vpop.f32.mrf.mxu1  ;;  %3544 = vmatprep.subr.bf16.mxu0 %v8098_v24  ;;  %3585 = vmatprep.subr.bf16.mxu1 %v8101_v26  ;;  %v3808_v24 = vsel %vm180_vm0, %v7418_v16, 0  ;;  %v3814_v26 = vsel %vm180_vm0, %v7420_v17, 0  ;;  %v8169_v16 = vld [vmem:[%s10807_s1 + $0xa98] ss:$16 sps:$4 sm:$0xff]  }
 0x157   :  { %v9497_v42 = vcombine.low %v1402_v31, %v1409_v32  ;;  %v7594_v43 = vcombine.low %v1409_v32, %v1409_v32  ;;  %3572 = vmatprep.mubr.bf16.mxu0 %v8282_v14  ;;  %3613 = vmatprep.mubr.bf16.mxu1 %v8282_v14  ;;  %v8136_v36 = vld [vmem:[%s10807_s1 + $0xb30] ss:$16 sps:$4 sm:$0xff]   ;;  %v8139_v37 = vld [vmem:[%s10807_s1 + $0xb38] ss:$16 sps:$4 sm:$0xff]  }
 0x159   :  { %v4590_v44 = vrot.slane %v9497_v42, %v9029_v25  ;;  %v4597_v46 = vrot.slane %v7594_v43, %v9029_v25  ;;  %3545 = vmatpush1.bf16.msra.mxu0 %v8096_v34  ;;  %3586 = vmatpush1.bf16.msra.mxu1 %v8099_v35  ;;  %v8144_v43 = vld [vmem:[%s10807_s1 + $0xb14] ss:$16 sps:$4 sm:$0xff]  }
 0x15a   :  { %3546 = vmatprep.subr.bf16.mxu0 %v8104_v38  ;;  %3587 = vmatprep.subr.bf16.mxu1 %v8107_v41 }
 0x15b   :  { %v4598_v53 = vcombine.high %v4590_v44, %v4590_v44  ;;  %v4599_v56 = vcombine.high %v4597_v46, %v4597_v46  ;;  %v4858_v61 = vsel %vm180_vm0, %v4590_v44, 0.0  ;;  %v4932_v62 = vsel %vm180_vm0, %v4597_v46, 0.0  ;;  %v8147_v44 = vld [vmem:[%s10807_s1 + $0xb1c] ss:$16 sps:$4 sm:$0xff]  }
 0x15c   :  { %v9519_v63 = vadd.f32 %v4858_v61, %v9407_v57  ;;  %v9522_v58 = vadd.f32 %v4932_v62, %v9410_v60  ;;  %v8153_v61 = vld [vmem:[%s10807_s1 + $0xafc] ss:$16 sps:$4 sm:$0xff]  }
 0x15d   :  { %v4895_v59 = vsel %vm180_vm0, %v4598_v53, 0.0  ;;  %v4969_v0 = vsel %vm180_vm0, %v4599_v56, 0.0  ;;  %3547 = vmatpush1.bf16.msra.mxu0 %v8102_v47  ;;  %3588 = vmatpush1.bf16.msra.mxu1 %v8105_v48  ;;  %v8145_v53 = vld [vmem:[%s10807_s1 + $0xb18] ss:$16 sps:$4 sm:$0xff]   ;;  %v8150_v56 = vld [vmem:[%s10807_s1 + $0xaf4] ss:$16 sps:$4 sm:$0xff]  }
 0x15e   :  { %v9533_v57 = vadd.f32 %v4895_v59, %v9421_v54  ;;  %v9536_v60 = vadd.f32 %v4969_v0, %v9424_v55  ;;  %3548 = vmatprep.subr.bf16.mxu0 %v8110_v49  ;;  %3589 = vmatprep.subr.bf16.mxu1 %v8113_v52  ;;  %v8114_v54 = vld [vmem:[%s10807_s1 + $0xa00] ss:$16 sps:$4 sm:$0xff]   ;;  %v8117_v55 = vld [vmem:[%s10807_s1 + $0xa08] ss:$16 sps:$4 sm:$0xff]  }
 0x15f   :  { %v8142_v52 = vld [vmem:[%s10807_s1 + $0xb10] ss:$16 sps:$4 sm:$0xff]  }
 0x161   :  { %3549 = vmatpush1.bf16.msra.mxu0 %v8108_v50  ;;  %3590 = vmatpush1.bf16.msra.mxu1 %v8111_v51 }
 0x162   :  { %3550 = vmatprep.subr.bf16.mxu0 %v8116_v1  ;;  %3591 = vmatprep.subr.bf16.mxu1 %v8119_v2 }
 0x165   :  { %3551 = vmatpush1.bf16.msra.mxu0 %v8114_v54  ;;  %3592 = vmatpush1.bf16.msra.mxu1 %v8117_v55  ;;  %v8148_v55 = vld [vmem:[%s10807_s1 + $0xaf0] ss:$16 sps:$4 sm:$0xff]  }
 0x166   :  { %3552 = vmatprep.subr.bf16.mxu0 %v8122_v3  ;;  %3593 = vmatprep.subr.bf16.mxu1 %v8125_v4  ;;  %v8151_v3 = vld [vmem:[%s10807_s1 + $0xaf8] ss:$16 sps:$4 sm:$0xff]   ;;  %v8156_v4 = vld [vmem:[%s10807_s1 + $0xad4] ss:$16 sps:$4 sm:$0xff]  }
 0x169   :  { %3553 = vmatpush1.bf16.msra.mxu0 %v8120_v5  ;;  %3594 = vmatpush1.bf16.msra.mxu1 %v8123_v6  ;;  %v8159_v5 = vld [vmem:[%s10807_s1 + $0xadc] ss:$16 sps:$4 sm:$0xff]   ;;  %v8162_v6 = vld [vmem:[%s10807_s1 + $0xab4] ss:$16 sps:$4 sm:$0xff]  }
 0x16a   :  { %3554 = vmatprep.subr.bf16.mxu0 %v8128_v7  ;;  %3595 = vmatprep.subr.bf16.mxu1 %v8131_v8  ;;  %v8165_v7 = vld [vmem:[%s10807_s1 + $0xabc] ss:$16 sps:$4 sm:$0xff]   ;;  %v8160_v8 = vld [vmem:[%s10807_s1 + $0xab0] ss:$16 sps:$4 sm:$0xff]  }
 0x16c   :  { %v1621_v19 = vpop.f32.mrf.mxu0  ;;  %v1662_v20 = vpop.f32.mrf.mxu1 }
 0x16d   :  { %3555 = vmatpush1.bf16.msra.mxu0 %v8126_v11  ;;  %3596 = vmatpush1.bf16.msra.mxu1 %v8129_v12  ;;  %v8171_v11 = vld [vmem:[%s10807_s1 + $0xa9c] ss:$16 sps:$4 sm:$0xff]   ;;  %v7450_v12 = vld [vmem:[%s10807_s1 + $0xc20] sm:$0x33] }
 0x16e   :  { %v1623_v22 = vpop.f32.mrf.mxu0  ;;  %v1664_v23 = vpop.f32.mrf.mxu1  ;;  %7422 = vmatprep.subr.msk.bf16.mxu0 %vm180_vm0, %v7419_v13  ;;  %7424 = vmatprep.subr.msk.bf16.mxu1 %vm180_vm0, %v7421_v15  ;;  %v7451_v13 = vld [vmem:[%s10807_s1 + $0xc28] sm:$0x33]  ;;  %v8166_v15 = vld [vmem:[%s10807_s1 + $0xa90] ss:$16 sps:$4 sm:$0xff]   ;;  %v7477_v17 = vcombine.high %v7450_v12, %v7450_v12 }
 0x16f   :  { %v1673_v29 = vcombine.low %v1621_v19, %v1623_v22  ;;  %v1674_v30 = vcombine.low %v1662_v20, %v1664_v23  ;;  %v7479_v19 = vcombine.high %v7451_v13, %v7451_v13  ;;  %v7476_v20 = vcombine.low %v7450_v12, %v7450_v12  ;;  %v8200_v12 = vld [vmem:[%s10807_s1 + $0xb80] ss:$16 sps:$4 sm:$0xff]  }
 0x170   :  { %v1625_v31 = vpop.f32.mrf.mxu0  ;;  %v1666_v32 = vpop.f32.mrf.mxu1  ;;  %7365 = vmatmul.mubr.msk.bf16.vlgmr.msra.gmra.mxu0 %vm176_vm1, %v3367_v21  ;;  %7367 = vmatmul.mubr.msk.bf16.vlgmr.msra.gmra.mxu1 %vm176_vm1, %v3367_v21  ;;  %v7478_v21 = vcombine.low %v7451_v13, %v7451_v13  ;;  %v8203_v13 = vld [vmem:[%s10807_s1 + $0xb88] ss:$16 sps:$4 sm:$0xff]  }
 0x171   :  { %v1681_v34 = vrot.slane %v1673_v29, %v9029_v25  ;;  %v1688_v35 = vrot.slane %v1674_v30, %v9029_v25  ;;  %3822 = vmatpush1.bf16.msra.mxu0 %v3808_v24  ;;  %3863 = vmatpush1.bf16.msra.mxu1 %v3814_v26  ;;  %v3646_v24 = vld [vmem:[%s10806_s0] sm:$0x1]  ;;  %v8178_v30 = vld [vmem:[%s10807_s1 + $0xc04] ss:$16 sps:$4 sm:$0xff]   ;;  %v8181_v31 = vld [vmem:[%s10807_s1 + $0xc0c] ss:$16 sps:$4 sm:$0xff]  }
 0x172   :  { %v1626_v38 = vpop.f32.mrf.mxu0  ;;  %v1667_v41 = vpop.f32.mrf.mxu1  ;;  %3823 = vmatprep.subr.bf16.mxu0 %v8138_v27  ;;  %3864 = vmatprep.subr.bf16.mxu1 %v8141_v28  ;;  %v4087_v28 = vsel %vm180_vm0, %v7476_v20, 0  ;;  %v4093_v29 = vsel %vm180_vm0, %v7478_v21, 0  ;;  %v8206_v20 = vld [vmem:[%s10807_s1 + $0xb60] ss:$16 sps:$4 sm:$0xff]   ;;  %v8209_v21 = vld [vmem:[%s10807_s1 + $0xb68] ss:$16 sps:$4 sm:$0xff]  }
 0x173   :  { %v9609_v46 = vcombine.low %v1681_v34, %v1688_v35  ;;  %v7595_v47 = vcombine.low %v1688_v35, %v1688_v35  ;;  %3851 = vmatprep.mubr.bf16.mxu0 %v8282_v14  ;;  %3892 = vmatprep.mubr.bf16.mxu1 %v8282_v14  ;;  %v8176_v41 = vld [vmem:[%s10807_s1 + $0xc00] ss:$16 sps:$4 sm:$0xff]  }
 0x175   :  { %v4607_v48 = vrot.slane %v9609_v46, %v9029_v25  ;;  %v4614_v49 = vrot.slane %v7595_v47, %v9029_v25  ;;  %3824 = vmatpush1.bf16.msra.mxu0 %v8136_v36  ;;  %3865 = vmatpush1.bf16.msra.mxu1 %v8139_v37 }
 0x176   :  { %3825 = vmatprep.subr.bf16.mxu0 %v8144_v43  ;;  %3866 = vmatprep.subr.bf16.mxu1 %v8147_v44  ;;  %v8179_v43 = vld [vmem:[%s10807_s1 + $0xc08] ss:$16 sps:$4 sm:$0xff]  }
 0x177   :  { %v4615_v62 = vcombine.high %v4607_v48, %v4607_v48  ;;  %v4616_v59 = vcombine.high %v4614_v49, %v4614_v49  ;;  %v4860_v0 = vsel %vm180_vm0, %v4607_v48, 0.0  ;;  %v4934_v50 = vsel %vm180_vm0, %v4614_v49, 0.0  ;;  %v8184_v48 = vld [vmem:[%s10807_s1 + $0xbe4] ss:$16 sps:$4 sm:$0xff]   ;;  %v8187_v49 = vld [vmem:[%s10807_s1 + $0xbec] ss:$16 sps:$4 sm:$0xff]  }
 0x178   :  { %v9631_v51 = vadd.f32 %v4860_v0, %v9519_v63  ;;  %v9634_v1 = vadd.f32 %v4934_v50, %v9522_v58  ;;  %v8190_v0 = vld [vmem:[%s10807_s1 + $0xbc4] ss:$16 sps:$4 sm:$0xff]   ;;  %v8193_v50 = vld [vmem:[%s10807_s1 + $0xbcc] ss:$16 sps:$4 sm:$0xff]  }
 0x179   :  { %v4897_v2 = vsel %vm180_vm0, %v4615_v62, 0.0  ;;  %v4971_v54 = vsel %vm180_vm0, %v4616_v59, 0.0  ;;  %3826 = vmatpush1.bf16.msra.mxu0 %v8142_v52  ;;  %3867 = vmatpush1.bf16.msra.mxu1 %v8145_v53  ;;  %v8182_v62 = vld [vmem:[%s10807_s1 + $0xbe0] ss:$16 sps:$4 sm:$0xff]   ;;  %v8185_v59 = vld [vmem:[%s10807_s1 + $0xbe8] ss:$16 sps:$4 sm:$0xff]  }
 0x17a   :  { %v9645_v63 = vadd.f32 %v4897_v2, %v9533_v57  ;;  %v9648_v58 = vadd.f32 %v4971_v54, %v9536_v60  ;;  %3827 = vmatprep.subr.bf16.mxu0 %v8150_v56  ;;  %3868 = vmatprep.subr.bf16.mxu1 %v8153_v61  ;;  %v8154_v57 = vld [vmem:[%s10807_s1 + $0xad0] ss:$16 sps:$4 sm:$0xff]   ;;  %v8157_v60 = vld [vmem:[%s10807_s1 + $0xad8] ss:$16 sps:$4 sm:$0xff]  }
 0x17d   :  { %3828 = vmatpush1.bf16.msra.mxu0 %v8148_v55  ;;  %3869 = vmatpush1.bf16.msra.mxu1 %v8151_v3 }
 0x17e   :  { %3829 = vmatprep.subr.bf16.mxu0 %v8156_v4  ;;  %3870 = vmatprep.subr.bf16.mxu1 %v8159_v5 }
 0x181   :  { %3830 = vmatpush1.bf16.msra.mxu0 %v8154_v57  ;;  %3871 = vmatpush1.bf16.msra.mxu1 %v8157_v60 }
 0x182   :  { %3831 = vmatprep.subr.bf16.mxu0 %v8162_v6  ;;  %3872 = vmatprep.subr.bf16.mxu1 %v8165_v7  ;;  %v8188_v6 = vld [vmem:[%s10807_s1 + $0xbc0] ss:$16 sps:$4 sm:$0xff]   ;;  %v8191_v7 = vld [vmem:[%s10807_s1 + $0xbc8] ss:$16 sps:$4 sm:$0xff]  }
 0x185   :  { %3832 = vmatpush1.bf16.msra.mxu0 %v8160_v8  ;;  %3873 = vmatpush1.bf16.msra.mxu1 %v8163_v9  ;;  %v8196_v8 = vld [vmem:[%s10807_s1 + $0xba4] ss:$16 sps:$4 sm:$0xff]   ;;  %v8199_v9 = vld [vmem:[%s10807_s1 + $0xbac] ss:$16 sps:$4 sm:$0xff]  }
 0x186   :  { %3833 = vmatprep.subr.bf16.mxu0 %v8168_v10  ;;  %3874 = vmatprep.subr.bf16.mxu1 %v8171_v11  ;;  %v8202_v10 = vld [vmem:[%s10807_s1 + $0xb84] ss:$16 sps:$4 sm:$0xff]   ;;  %v8205_v11 = vld [vmem:[%s10807_s1 + $0xb8c] ss:$16 sps:$4 sm:$0xff]  }
 0x188   :  { %v1900_v22 = vpop.f32.mrf.mxu0  ;;  %v1941_v23 = vpop.f32.mrf.mxu1 }
 0x189   :  { %3834 = vmatpush1.bf16.msra.mxu0 %v8166_v15  ;;  %3875 = vmatpush1.bf16.msra.mxu1 %v8169_v16  ;;  %v8208_v15 = vld [vmem:[%s10807_s1 + $0xb64] ss:$16 sps:$4 sm:$0xff]   ;;  %v8211_v16 = vld [vmem:[%s10807_s1 + $0xb6c] ss:$16 sps:$4 sm:$0xff]  }
 0x18a   :  { %v1902_v26 = vpop.f32.mrf.mxu0  ;;  %v1943_v27 = vpop.f32.mrf.mxu1  ;;  %7480 = vmatprep.subr.msk.bf16.mxu0 %vm180_vm0, %v7477_v17  ;;  %7482 = vmatprep.subr.msk.bf16.mxu1 %vm180_vm0, %v7479_v19  ;;  %v7508_v17 = vld [vmem:[%s10807_s1 + $0xcf0] sm:$0x33]  ;;  %v7509_v19 = vld [vmem:[%s10807_s1 + $0xcf8] sm:$0x33] }
 0x18b   :  { %v1952_v32 = vcombine.low %v1900_v22, %v1902_v26  ;;  %v1953_v34 = vcombine.low %v1941_v23, %v1943_v27  ;;  %v7535_v22 = vcombine.high %v7508_v17, %v7508_v17  ;;  %v7537_v23 = vcombine.high %v7509_v19, %v7509_v19 }
 0x18c   :  { %v1904_v35 = vpop.f32.mrf.mxu0  ;;  %v1945_v36 = vpop.f32.mrf.mxu1  ;;  %7423 = vmatmul.mubr.msk.bf16.vlgmr.msra.gmra.mxu0 %vm176_vm1, %v3646_v24  ;;  %7425 = vmatmul.mubr.msk.bf16.vlgmr.msra.gmra.mxu1 %vm176_vm1, %v3646_v24  ;;  %v7534_v24 = vcombine.low %v7508_v17, %v7508_v17  ;;  %v7536_v26 = vcombine.low %v7509_v19, %v7509_v19  ;;  %v8240_v17 = vld [vmem:[%s10807_s1 + $0xc50] ss:$16 sps:$4 sm:$0xff]   ;;  %v8243_v19 = vld [vmem:[%s10807_s1 + $0xc58] ss:$16 sps:$4 sm:$0xff]  }
 0x18d   :  { %v1960_v37 = vrot.slane %v1952_v32, %v9029_v25  ;;  %v1967_v38 = vrot.slane %v1953_v34, %v9029_v25  ;;  %4101 = vmatpush1.bf16.msra.mxu0 %v4087_v28  ;;  %4142 = vmatpush1.bf16.msra.mxu1 %v4093_v29  ;;  %v3925_v29 = vld [vmem:[%s10806_s0] sm:$0x1]  ;;  %v8218_v35 = vld [vmem:[%s10807_s1 + $0xcd4] ss:$16 sps:$4 sm:$0xff]   ;;  %v8221_v36 = vld [vmem:[%s10807_s1 + $0xcdc] ss:$16 sps:$4 sm:$0xff]  }
 0x18e   :  { %v1905_v44 = vpop.f32.mrf.mxu0  ;;  %v1946_v47 = vpop.f32.mrf.mxu1  ;;  %4102 = vmatprep.subr.bf16.mxu0 %v8178_v30  ;;  %4143 = vmatprep.subr.bf16.mxu1 %v8181_v31  ;;  %v4366_v32 = vsel %vm180_vm0, %v7534_v24, 0  ;;  %v4372_v34 = vsel %vm180_vm0, %v7536_v26, 0 }
 0x18f   :  { %v9721_v52 = vcombine.low %v1960_v37, %v1967_v38  ;;  %v7596_v53 = vcombine.low %v1967_v38, %v1967_v38  ;;  %4130 = vmatprep.mubr.bf16.mxu0 %v8282_v14  ;;  %4171 = vmatprep.mubr.bf16.mxu1 %v8282_v14 }
 0x191   :  { %v4624_v56 = vrot.slane %v9721_v52, %v9029_v25  ;;  %v4631_v61 = vrot.slane %v7596_v53, %v9029_v25  ;;  %4103 = vmatpush1.bf16.msra.mxu0 %v8176_v41  ;;  %4144 = vmatpush1.bf16.msra.mxu1 %v8179_v43 }
 0x192   :  { %4104 = vmatprep.subr.bf16.mxu0 %v8184_v48  ;;  %4145 = vmatprep.subr.bf16.mxu1 %v8187_v49  ;;  %v8216_v48 = vld [vmem:[%s10807_s1 + $0xcd0] ss:$16 sps:$4 sm:$0xff]   ;;  %v8219_v49 = vld [vmem:[%s10807_s1 + $0xcd8] ss:$16 sps:$4 sm:$0xff]  }
 0x193   :  { %v4632_v2 = vcombine.high %v4624_v56, %v4624_v56  ;;  %v4633_v54 = vcombine.high %v4631_v61, %v4631_v61  ;;  %v4862_v55 = vsel %vm180_vm0, %v4624_v56, 0.0  ;;  %v4936_v3 = vsel %vm180_vm0, %v4631_v61, 0.0  ;;  %v8224_v61 = vld [vmem:[%s10807_s1 + $0xcb4] ss:$16 sps:$4 sm:$0xff]  }
 0x194   :  { %v9743_v4 = vadd.f32 %v4862_v55, %v9631_v51  ;;  %v9746_v5 = vadd.f32 %v4936_v3, %v9634_v1  ;;  %v8225_v55 = vld [vmem:[%s10807_s1 + $0xcb8] ss:$16 sps:$4 sm:$0xff]   ;;  %v8233_v3 = vld [vmem:[%s10807_s1 + $0xc9c] ss:$16 sps:$4 sm:$0xff]  }
 0x195   :  { %v4899_v57 = vsel %vm180_vm0, %v4632_v2, 0.0  ;;  %v4973_v60 = vsel %vm180_vm0, %v4633_v54, 0.0  ;;  %4105 = vmatpush1.bf16.msra.mxu0 %v8182_v62  ;;  %4146 = vmatpush1.bf16.msra.mxu1 %v8185_v59  ;;  %v8227_v62 = vld [vmem:[%s10807_s1 + $0xcbc] ss:$16 sps:$4 sm:$0xff]   ;;  %v8222_v54 = vld [vmem:[%s10807_s1 + $0xcb0] ss:$16 sps:$4 sm:$0xff]  }
 0x196   :  { %v9757_v51 = vadd.f32 %v4899_v57, %v9645_v63  ;;  %v9760_v1 = vadd.f32 %v4973_v60, %v9648_v58  ;;  %4106 = vmatprep.subr.bf16.mxu0 %v8190_v0  ;;  %4147 = vmatprep.subr.bf16.mxu1 %v8193_v50  ;;  %v8194_v63 = vld [vmem:[%s10807_s1 + $0xba0] ss:$16 sps:$4 sm:$0xff]   ;;  %v8197_v58 = vld [vmem:[%s10807_s1 + $0xba8] ss:$16 sps:$4 sm:$0xff]  }
 0x199   :  { %4107 = vmatpush1.bf16.msra.mxu0 %v8188_v6  ;;  %4148 = vmatpush1.bf16.msra.mxu1 %v8191_v7 }
 0x19a   :  { %4108 = vmatprep.subr.bf16.mxu0 %v8196_v8  ;;  %4149 = vmatprep.subr.bf16.mxu1 %v8199_v9 }
 0x19d   :  { %4109 = vmatpush1.bf16.msra.mxu0 %v8194_v63  ;;  %4150 = vmatpush1.bf16.msra.mxu1 %v8197_v58 }
 0x19e   :  { %4110 = vmatprep.subr.bf16.mxu0 %v8202_v10  ;;  %4151 = vmatprep.subr.bf16.mxu1 %v8205_v11  ;;  %v8228_v10 = vld [vmem:[%s10807_s1 + $0xc90] ss:$16 sps:$4 sm:$0xff]   ;;  %v8231_v11 = vld [vmem:[%s10807_s1 + $0xc98] ss:$16 sps:$4 sm:$0xff]  }
 0x1a1   :  { %4111 = vmatpush1.bf16.msra.mxu0 %v8200_v12  ;;  %4152 = vmatpush1.bf16.msra.mxu1 %v8203_v13  ;;  %v8239_v13 = vld [vmem:[%s10807_s1 + $0xc7c] ss:$16 sps:$4 sm:$0xff]  }
 0x1a2   :  { %4112 = vmatprep.subr.bf16.mxu0 %v8208_v15  ;;  %4153 = vmatprep.subr.bf16.mxu1 %v8211_v16  ;;  %v8234_v15 = vld [vmem:[%s10807_s1 + $0xc70] ss:$16 sps:$4 sm:$0xff]   ;;  %v8245_v16 = vld [vmem:[%s10807_s1 + $0xc5c] ss:$16 sps:$4 sm:$0xff]  }
 0x1a4   :  { %v2179_v27 = vpop.f32.mrf.mxu0  ;;  %v2220_v28 = vpop.f32.mrf.mxu1 }
 0x1a5   :  { %4113 = vmatpush1.bf16.msra.mxu0 %v8206_v20  ;;  %4154 = vmatpush1.bf16.msra.mxu1 %v8209_v21  ;;  %v8248_v20 = vld [vmem:[%s10807_s1 + $0xc34] ss:$16 sps:$4 sm:$0xff]   ;;  %v8251_v21 = vld [vmem:[%s10807_s1 + $0xc3c] ss:$16 sps:$4 sm:$0xff]  }
 0x1a6   :  { %v2181_v30 = vpop.f32.mrf.mxu0  ;;  %v2222_v31 = vpop.f32.mrf.mxu1  ;;  %7538 = vmatprep.subr.msk.bf16.mxu0 %vm180_vm0, %v7535_v22  ;;  %7540 = vmatprep.subr.msk.bf16.mxu1 %vm180_vm0, %v7537_v23  ;;  %v8246_v22 = vld [vmem:[%s10807_s1 + $0xc30] ss:$16 sps:$4 sm:$0xff]   ;;  %v8249_v23 = vld [vmem:[%s10807_s1 + $0xc38] ss:$16 sps:$4 sm:$0xff]  }
 0x1a7   :  { %v2231_v37 = vcombine.low %v2179_v27, %v2181_v30  ;;  %v2232_v38 = vcombine.low %v2220_v28, %v2222_v31  ;;  %v4204_v27 = vld [vmem:[%s10806_s0] sm:$0x1] }
 0x1a8   :  { %v2183_v41 = vpop.f32.mrf.mxu0  ;;  %v2224_v43 = vpop.f32.mrf.mxu1  ;;  %7481 = vmatmul.mubr.msk.bf16.vlgmr.msra.gmra.mxu0 %vm176_vm1, %v3925_v29  ;;  %7483 = vmatmul.mubr.msk.bf16.vlgmr.msra.gmra.mxu1 %vm176_vm1, %v3925_v29 }
 0x1a9   :  { %v2239_v44 = vrot.slane %v2231_v37, %v9029_v25  ;;  %v2246_v47 = vrot.slane %v2232_v38, %v9029_v25  ;;  %4380 = vmatpush1.bf16.msra.mxu0 %v4366_v32  ;;  %4421 = vmatpush1.bf16.msra.mxu1 %v4372_v34 }
 0x1aa   :  { %v2184_v53 = vpop.f32.mrf.mxu0  ;;  %v2225_v56 = vpop.f32.mrf.mxu1  ;;  %4381 = vmatprep.subr.bf16.mxu0 %v8218_v35  ;;  %4422 = vmatprep.subr.bf16.mxu1 %v8221_v36 }
 0x1ab   :  { %v9833_v59 = vcombine.low %v2239_v44, %v2246_v47  ;;  %v7597_v0 = vcombine.low %v2246_v47, %v2246_v47  ;;  %4409 = vmatprep.mubr.bf16.mxu0 %v8282_v14  ;;  %4450 = vmatprep.mubr.bf16.mxu1 %v8282_v14  ;;  %v8230_v14 = vld [vmem:[%s10807_s1 + $0xc94] ss:$16 sps:$4 sm:$0xff]  }
 0x1ad   :  { %v4641_v50 = vrot.slane %v9833_v59, %v9029_v25  ;;  %v4648_v2 = vrot.slane %v7597_v0, %v9029_v25  ;;  %4382 = vmatpush1.bf16.msra.mxu0 %v8216_v48  ;;  %4423 = vmatpush1.bf16.msra.mxu1 %v8219_v49 }
 0x1ae   :  { %4383 = vmatprep.subr.bf16.mxu0 %v8224_v61  ;;  %4424 = vmatprep.subr.bf16.mxu1 %v8227_v62 }
 0x1af   :  { %v4649_v57 = vcombine.high %v4641_v50, %v4641_v50  ;;  %v4650_v60 = vcombine.high %v4648_v2, %v4648_v2  ;;  %v4864_v6 = vsel %vm180_vm0, %v4641_v50, 0.0  ;;  %v4938_v7 = vsel %vm180_vm0, %v4648_v2, 0.0 }
 0x1b0   :  { %v4865_v8 = vadd.f32 %v4864_v6, %v9743_v4  ;;  %v4939_v9 = vadd.f32 %v4938_v7, %v9746_v5  ;;  %v8236_v5 = vld [vmem:[%s10807_s1 + $0xc74] ss:$16 sps:$4 sm:$0xff]  }
 0x1b1   :  { %v4901_v63 = vsel %vm180_vm0, %v4649_v57, 0.0  ;;  %v4975_v58 = vsel %vm180_vm0, %v4650_v60, 0.0  ;;  %4384 = vmatpush1.bf16.msra.mxu0 %v8222_v54  ;;  %4425 = vmatpush1.bf16.msra.mxu1 %v8225_v55 }
 0x1b2   :  { %v4902_v12 = vadd.f32 %v4901_v63, %v9757_v51  ;;  %v4976_v4 = vadd.f32 %v4975_v58, %v9760_v1  ;;  %4385 = vmatprep.subr.bf16.mxu0 %v8230_v14  ;;  %4426 = vmatprep.subr.bf16.mxu1 %v8233_v3  ;;  %v8237_v51 = vld [vmem:[%s10807_s1 + $0xc78] ss:$16 sps:$4 sm:$0xff]   ;;  %v8242_v1 = vld [vmem:[%s10807_s1 + $0xc54] ss:$16 sps:$4 sm:$0xff]  }
 0x1b5   :  { %4386 = vmatpush1.bf16.msra.mxu0 %v8228_v10  ;;  %4427 = vmatpush1.bf16.msra.mxu1 %v8231_v11 }
 0x1b6   :  { %4387 = vmatprep.subr.bf16.mxu0 %v8236_v5  ;;  %4428 = vmatprep.subr.bf16.mxu1 %v8239_v13 }
 0x1b9   :  { %4388 = vmatpush1.bf16.msra.mxu0 %v8234_v15  ;;  %4429 = vmatpush1.bf16.msra.mxu1 %v8237_v51 }
 0x1ba   :  { %4389 = vmatprep.subr.bf16.mxu0 %v8242_v1  ;;  %4430 = vmatprep.subr.bf16.mxu1 %v8245_v16 }
 0x1bd   :  { %4390 = vmatpush1.bf16.msra.mxu0 %v8240_v17  ;;  %4431 = vmatpush1.bf16.msra.mxu1 %v8243_v19 }
 0x1be   :  { %4391 = vmatprep.subr.bf16.mxu0 %v8248_v20  ;;  %4432 = vmatprep.subr.bf16.mxu1 %v8251_v21 }
 0x1c0   :  { %v2458_v24 = vpop.f32.mrf.mxu0  ;;  %v2499_v26 = vpop.f32.mrf.mxu1 }
 0x1c1   :  { %4392 = vmatpush1.bf16.msra.mxu0 %v8246_v22  ;;  %4433 = vmatpush1.bf16.msra.mxu1 %v8249_v23 }
 0x1c2   :  { %v2460_v28 = vpop.f32.mrf.mxu0  ;;  %v2501_v29 = vpop.f32.mrf.mxu1 }
 0x1c3   :  { %v2510_v30 = vcombine.low %v2458_v24, %v2460_v28  ;;  %v2511_v31 = vcombine.low %v2499_v26, %v2501_v29 }
 0x1c4   :  { %v2462_v32 = vpop.f32.mrf.mxu0  ;;  %v2503_v34 = vpop.f32.mrf.mxu1  ;;  %7539 = vmatmul.mubr.msk.bf16.vlgmr.msra.gmra.mxu0 %vm176_vm1, %v4204_v27  ;;  %7541 = vmatmul.mubr.msk.bf16.vlgmr.msra.gmra.mxu1 %vm176_vm1, %v4204_v27 }
 0x1c5   :  { %v2518_v35 = vrot.slane %v2510_v30, %v9029_v25  ;;  %v2525_v36 = vrot.slane %v2511_v31, %v9029_v25 }
 0x1c6   :  { %v2463_v37 = vpop.f32.mrf.mxu0  ;;  %v2504_v38 = vpop.f32.mrf.mxu1 }
 0x1c7   :  { %v9909_v41 = vcombine.low %v2518_v35, %v2525_v36  ;;  %v7598_v43 = vcombine.low %v2525_v36, %v2525_v36 }
 0x1c9   :  { %v4658_v44 = vrot.slane %v9909_v41, %v9029_v25  ;;  %v4665_v47 = vrot.slane %v7598_v43, %v9029_v25 }
 0x1cb   :  { %v4666_v48 = vcombine.high %v4658_v44, %v4658_v44  ;;  %v4667_v49 = vcombine.high %v4665_v47, %v4665_v47  ;;  %v4866_v53 = vsel %vm180_vm0, %v4658_v44, 0.0  ;;  %v4940_v56 = vsel %vm180_vm0, %v4665_v47, 0.0 }
 0x1cc   :  { %v4867_v61 = vadd.f32 %v4866_v53, %v4865_v8  ;;  %v4941_v62 = vadd.f32 %v4940_v56, %v4939_v9 }
 0x1cd   :  { %v4903_v0 = vsel %vm180_vm0, %v4666_v48, 0.0  ;;  %v4977_v50 = vsel %vm180_vm0, %v4667_v49, 0.0 }
 0x1ce   :  { %v4904_v2 = vadd.f32 %v4903_v0, %v4902_v12  ;;  %v4978_v54 = vadd.f32 %v4977_v50, %v4976_v4 }
 0x1dc   :  { %v2737_v55 = vpop.f32.mrf.mxu0  ;;  %v2778_v14 = vpop.f32.mrf.mxu1 }
 0x1de   :  { %v2739_v3 = vpop.f32.mrf.mxu0  ;;  %v2780_v57 = vpop.f32.mrf.mxu1 }
 0x1df   :  { %v2789_v60 = vcombine.low %v2737_v55, %v2739_v3  ;;  %v2790_v6 = vcombine.low %v2778_v14, %v2780_v57 }
 0x1e0   :  { %v2741_v7 = vpop.f32.mrf.mxu0  ;;  %v2782_v63 = vpop.f32.mrf.mxu1 }
 0x1e1   :  { %v2797_v58 = vrot.slane %v2789_v60, %v9029_v25  ;;  %v2804_v10 = vrot.slane %v2790_v6, %v9029_v25 }
 0x1e2   :  { %v2742_v8 = vpop.f32.mrf.mxu0  ;;  %v2783_v9 = vpop.f32.mrf.mxu1 }
 0x1e3   :  { %v9920_v11 = vcombine.low %v2797_v58, %v2804_v10  ;;  %v7599_v5 = vcombine.low %v2804_v10, %v2804_v10 }
 0x1e5   :  { %v4675_v12 = vrot.slane %v9920_v11, %v9029_v25  ;;  %v4682_v4 = vrot.slane %v7599_v5, %v9029_v25 }
 0x1e7   :  { %v4683_v13 = vcombine.high %v4675_v12, %v4675_v12  ;;  %v4684_v15 = vcombine.high %v4682_v4, %v4682_v4  ;;  %v4868_v51 = vsel %vm180_vm0, %v4675_v12, 0.0  ;;  %v4942_v1 = vsel %vm180_vm0, %v4682_v4, 0.0 }
 0x1e8   :  { %v4869_v16 = vadd.f32 %v4868_v51, %v4867_v61  ;;  %v4943_v17 = vadd.f32 %v4942_v1, %v4941_v62 }
 0x1e9   :  { %v4905_v19 = vsel %vm180_vm0, %v4683_v13, 0.0  ;;  %v4979_v20 = vsel %vm180_vm0, %v4684_v15, 0.0 }
 0x1ea   :  { %v4906_v21 = vadd.f32 %v4905_v19, %v4904_v2  ;;  %v4980_v22 = vadd.f32 %v4979_v20, %v4978_v54 }
 0x1f8   :  { %v3016_v23 = vpop.f32.mrf.mxu0  ;;  %v3057_v24 = vpop.f32.mrf.mxu1 }
 0x1fa   :  { %v3018_v26 = vpop.f32.mrf.mxu0  ;;  %v3059_v27 = vpop.f32.mrf.mxu1 }
 0x1fb   :  { %v3068_v28 = vcombine.low %v3016_v23, %v3018_v26  ;;  %v3069_v29 = vcombine.low %v3057_v24, %v3059_v27 }
 0x1fc   :  { %v3020_v30 = vpop.f32.mrf.mxu0  ;;  %v3061_v31 = vpop.f32.mrf.mxu1 }
 0x1fd   :  { %v3076_v32 = vrot.slane %v3068_v28, %v9029_v25  ;;  %v3083_v34 = vrot.slane %v3069_v29, %v9029_v25 }
 0x1fe   :  { %v3021_v35 = vpop.f32.mrf.mxu0  ;;  %v3062_v36 = vpop.f32.mrf.mxu1 }
 0x1ff   :  { %v9931_v37 = vcombine.low %v3076_v32, %v3083_v34  ;;  %v7600_v38 = vcombine.low %v3083_v34, %v3083_v34 }
 0x201   :  { %v4692_v43 = vrot.slane %v9931_v37, %v9029_v25  ;;  %v4699_v44 = vrot.slane %v7600_v38, %v9029_v25 }
 0x203   :  { %v4700_v47 = vcombine.high %v4692_v43, %v4692_v43  ;;  %v4701_v48 = vcombine.high %v4699_v44, %v4699_v44  ;;  %v4870_v49 = vsel %vm180_vm0, %v4692_v43, 0.0  ;;  %v4944_v53 = vsel %vm180_vm0, %v4699_v44, 0.0 }
 0x204   :  { %v4871_v56 = vadd.f32 %v4870_v49, %v4869_v16  ;;  %v4945_v61 = vadd.f32 %v4944_v53, %v4943_v17 }
 0x205   :  { %v4907_v62 = vsel %vm180_vm0, %v4700_v47, 0.0  ;;  %v4981_v0 = vsel %vm180_vm0, %v4701_v48, 0.0 }
 0x206   :  { %v4908_v50 = vadd.f32 %v4907_v62, %v4906_v21  ;;  %v4982_v2 = vadd.f32 %v4981_v0, %v4980_v22 }
 0x214   :  { %v3295_v54 = vpop.f32.mrf.mxu0  ;;  %v3336_v55 = vpop.f32.mrf.mxu1 }
 0x216   :  { %v3297_v14 = vpop.f32.mrf.mxu0  ;;  %v3338_v3 = vpop.f32.mrf.mxu1 }
 0x217   :  { %v3347_v57 = vcombine.low %v3295_v54, %v3297_v14  ;;  %v3348_v60 = vcombine.low %v3336_v55, %v3338_v3 }
 0x218   :  { %v3299_v6 = vpop.f32.mrf.mxu0  ;;  %v3340_v7 = vpop.f32.mrf.mxu1 }
 0x219   :  { %v3355_v63 = vrot.slane %v3347_v57, %v9029_v25  ;;  %v3362_v58 = vrot.slane %v3348_v60, %v9029_v25 }
 0x21a   :  { %v3300_v10 = vpop.f32.mrf.mxu0  ;;  %v3341_v8 = vpop.f32.mrf.mxu1 }
 0x21b   :  { %v9942_v9 = vcombine.low %v3355_v63, %v3362_v58  ;;  %v7601_v5 = vcombine.low %v3362_v58, %v3362_v58 }
 0x21d   :  { %v4709_v12 = vrot.slane %v9942_v9, %v9029_v25  ;;  %v4716_v4 = vrot.slane %v7601_v5, %v9029_v25 }
 0x21f   :  { %v4717_v13 = vcombine.high %v4709_v12, %v4709_v12  ;;  %v4718_v15 = vcombine.high %v4716_v4, %v4716_v4  ;;  %v4872_v51 = vsel %vm180_vm0, %v4709_v12, 0.0  ;;  %v4946_v1 = vsel %vm180_vm0, %v4716_v4, 0.0 }
 0x220   :  { %v4873_v16 = vadd.f32 %v4872_v51, %v4871_v56  ;;  %v4947_v17 = vadd.f32 %v4946_v1, %v4945_v61 }
 0x221   :  { %v4909_v19 = vsel %vm180_vm0, %v4717_v13, 0.0  ;;  %v4983_v20 = vsel %vm180_vm0, %v4718_v15, 0.0 }
 0x222   :  { %v4910_v21 = vadd.f32 %v4909_v19, %v4908_v50  ;;  %v4984_v22 = vadd.f32 %v4983_v20, %v4982_v2 }
 0x230   :  { %v3574_v23 = vpop.f32.mrf.mxu0  ;;  %v3615_v24 = vpop.f32.mrf.mxu1 }
 0x232   :  { %v3576_v26 = vpop.f32.mrf.mxu0  ;;  %v3617_v27 = vpop.f32.mrf.mxu1 }
 0x233   :  { %v3626_v28 = vcombine.low %v3574_v23, %v3576_v26  ;;  %v3627_v29 = vcombine.low %v3615_v24, %v3617_v27 }
 0x234   :  { %v3578_v30 = vpop.f32.mrf.mxu0  ;;  %v3619_v31 = vpop.f32.mrf.mxu1 }
 0x235   :  { %v3634_v32 = vrot.slane %v3626_v28, %v9029_v25  ;;  %v3641_v34 = vrot.slane %v3627_v29, %v9029_v25 }
 0x236   :  { %v3579_v35 = vpop.f32.mrf.mxu0  ;;  %v3620_v36 = vpop.f32.mrf.mxu1 }
 0x237   :  { %v9953_v38 = vcombine.low %v3634_v32, %v3641_v34  ;;  %v7602_v43 = vcombine.low %v3641_v34, %v3641_v34 }
 0x239   :  { %v4726_v44 = vrot.slane %v9953_v38, %v9029_v25  ;;  %v4733_v47 = vrot.slane %v7602_v43, %v9029_v25 }
 0x23b   :  { %v4734_v48 = vcombine.high %v4726_v44, %v4726_v44  ;;  %v4735_v49 = vcombine.high %v4733_v47, %v4733_v47  ;;  %v4874_v53 = vsel %vm180_vm0, %v4726_v44, 0.0  ;;  %v4948_v56 = vsel %vm180_vm0, %v4733_v47, 0.0 }
 0x23c   :  { %v4875_v61 = vadd.f32 %v4874_v53, %v4873_v16  ;;  %v4949_v62 = vadd.f32 %v4948_v56, %v4947_v17 }
 0x23d   :  { %v4911_v0 = vsel %vm180_vm0, %v4734_v48, 0.0  ;;  %v4985_v50 = vsel %vm180_vm0, %v4735_v49, 0.0 }
 0x23e   :  { %v4912_v2 = vadd.f32 %v4911_v0, %v4910_v21  ;;  %v4986_v54 = vadd.f32 %v4985_v50, %v4984_v22 }
 0x24c   :  { %v3853_v55 = vpop.f32.mrf.mxu0  ;;  %v3894_v14 = vpop.f32.mrf.mxu1 }
 0x24e   :  { %v3855_v3 = vpop.f32.mrf.mxu0  ;;  %v3896_v57 = vpop.f32.mrf.mxu1 }
 0x24f   :  { %v3905_v60 = vcombine.low %v3853_v55, %v3855_v3  ;;  %v3906_v6 = vcombine.low %v3894_v14, %v3896_v57 }
 0x250   :  { %v3857_v7 = vpop.f32.mrf.mxu0  ;;  %v3898_v63 = vpop.f32.mrf.mxu1 }
 0x251   :  { %v3913_v58 = vrot.slane %v3905_v60, %v9029_v25  ;;  %v3920_v10 = vrot.slane %v3906_v6, %v9029_v25 }
 0x252   :  { %v3858_v8 = vpop.f32.mrf.mxu0  ;;  %v3899_v5 = vpop.f32.mrf.mxu1 }
 0x253   :  { %v9964_v12 = vcombine.low %v3913_v58, %v3920_v10  ;;  %v7603_v4 = vcombine.low %v3920_v10, %v3920_v10 }
 0x255   :  { %v4743_v13 = vrot.slane %v9964_v12, %v9029_v25  ;;  %v4750_v15 = vrot.slane %v7603_v4, %v9029_v25 }
 0x257   :  { %v4751_v51 = vcombine.high %v4743_v13, %v4743_v13  ;;  %v4752_v1 = vcombine.high %v4750_v15, %v4750_v15  ;;  %v4876_v16 = vsel %vm180_vm0, %v4743_v13, 0.0  ;;  %v4950_v17 = vsel %vm180_vm0, %v4750_v15, 0.0 }
 0x258   :  { %v4877_v19 = vadd.f32 %v4876_v16, %v4875_v61  ;;  %v4951_v20 = vadd.f32 %v4950_v17, %v4949_v62 }
 0x259   :  { %v4913_v21 = vsel %vm180_vm0, %v4751_v51, 0.0  ;;  %v4987_v22 = vsel %vm180_vm0, %v4752_v1, 0.0 }
 0x25a   :  { %v4914_v23 = vadd.f32 %v4913_v21, %v4912_v2  ;;  %v4988_v24 = vadd.f32 %v4987_v22, %v4986_v54 }
 0x268   :  { %v4132_v26 = vpop.f32.mrf.mxu0  ;;  %v4173_v27 = vpop.f32.mrf.mxu1 }
 0x26a   :  { %v4134_v28 = vpop.f32.mrf.mxu0  ;;  %v4175_v29 = vpop.f32.mrf.mxu1 }
 0x26b   :  { %v4184_v30 = vcombine.low %v4132_v26, %v4134_v28  ;;  %v4185_v31 = vcombine.low %v4173_v27, %v4175_v29 }
 0x26c   :  { %v4136_v32 = vpop.f32.mrf.mxu0  ;;  %v4177_v34 = vpop.f32.mrf.mxu1 }
 0x26d   :  { %v4192_v35 = vrot.slane %v4184_v30, %v9029_v25  ;;  %v4199_v36 = vrot.slane %v4185_v31, %v9029_v25 }
 0x26e   :  { %v4137_v43 = vpop.f32.mrf.mxu0  ;;  %v4178_v44 = vpop.f32.mrf.mxu1 }
 0x26f   :  { %v9975_v47 = vcombine.low %v4192_v35, %v4199_v36  ;;  %v7604_v48 = vcombine.low %v4199_v36, %v4199_v36 }
 0x271   :  { %v4760_v49 = vrot.slane %v9975_v47, %v9029_v25  ;;  %v4767_v53 = vrot.slane %v7604_v48, %v9029_v25 }
 0x273   :  { %v4768_v56 = vcombine.high %v4760_v49, %v4760_v49  ;;  %v4769_v61 = vcombine.high %v4767_v53, %v4767_v53  ;;  %v4878_v62 = vsel %vm180_vm0, %v4760_v49, 0.0  ;;  %v4952_v0 = vsel %vm180_vm0, %v4767_v53, 0.0 }
 0x274   :  { %v4879_v50 = vadd.f32 %v4878_v62, %v4877_v19  ;;  %v4953_v2 = vadd.f32 %v4952_v0, %v4951_v20 }
 0x275   :  { %v4915_v54 = vsel %vm180_vm0, %v4768_v56, 0.0  ;;  %v4989_v55 = vsel %vm180_vm0, %v4769_v61, 0.0 }
 0x276   :  { %v4916_v14 = vadd.f32 %v4915_v54, %v4914_v23  ;;  %v4990_v3 = vadd.f32 %v4989_v55, %v4988_v24 }
 0x284   :  { %v4411_v57 = vpop.f32.mrf.mxu0  ;;  %v4452_v60 = vpop.f32.mrf.mxu1 }
 0x286   :  { %v4413_v6 = vpop.f32.mrf.mxu0  ;;  %v4454_v7 = vpop.f32.mrf.mxu1 }
 0x287   :  { %v4463_v63 = vcombine.low %v4411_v57, %v4413_v6  ;;  %v4464_v58 = vcombine.low %v4452_v60, %v4454_v7 }
 0x288   :  { %v4415_v10 = vpop.f32.mrf.mxu0  ;;  %v4456_v8 = vpop.f32.mrf.mxu1 }
 0x289   :  { %v4471_v5 = vrot.slane %v4463_v63, %v9029_v25  ;;  %v4478_v4 = vrot.slane %v4464_v58, %v9029_v25 }
 0x28a   :  { %v4416_v13 = vpop.f32.mrf.mxu0  ;;  %v4457_v15 = vpop.f32.mrf.mxu1 }
 0x28b   :  { %v9986_v51 = vcombine.low %v4471_v5, %v4478_v4  ;;  %v7605_v1 = vcombine.low %v4478_v4, %v4478_v4 }
 0x28d   :  { %v4777_v16 = vrot.slane %v9986_v51, %v9029_v25  ;;  %v4784_v17 = vrot.slane %v7605_v1, %v9029_v25 }
 0x28f   :  { %v4785_v19 = vcombine.high %v4777_v16, %v4777_v16  ;;  %v4786_v20 = vcombine.high %v4784_v17, %v4784_v17  ;;  %v4880_v21 = vsel %vm180_vm0, %v4777_v16, 0.0  ;;  %v4954_v22 = vsel %vm180_vm0, %v4784_v17, 0.0 }
 0x290   :  { %v4881_v23 = vadd.f32 %v4880_v21, %v4879_v50  ;;  %v4955_v24 = vadd.f32 %v4954_v22, %v4953_v2 }
 0x291   :  { %v4917_v26 = vsel %vm180_vm0, %v4785_v19, 0.0  ;;  %v4991_v27 = vsel %vm180_vm0, %v4786_v20, 0.0 }
 0x292   :  { %v4882_v28 = vrot.slane %v4881_v23, 4  ;;  %v4918_v29 = vadd.f32 %v4917_v26, %v4916_v14  ;;  %v4956_v30 = vrot.slane %v4955_v24, 4  ;;  %v4992_v31 = vadd.f32 %v4991_v27, %v4990_v3 }
 0x294   :  { %v4883_v32 = vadd.f32 %v4882_v28, %v4881_v23  ;;  %v4919_v34 = vrot.slane %v4918_v29, 4  ;;  %v4957_v35 = vadd.f32 %v4956_v30, %v4955_v24  ;;  %v4993_v36 = vrot.slane %v4992_v31, 4 }
 0x296   :  { %v4884_v43 = vrot.slane %v4883_v32, 2  ;;  %v4920_v44 = vadd.f32 %v4919_v34, %v4918_v29  ;;  %v4958_v48 = vrot.slane %v4957_v35, 2  ;;  %v4994_v49 = vadd.f32 %v4993_v36, %v4992_v31 }
 0x298   :  { %v4885_v53 = vadd.f32 %v4884_v43, %v4883_v32  ;;  %v4921_v56 = vrot.slane %v4920_v44, 2  ;;  %v4959_v61 = vadd.f32 %v4958_v48, %v4957_v35  ;;  %v4995_v62 = vrot.slane %v4994_v49, 2 }
 0x29a   :  { %v4886_v0 = vrot.slane %v4885_v53, 1  ;;  %v4922_v50 = vadd.f32 %v4921_v56, %v4920_v44  ;;  %v4960_v2 = vrot.slane %v4959_v61, 1  ;;  %v4996_v54 = vadd.f32 %v4995_v62, %v4994_v49 }
 0x29c   :  { %v4887_v55 = vadd.f32 %v4886_v0, %v4885_v53  ;;  %v4923_v14 = vrot.slane %v4922_v50, 1  ;;  %v4961_v57 = vadd.f32 %v4960_v2, %v4959_v61  ;;  %v4997_v3 = vrot.slane %v4996_v54, 1 }
 0x29e   :  { %v4924_v60 = vadd.f32 %v4923_v14, %v4922_v50  ;;  %v4998_v6 = vadd.f32 %v4997_v3, %v4996_v54  ;;  %v5000_v7 = vmul.f32 0.03125, %v4887_v55  ;;  %v5002_v58 = vmul.f32 0.03125, %v4961_v57 }
 0x2a0   :  { %v5001_v63 = vmul.f32 0.03125, %v4924_v60  ;;  %v5003_v10 = vmul.f32 0.03125, %v4998_v6 }
 0x2a2   :  { %v5008_v8 = vcombine.low %v5000_v7, %v5001_v63  ;;  %v5009_v5 = vcombine.low %v5002_v58, %v5003_v10 }
 0x2a4   :  { %v5016_v4 = vrot.slane %v5008_v8, %v9029_v25  ;;  %v5023_v13 = vrot.slane %v5009_v5, %v9029_v25 }
 0x2a6   :  { %v5024_v15 = vcombine.low %v5016_v4, %v5023_v13 }
 0x2a8   :  { %v9998_v1 = vsub.f32 %v9063_v45, %v5024_v15  ;;  %v10001_v16 = vsub.f32 %v9161_v33, %v5024_v15  ;;  %v10004_v17 = vsub.f32 %v9273_v39, %v5024_v15  ;;  %v10007_v19 = vsub.f32 %v9385_v40, %v5024_v15 }
 0x2a9   :  { %v10010_v20 = vsub.f32 %v9497_v42, %v5024_v15  ;;  %v10013_v21 = vsub.f32 %v9609_v46, %v5024_v15  ;;  %v10016_v22 = vsub.f32 %v9721_v52, %v5024_v15  ;;  %v10019_v45 = vsub.f32 %v9833_v59, %v5024_v15 }
 0x2aa   :  { %v10022_v33 = vsub.f32 %v9909_v41, %v5024_v15  ;;  %v10025_v39 = vsub.f32 %v9920_v11, %v5024_v15  ;;  %v10028_v40 = vsub.f32 %v9931_v37, %v5024_v15  ;;  %v10031_v42 = vsub.f32 %v9942_v9, %v5024_v15 }
 0x2ab   :  { %v10034_v46 = vsub.f32 %v9953_v38, %v5024_v15  ;;  %v10037_v52 = vsub.f32 %v9964_v12, %v5024_v15  ;;  %v10040_v59 = vsub.f32 %v9975_v47, %v5024_v15  ;;  %v5042_v41 = vmul.f32 %v9998_v1, %v9998_v1 }
 0x2ac   :  { %v5043_v11 = vmul.f32 %v10001_v16, %v10001_v16  ;;  %v5044_v37 = vmul.f32 %v10004_v17, %v10004_v17  ;;  %v5045_v9 = vmul.f32 %v10007_v19, %v10007_v19  ;;  %v10051_v38 = vsub.f32 %v9986_v51, %v5024_v15 }
 0x2ad   :  { %v5046_v12 = vmul.f32 %v10010_v20, %v10010_v20  ;;  %v5047_v47 = vmul.f32 %v10013_v21, %v10013_v21  ;;  %v5048_v23 = vmul.f32 %v10016_v22, %v10016_v22  ;;  %v5049_v24 = vmul.f32 %v10019_v45, %v10019_v45 }
 0x2ae   :  { %v5050_v26 = vmul.f32 %v10022_v33, %v10022_v33  ;;  %v5051_v27 = vmul.f32 %v10025_v39, %v10025_v39  ;;  %v5074_v51 = vcombine.high %v5042_v41, %v5042_v41  ;;  %v5052_v28 = vmul.f32 %v10028_v40, %v10028_v40 }
 0x2af   :  { %v5091_v29 = vcombine.high %v5043_v11, %v5043_v11  ;;  %v5108_v30 = vcombine.high %v5044_v37, %v5044_v37  ;;  %v5125_v31 = vcombine.high %v5045_v9, %v5045_v9  ;;  %v10069_v32 = vmul.f32 %v10031_v42, %v10031_v42 }
 0x2b0   :  { %v10073_v34 = vmul.f32 %v10034_v46, %v10034_v46  ;;  %v10077_v35 = vmul.f32 %v10037_v52, %v10037_v52  ;;  %v10080_v36 = vrot.slane %v5042_v41, %v9029_v25  ;;  %v10083_v43 = vrot.slane %v5043_v11, %v9029_v25 }
 0x2b1   :  { %v10086_v44 = vrot.slane %v5044_v37, %v9029_v25  ;;  %v10089_v48 = vrot.slane %v5045_v9, %v9029_v25  ;;  %v5142_v49 = vcombine.high %v5046_v12, %v5046_v12  ;;  %v10093_v53 = vmul.f32 %v10040_v59, %v10040_v59 }
 0x2b2   :  { %v10097_v56 = vmul.f32 %v10051_v38, %v10051_v38  ;;  %v10100_v61 = vrot.slane %v5074_v51, %v9029_v25  ;;  %v5159_v62 = vcombine.high %v5047_v47, %v5047_v47  ;;  %v10103_v0 = vrot.slane %v5091_v29, %v9029_v25 }
 0x2b3   :  { %v10106_v50 = vrot.slane %v5108_v30, %v9029_v25  ;;  %v10109_v2 = vrot.slane %v5125_v31, %v9029_v25  ;;  %v10112_v54 = vrot.slane %v5046_v12, %v9029_v25  ;;  %v5089_v55 = vcombine.high %v10080_v36, %v10080_v36 }
 0x2b4   :  { %v10117_v14 = vrot.slane %v5047_v47, %v9029_v25  ;;  %v5176_v57 = vcombine.high %v5048_v23, %v5048_v23  ;;  %v5193_v3 = vcombine.high %v5049_v24, %v5049_v24  ;;  %v5106_v60 = vcombine.high %v10083_v43, %v10083_v43 }
 0x2b5   :  { %v5123_v6 = vcombine.high %v10086_v44, %v10086_v44  ;;  %v5140_v7 = vcombine.high %v10089_v48, %v10089_v48  ;;  %v10126_v63 = vrot.slane %v5142_v49, %v9029_v25  ;;  %v5090_v58 = vcombine.high %v10100_v61, %v10100_v61 }
 0x2b6   :  { %v10131_v10 = vrot.slane %v5159_v62, %v9029_v25  ;;  %v10134_v8 = vrot.slane %v5048_v23, %v9029_v25  ;;  %v5210_v5 = vcombine.high %v5050_v26, %v5050_v26  ;;  %v5107_v4 = vcombine.high %v10103_v0, %v10103_v0 }
 0x2b7   :  { %v5157_v41 = vcombine.high %v10112_v54, %v10112_v54  ;;  %v5174_v11 = vcombine.high %v10117_v14, %v10117_v14  ;;  %v10147_v37 = vrot.slane %v5176_v57, %v9029_v25  ;;  %v10150_v9 = vrot.slane %v5049_v24, %v9029_v25 }
 0x2b8   :  { %v10153_v12 = vrot.slane %v5193_v3, %v9029_v25  ;;  %v10158_v23 = vrot.slane %v5050_v26, %v9029_v25  ;;  %v5227_v51 = vcombine.high %v5051_v27, %v5051_v27  ;;  %v5244_v29 = vcombine.high %v5052_v28, %v5052_v28 }
 0x2b9   :  { %v5191_v31 = vcombine.high %v10134_v8, %v10134_v8  ;;  %v10165_v24 = vrot.slane %v5210_v5, %v9029_v25  ;;  %v5410_v49 = vsel %vm180_vm0, %v10080_v36, 0.0  ;;  %v10170_v62 = vrot.slane %v5051_v27, %v9029_v25 }
 0x2ba   :  { %v10173_v26 = vrot.slane %v5052_v28, %v9029_v25  ;;  %v5261_v57 = vcombine.high %v10069_v32, %v10069_v32  ;;  %v5411_v3 = vsel %vm180_vm0, %v10083_v43, 0.0  ;;  %v10188_v47 = vrot.slane %v5227_v51, %v9029_v25 }
 0x2bb   :  { %v5412_v27 = vadd.f32 %v5411_v3, %v5410_v49  ;;  %v10191_v15 = vrot.slane %v5244_v29, %v9029_v25  ;;  %v5413_v43 = vsel %vm180_vm0, %v10086_v44, 0.0  ;;  %v10199_v13 = vrot.slane %v10069_v32, %v9029_v25 }
 0x2bc   :  { %v5278_v49 = vcombine.high %v10073_v34, %v10073_v34  ;;  %v10208_v36 = vrot.slane %v5261_v57, %v9029_v25  ;;  %v5415_v44 = vsel %vm180_vm0, %v10089_v48, 0.0  ;;  %v10214_v32 = vrot.slane %v10073_v34, %v9029_v25 }
 0x2bd   :  { %v5414_v3 = vadd.f32 %v5413_v43, %v5412_v27  ;;  %v5295_v30 = vcombine.high %v10077_v35, %v10077_v35  ;;  %v5447_v43 = vsel %vm180_vm0, %v5089_v55, 0.0  ;;  %v5417_v29 = vsel %vm180_vm0, %v10112_v54, 0.0 }
 0x2be   :  { %v5448_v28 = vsel %vm180_vm0, %v5106_v60, 0.0  ;;  %v10229_v5 = vrot.slane %v5278_v49, %v9029_v25  ;;  %v10235_v51 = vrot.slane %v10077_v35, %v9029_v25  ;;  %v5419_v57 = vsel %vm180_vm0, %v10117_v14, 0.0 }
 0x2bf   :  { %v5416_v27 = vadd.f32 %v5415_v44, %v5414_v3  ;;  %v5449_v44 = vadd.f32 %v5448_v28, %v5447_v43  ;;  %v5450_v60 = vsel %vm180_vm0, %v5123_v6, 0.0  ;;  %v5293_v34 = vcombine.high %v10214_v32, %v10214_v32 }
 0x2c0   :  { %v10243_v49 = vrot.slane %v5295_v30, %v9029_v25  ;;  %v5421_v35 = vsel %vm180_vm0, %v10134_v8, 0.0  ;;  %v5452_v43 = vsel %vm180_vm0, %v5140_v7, 0.0  ;;  %v5484_v6 = vsel %vm180_vm0, %v10100_v61, 0.0 }
 0x2c1   :  { %v5418_v3 = vadd.f32 %v5417_v29, %v5416_v27  ;;  %v5451_v28 = vadd.f32 %v5450_v60, %v5449_v44  ;;  %v10257_v30 = vrot.slane %v10093_v53, %v9029_v25  ;;  %v5485_v44 = vsel %vm180_vm0, %v10103_v0, 0.0 }
 0x2c2   :  { %v5423_v48 = vsel %vm180_vm0, %v10150_v9, 0.0  ;;  %v5454_v7 = vsel %vm180_vm0, %v5157_v41, 0.0  ;;  %v5486_v55 = vadd.f32 %v5485_v44, %v5484_v6  ;;  %v5329_v27 = vcombine.high %v10097_v56, %v10097_v56 }
 0x2c3   :  { %v5420_v29 = vadd.f32 %v5419_v57, %v5418_v3  ;;  %v5453_v3 = vadd.f32 %v5452_v43, %v5451_v28  ;;  %v10275_v43 = vrot.slane %v10097_v56, %v9029_v25  ;;  %v5425_v60 = vsel %vm180_vm0, %v10158_v23, 0.0 }
 0x2c4   :  { %v5456_v54 = vsel %vm180_vm0, %v5174_v11, 0.0  ;;  %v5327_v6 = vcombine.high %v10257_v30, %v10257_v30  ;;  %v5489_v44 = vsel %vm180_vm0, %v10109_v2, 0.0  ;;  %v5491_v11 = vsel %vm180_vm0, %v10126_v63, 0.0 }
 0x2c5   :  { %v5422_v57 = vadd.f32 %v5421_v35, %v5420_v29  ;;  %v5455_v28 = vadd.f32 %v5454_v7, %v5453_v3  ;;  %v5487_v35 = vsel %vm180_vm0, %v10106_v50, 0.0  ;;  %v5458_v7 = vsel %vm180_vm0, %v5191_v31, 0.0 }
 0x2c6   :  { %v5488_v41 = vadd.f32 %v5487_v35, %v5486_v55  ;;  %v5429_v8 = vsel %vm180_vm0, %v10173_v26, 0.0  ;;  %v10811_v31 = vcombine.high %v10150_v9, %v10150_v9  ;;  %v5493_v61 = vsel %vm180_vm0, %v10131_v10, 0.0 }
 0x2c7   :  { %v5424_v29 = vadd.f32 %v5423_v48, %v5422_v57  ;;  %v5457_v3 = vadd.f32 %v5456_v54, %v5455_v28  ;;  %v5427_v48 = vsel %vm180_vm0, %v10170_v62, 0.0  ;;  %v10812_v0 = vcombine.high %v10106_v50, %v10106_v50 }
 0x2c8   :  { %v5490_v14 = vadd.f32 %v5489_v44, %v5488_v41  ;;  %v5460_v28 = vsel %vm180_vm0, %v10811_v31, 0.0  ;;  %v10813_v9 = vcombine.high %v10158_v23, %v10158_v23  ;;  %v10814_v50 = vcombine.high %v10109_v2, %v10109_v2 }
 0x2c9   :  { %v5426_v57 = vadd.f32 %v5425_v60, %v5424_v29  ;;  %v5459_v35 = vadd.f32 %v5458_v7, %v5457_v3  ;;  %v5521_v60 = vsel %vm180_vm0, %v5090_v58, 0.0  ;;  %v5522_v29 = vsel %vm180_vm0, %v5107_v4, 0.0 }
 0x2ca   :  { %v5492_v54 = vadd.f32 %v5491_v11, %v5490_v14  ;;  %v5523_v41 = vadd.f32 %v5522_v29, %v5521_v60  ;;  %v5524_v58 = vsel %vm180_vm0, %v10812_v0, 0.0  ;;  %v5431_v4 = vsel %vm180_vm0, %v10199_v13, 0.0 }
 0x2cb   :  { %v5428_v55 = vadd.f32 %v5427_v48, %v5426_v57  ;;  %v5461_v3 = vadd.f32 %v5460_v28, %v5459_v35  ;;  %v5462_v44 = vsel %vm180_vm0, %v10813_v9, 0.0  ;;  %v5526_v35 = vsel %vm180_vm0, %v10814_v50, 0.0 }
 0x2cc   :  { %v5494_v48 = vadd.f32 %v5493_v61, %v5492_v54  ;;  %v5525_v7 = vadd.f32 %v5524_v58, %v5523_v41  ;;  %v5433_v60 = vsel %vm180_vm0, %v10214_v32, 0.0  ;;  %v10815_v23 = vcombine.high %v10170_v62, %v10170_v62 }
 0x2cd   :  { %v5430_v57 = vadd.f32 %v5429_v8, %v5428_v55  ;;  %v5463_v11 = vadd.f32 %v5462_v44, %v5461_v3  ;;  %v5495_v55 = vsel %vm180_vm0, %v10147_v37, 0.0  ;;  %v5497_v41 = vsel %vm180_vm0, %v10153_v12, 0.0 }
 0x2ce   :  { %v5464_v29 = vsel %vm180_vm0, %v10815_v23, 0.0  ;;  %v5496_v8 = vadd.f32 %v5495_v55, %v5494_v48  ;;  %v5527_v31 = vadd.f32 %v5526_v35, %v5525_v7  ;;  %v10816_v2 = vcombine.high %v10126_v63, %v10126_v63 }
 0x2cf   :  { %v5432_v14 = vadd.f32 %v5431_v4, %v5430_v57  ;;  %v5465_v54 = vadd.f32 %v5464_v29, %v5463_v11  ;;  %v5435_v3 = vsel %vm180_vm0, %v10235_v51, 0.0  ;;  %v10817_v62 = vcombine.high %v10173_v26, %v10173_v26 }
 0x2d0   :  { %v5528_v57 = vsel %vm180_vm0, %v10816_v2, 0.0  ;;  %v5498_v0 = vadd.f32 %v5497_v41, %v5496_v8  ;;  %v5499_v44 = vsel %vm180_vm0, %v10165_v24, 0.0  ;;  %v10818_v63 = vcombine.high %v10131_v10, %v10131_v10 }
 0x2d1   :  { %v5434_v28 = vadd.f32 %v5433_v60, %v5432_v14  ;;  %v5466_v61 = vsel %vm180_vm0, %v10817_v62, 0.0  ;;  %v5529_v58 = vadd.f32 %v5528_v57, %v5527_v31  ;;  %v5437_v7 = vsel %vm180_vm0, %v10257_v30, 0.0 }
 0x2d2   :  { %v5467_v9 = vadd.f32 %v5466_v61, %v5465_v54  ;;  %v5530_v48 = vsel %vm180_vm0, %v10818_v63, 0.0  ;;  %v10819_v26 = vcombine.high %v10199_v13, %v10199_v13  ;;  %v5500_v11 = vadd.f32 %v5499_v44, %v5498_v0 }
 0x2d3   :  { %v5436_v4 = vadd.f32 %v5435_v3, %v5434_v28  ;;  %v5531_v55 = vadd.f32 %v5530_v48, %v5529_v58  ;;  %v5501_v60 = vsel %vm180_vm0, %v10188_v47, 0.0  ;;  %v10820_v10 = vcombine.high %v10147_v37, %v10147_v37 }
 0x2d4   :  { %v5468_v14 = vsel %vm180_vm0, %v10819_v26, 0.0  ;;  %v5439_v29 = vsel %vm180_vm0, %v10275_v43, 0.0  ;;  %v5470_v13 = vsel %vm180_vm0, %v5293_v34, 0.0  ;;  %v5502_v8 = vadd.f32 %v5501_v60, %v5500_v11 }
 0x2d5   :  { %v5438_v50 = vadd.f32 %v5437_v7, %v5436_v4  ;;  %v5469_v35 = vadd.f32 %v5468_v14, %v5467_v9  ;;  %v5532_v23 = vsel %vm180_vm0, %v10820_v10, 0.0  ;;  %v5503_v41 = vsel %vm180_vm0, %v10191_v15, 0.0 }
 0x2d6   :  { %v5533_v31 = vadd.f32 %v5532_v23, %v5531_v55  ;;  %v10821_v37 = vcombine.high %v10153_v12, %v10153_v12  ;;  %v5344_v57 = vcombine.high %v10275_v43, %v10275_v43  ;;  %v10822_v32 = vcombine.high %v10235_v51, %v10235_v51 }
 0x2d7   :  { %v5440_v28 = vadd.f32 %v5439_v29, %v5438_v50  ;;  %v5471_v54 = vadd.f32 %v5470_v13, %v5469_v35  ;;  %v5504_v3 = vadd.f32 %v5503_v41, %v5502_v8  ;;  %v5505_v58 = vsel %vm180_vm0, %v10208_v36, 0.0 }
 0x2d8   :  { %v5534_v2 = vsel %vm180_vm0, %v10821_v37, 0.0  ;;  %v5472_v34 = vsel %vm180_vm0, %v10822_v32, 0.0  ;;  %v10823_v12 = vcombine.high %v10165_v24, %v10165_v24  ;;  %v5294_v43 = vcombine.high %v10229_v5, %v10229_v5 }
 0x2d9   :  { %v5535_v62 = vadd.f32 %v5534_v2, %v5533_v31  ;;  %v5441_v61 = vrot.slane %v5440_v28, 4  ;;  %v5473_v0 = vadd.f32 %v5472_v34, %v5471_v54  ;;  %v5474_v51 = vsel %vm180_vm0, %v5327_v6, 0.0 }
 0x2da   :  { %v5536_v4 = vsel %vm180_vm0, %v10823_v12, 0.0  ;;  %v5506_v9 = vadd.f32 %v5505_v58, %v5504_v3  ;;  %v10824_v63 = vcombine.high %v10093_v53, %v10093_v53  ;;  %v5507_v24 = vsel %vm180_vm0, %v10229_v5, 0.0 }
 0x2db   :  { %v5537_v44 = vadd.f32 %v5536_v4, %v5535_v62  ;;  %v5475_v7 = vadd.f32 %v5474_v51, %v5473_v0  ;;  %v10825_v26 = vcombine.high %v10188_v47, %v10188_v47  ;;  %v5442_v11 = vadd.f32 %v5441_v61, %v5440_v28 }
 0x2dc   :  { %v5326_v48 = vrot.slane %v10824_v63, %v9029_v25  ;;  %v5476_v30 = vsel %vm180_vm0, %v5344_v57, 0.0  ;;  %v5508_v6 = vadd.f32 %v5507_v24, %v5506_v9  ;;  %v5343_v53 = vrot.slane %v5329_v27, %v9029_v25 }
 0x2dd   :  { %v5538_v14 = vsel %vm180_vm0, %v10825_v26, 0.0  ;;  %v5477_v50 = vadd.f32 %v5476_v30, %v5475_v7  ;;  %v5509_v35 = vsel %vm180_vm0, %v10243_v49, 0.0  ;;  %v10826_v5 = vcombine.high %v10191_v15, %v10191_v15 }
 0x2de   :  { %v5539_v55 = vadd.f32 %v5538_v14, %v5537_v44  ;;  %v5510_v60 = vadd.f32 %v5509_v35, %v5508_v6  ;;  %v5311_v23 = vcombine.high %v10243_v49, %v10243_v49  ;;  %v5511_v13 = vsel %vm180_vm0, %v5326_v48, 0.0 }
 0x2df   :  { %v5540_v47 = vsel %vm180_vm0, %v10826_v5, 0.0  ;;  %v5478_v29 = vrot.slane %v5477_v50, 4  ;;  %v10827_v56 = vcombine.high %v10208_v36, %v10208_v36  ;;  %v5443_v8 = vrot.slane %v5442_v11, 2 }
 0x2e0   :  { %v5541_v10 = vadd.f32 %v5540_v47, %v5539_v55  ;;  %v5512_v31 = vadd.f32 %v5511_v13, %v5510_v60  ;;  %v5328_v54 = vcombine.high %v5326_v48, %v5326_v48  ;;  %v5513_v41 = vsel %vm180_vm0, %v5343_v53, 0.0 }
 0x2e1   :  { %v5542_v27 = vsel %vm180_vm0, %v10827_v56, 0.0  ;;  %v5479_v15 = vadd.f32 %v5478_v29, %v5477_v50  ;;  %v5544_v37 = vsel %vm180_vm0, %v5294_v43, 0.0  ;;  %v5345_v49 = vcombine.high %v5343_v53, %v5343_v53 }
 0x2e2   :  { %v5543_v28 = vadd.f32 %v5542_v27, %v5541_v10  ;;  %v5514_v2 = vadd.f32 %v5513_v41, %v5512_v31  ;;  %v5546_v34 = vsel %vm180_vm0, %v5311_v23, 0.0  ;;  %v5444_v3 = vadd.f32 %v5443_v8, %v5442_v11  ;;  %v5608_v31 = vld [vmem:[%s10808_s2] sm:$0xf]  ;;  %s8285_s2 = smov [#allocation3]  }
 0x2e3   :  { %v5480_v32 = vrot.slane %v5479_v15, 2  ;;  %v5548_v0 = vsel %vm180_vm0, %v5328_v54, 0.0  ;;  %v5550_v51 = vsel %vm180_vm0, %v5345_v49, 0.0  ;;  %v5612_v13 = vsub.s32 0, %v9026_v18 }
 0x2e4   :  { %v5545_v57 = vadd.f32 %v5544_v37, %v5543_v28  ;;  %v5515_v62 = vrot.slane %v5514_v2, 4  ;;  %v5445_v9 = vrot.slane %v5444_v3, 1  ;;  %v5616_v56 = vsub.s32 1, %v9026_v18  ;;  %v5660_v28 = vld [vmem:[%s10809_s3] sm:$0xf]  ;;  %s6629_s3 = sshll.u32 %s8285_s2, 4  ;;  %s6630_s3 = int_to_ptr.vmem [resolvable:$true] %s6629_s3 }
 0x2e5   :  { %v5481_v61 = vadd.f32 %v5480_v32, %v5479_v15  ;;  %v5620_v27 = vsub.s32 2, %v9026_v18  ;;  %v5624_v8 = vsub.s32 3, %v9026_v18  ;;  %v5613_v54 = vrot.slane %v5608_v31, %v5612_v13  ;;  %s8260_s23 = scalar_lea.vmem %s6630_s3, 1024  ;;  %p8265_p1 = scmp.lt.s32.totalorder %s6630_s3, %s6630_s3 }
 0x2e6   :  { %v5547_v36 = vadd.f32 %v5546_v34, %v5545_v57  ;;  %v5516_v58 = vadd.f32 %v5515_v62, %v5514_v2  ;;  %v5446_v24 = vadd.f32 %v5445_v9, %v5444_v3  ;;  %v5617_v15 = vrot.slane %v5608_v31, %v5616_v56  ;;  %p8261_p0 = scmp.ne.s32.totalorder %s6630_s3, %s8260_s23  ;;  %p8266_p2 = scmp.lt.s32.totalorder %s8260_s23, %s8260_s23 }
 0x2e7   :  { %v5482_v4 = vrot.slane %v5481_v61, 1  ;;  %v5621_v41 = vrot.slane %v5608_v31, %v5620_v27  ;;  %v5625_v37 = vrot.slane %v5608_v31, %v5624_v8  ;;  %v5665_v2 = vrot.slane %v5660_v28, %v5612_v13 }
 0x2e8   :  { %v5549_v12 = vadd.f32 %v5548_v0, %v5547_v36  ;;  %v5517_v44 = vrot.slane %v5516_v58, 2  ;;  %v5558_v53 = vmul.f32 0.03125, %v5446_v24  ;;  %v5669_v57 = vrot.slane %v5660_v28, %v5616_v56  ;;  %p8267_p3 = por %p8266_p2, %p8265_p1 }
 0x2e9   :  { %v5483_v63 = vadd.f32 %v5482_v4, %v5481_v61  ;;  %v5673_v49 = vrot.slane %v5660_v28, %v5620_v27  ;;  %v5677_v32 = vrot.slane %v5660_v28, %v5624_v8  ;;  %v5626_v3 = vcombine.low %v5613_v54, %v5617_v15 }
 0x2ea   :  { %v5551_v43 = vadd.f32 %v5550_v51, %v5549_v12  ;;  %v5518_v48 = vadd.f32 %v5517_v44, %v5516_v58  ;;  %v5562_v60 = vadd.f32 1e-05, %v5558_v53  ;;  %v5627_v36 = vcombine.low %v5621_v41, %v5625_v37  ;;  %p8268_p4 = pnand %p8267_p3, %p8261_p0 }
 0x2eb   :  { %v5559_v6 = vmul.f32 0.03125, %v5483_v63  ;;  %v5678_v61 = vcombine.low %v5665_v2, %v5669_v57  ;;  %v5679_v0 = vcombine.low %v5673_v49, %v5677_v32  ;;  %v8284_v58 = vmov 1966171168  }
 0x2ec   :  { %v5552_v7 = vrot.slane %v5551_v43, 4  ;;  %v5519_v26 = vrot.slane %v5518_v48, 1  ;;  %v6211_v12 = vunpack.c.l.s4 %v8284_v58  ;;  %v5641_v63 = vrot.slane %v5627_v36, %v9029_v25 }
 0x2ed   :  { %v5563_v5 = vadd.f32 1e-05, %v5559_v6 }
 0x2ee   :  { %v5553_v14 = vadd.f32 %v5552_v7, %v5551_v43  ;;  %v5520_v11 = vadd.f32 %v5519_v26, %v5518_v48  ;;  %v5634_v43 = vrot.slane %v5626_v3, %v9029_v25  ;;  %v5686_v48 = vrot.slane %v5678_v61, %v9029_v25 }
 0x2ef   :  { %8252 = vrsqrt.f32 %v5563_v5  ;;  %v5693_v7 = vrot.slane %v5679_v0, %v9029_v25  ;;  %v6212_v24 = vunpack.c.0.s8 %v6211_v12 }
 0x2f0   :  { %v5554_v30 = vrot.slane %v5553_v14, 2  ;;  %v5560_v50 = vmul.f32 0.03125, %v5520_v11  ;;  %8254 = vrsqrt.f32 %v5562_v60 }
 0x2f1   :  { %v5694_v6 = vcombine.low %v5686_v48, %v5693_v7 }
 0x2f2   :  { %v5555_v55 = vadd.f32 %v5554_v30, %v5553_v14  ;;  %v5564_v10 = vadd.f32 1e-05, %v5560_v50  ;;  %v5642_v30 = vcombine.low %v5634_v43, %v5641_v63 }
 0x2f4   :  { %v5556_v35 = vrot.slane %v5555_v55, 1  ;;  %8256 = vrsqrt.f32 %v5564_v10 }
 0x2f6   :  { %v5557_v47 = vadd.f32 %v5556_v35, %v5555_v55  ;;  %v10443_v55 = vsub.s32 %v6212_v24, %v9026_v18 }
 0x2f8   :  { %v5561_v23 = vmul.f32 0.03125, %v5557_v47 }
 0x2fa   :  { %v5565_v29 = vadd.f32 1e-05, %v5561_v23 }
 0x2fc   :  { %8258 = vrsqrt.f32 %v5565_v29  ;;  %v8253_v34 = vpop.eup %8252 }
 0x2fd   :  { %v8255_v62 = vpop.eup %8254 }
 0x2fe   :  { %v5574_v51 = vcombine.low %v8255_v62, %v8253_v34 }
 0x300   :  { %v5582_v26 = vrot.slane %v5574_v51, %v9029_v25 }
 0x301   :  { %v8257_v4 = vpop.eup %8256 }
 0x309   :  { %v8259_v9 = vpop.eup %8258 }
 0x30a   :  { %v5575_v44 = vcombine.low %v8257_v4, %v8259_v9 }
 0x30c   :  { %v5589_v14 = vrot.slane %v5575_v44, %v9029_v25 }
 0x30e   :  { %v5590_v11 = vcombine.low %v5582_v26, %v5589_v14 }
 0x310   :  { %v5592_v53 = vmul.f32 %v5590_v11, %v9998_v1  ;;  %v5593_v50 = vmul.f32 %v5590_v11, %v10001_v16  ;;  %v5594_v35 = vmul.f32 %v5590_v11, %v10004_v17  ;;  %v5595_v5 = vmul.f32 %v5590_v11, %v10007_v19 }
 0x311   :  { %v5596_v47 = vmul.f32 %v5590_v11, %v10010_v20  ;;  %v5597_v60 = vmul.f32 %v5590_v11, %v10013_v21  ;;  %v5598_v10 = vmul.f32 %v5590_v11, %v10016_v22  ;;  %v5599_v23 = vmul.f32 %v5590_v11, %v10019_v45 }
 0x312   :  { %v5600_v29 = vmul.f32 %v5590_v11, %v10022_v33  ;;  %v5601_v18 = vmul.f32 %v5590_v11, %v10025_v39  ;;  %v5602_v1 = vmul.f32 %v5590_v11, %v10028_v40  ;;  %v5603_v16 = vmul.f32 %v5590_v11, %v10031_v42 }
 0x313   :  { %v5604_v17 = vmul.f32 %v5590_v11, %v10034_v46  ;;  %v5605_v19 = vmul.f32 %v5590_v11, %v10037_v52  ;;  %v5606_v20 = vmul.f32 %v5590_v11, %v10040_v59  ;;  %v5607_v21 = vmul.f32 %v5590_v11, %v10051_v38 }
 0x314   :  { %v5644_v13 = vmul.f32 %v5642_v30, %v5592_v53  ;;  %v5645_v22 = vmul.f32 %v5642_v30, %v5593_v50  ;;  %v5646_v56 = vmul.f32 %v5642_v30, %v5594_v35  ;;  %v5647_v45 = vmul.f32 %v5642_v30, %v5595_v5 }
 0x315   :  { %v5648_v27 = vmul.f32 %v5642_v30, %v5596_v47  ;;  %v5649_v33 = vmul.f32 %v5642_v30, %v5597_v60  ;;  %v5650_v8 = vmul.f32 %v5642_v30, %v5598_v10  ;;  %v5651_v39 = vmul.f32 %v5642_v30, %v5599_v23 }
 0x316   :  { %v5652_v31 = vmul.f32 %v5642_v30, %v5600_v29  ;;  %v5653_v40 = vmul.f32 %v5642_v30, %v5601_v18  ;;  %v5654_v28 = vmul.f32 %v5642_v30, %v5602_v1  ;;  %v5655_v42 = vmul.f32 %v5642_v30, %v5603_v16 }
 0x317   :  { %v5656_v54 = vmul.f32 %v5642_v30, %v5604_v17  ;;  %v5657_v46 = vmul.f32 %v5642_v30, %v5605_v19  ;;  %v5658_v15 = vmul.f32 %v5642_v30, %v5606_v20  ;;  %v5659_v52 = vmul.f32 %v5642_v30, %v5607_v21 }
 0x318   :  { %v5696_v41 = vadd.f32 %v5694_v6, %v5644_v13  ;;  %v5697_v59 = vadd.f32 %v5694_v6, %v5645_v22  ;;  %v5698_v37 = vadd.f32 %v5694_v6, %v5646_v56  ;;  %v5699_v38 = vadd.f32 %v5694_v6, %v5647_v45 }
 0x319   :  { %v5700_v2 = vadd.f32 %v5694_v6, %v5648_v27  ;;  %v5701_v57 = vadd.f32 %v5694_v6, %v5649_v33  ;;  %v5702_v49 = vadd.f32 %v5694_v6, %v5650_v8  ;;  %v5703_v32 = vadd.f32 %v5694_v6, %v5651_v39 }
 0x31a   :  { %v5704_v34 = vadd.f32 %v5694_v6, %v5652_v31  ;;  %v5705_v3 = vadd.f32 %v5694_v6, %v5653_v40  ;;  %v5706_v62 = vadd.f32 %v5694_v6, %v5654_v28  ;;  %v5707_v36 = vadd.f32 %v5694_v6, %v5655_v42 }
 0x31b   :  { %v5708_v61 = vadd.f32 %v5694_v6, %v5656_v54  ;;  %v5709_v0 = vadd.f32 %v5694_v6, %v5657_v46  ;;  %v5710_v58 = vadd.f32 %v5694_v6, %v5658_v15  ;;  %v5711_v12 = vadd.f32 %v5694_v6, %v5659_v52 }
 0x31c   :  { %v5712_v4 = vmax.f32 %v5696_v41, 0.0  ;;  %v5713_v51 = vmax.f32 %v5697_v59, 0.0  ;;  %v5714_v9 = vmax.f32 %v5698_v37, 0.0  ;;  %v5715_v44 = vmax.f32 %v5699_v38, 0.0 }
 0x31d   :  { %v5716_v43 = vmax.f32 %v5700_v2, 0.0  ;;  %v5717_v63 = vmax.f32 %v5701_v57, 0.0  ;;  %v5718_v48 = vmax.f32 %v5702_v49, 0.0  ;;  %v5719_v7 = vmax.f32 %v5703_v32, 0.0 }
 0x31e   :  { %v5720_v24 = vmax.f32 %v5704_v34, 0.0  ;;  %v5721_v26 = vmax.f32 %v5705_v3, 0.0  ;;  %v5722_v14 = vmax.f32 %v5706_v62, 0.0  ;;  %v10461_v11 = vmax.f32 %v5707_v36, 0.0 }
 0x31f   :  { %v10463_v30 = vmax.f32 %v5708_v61, 0.0  ;;  %v10465_v53 = vmax.f32 %v5709_v0, 0.0  ;;  %v10467_v50 = vmax.f32 %v5710_v58, 0.0  ;;  %v10469_v6 = vmax.f32 %v5711_v12, 0.0 }
 0x320   :  { %v5744_v35 = vcombine.high %v5712_v4, %v5712_v4  ;;  %v10472_v5 = vrot.slane %v5712_v4, %v9029_v25  ;;  %v5761_v47 = vcombine.high %v5713_v51, %v5713_v51  ;;  %v10475_v60 = vrot.slane %v5713_v51, %v9029_v25 }
 0x321   :  { %v5778_v10 = vcombine.high %v5714_v9, %v5714_v9  ;;  %v10478_v23 = vrot.slane %v5714_v9, %v9029_v25  ;;  %v5795_v29 = vcombine.high %v5715_v44, %v5715_v44  ;;  %v10481_v18 = vrot.slane %v5715_v44, %v9029_v25 }
 0x322   :  { %v10484_v1 = vrot.slane %v5744_v35, %v9029_v25  ;;  %v5759_v16 = vcombine.high %v10472_v5, %v10472_v5  ;;  %v10489_v17 = vrot.slane %v5761_v47, %v9029_v25  ;;  %v5776_v19 = vcombine.high %v10475_v60, %v10475_v60 }
 0x323   :  { %v10494_v20 = vrot.slane %v5778_v10, %v9029_v25  ;;  %v5793_v21 = vcombine.high %v10478_v23, %v10478_v23  ;;  %v10499_v13 = vrot.slane %v5795_v29, %v9029_v25  ;;  %v5810_v22 = vcombine.high %v10481_v18, %v10481_v18 }
 0x324   :  { %v5760_v56 = vcombine.high %v10484_v1, %v10484_v1  ;;  %v5777_v45 = vcombine.high %v10489_v17, %v10489_v17  ;;  %v5812_v27 = vcombine.high %v5716_v43, %v5716_v43  ;;  %v10508_v33 = vrot.slane %v5716_v43, %v9029_v25 }
 0x325   :  { %v5794_v8 = vcombine.high %v10494_v20, %v10494_v20  ;;  %v5811_v39 = vcombine.high %v10499_v13, %v10499_v13  ;;  %v5829_v31 = vcombine.high %v5717_v63, %v5717_v63  ;;  %v10515_v40 = vrot.slane %v5717_v63, %v9029_v25 }
 0x326   :  { %v10518_v28 = vrot.slane %v5812_v27, %v9029_v25  ;;  %v5827_v42 = vcombine.high %v10508_v33, %v10508_v33  ;;  %v5846_v54 = vcombine.high %v5718_v48, %v5718_v48  ;;  %v10523_v46 = vrot.slane %v5718_v48, %v9029_v25 }
 0x327   :  { %v10526_v15 = vrot.slane %v5829_v31, %v9029_v25  ;;  %v5844_v52 = vcombine.high %v10515_v40, %v10515_v40  ;;  %v5863_v41 = vcombine.high %v5719_v7, %v5719_v7  ;;  %v10531_v59 = vrot.slane %v5719_v7, %v9029_v25 }
 0x328   :  { %v5828_v37 = vcombine.high %v10518_v28, %v10518_v28  ;;  %v10536_v38 = vrot.slane %v5846_v54, %v9029_v25  ;;  %v5861_v2 = vcombine.high %v10523_v46, %v10523_v46  ;;  %v5880_v57 = vcombine.high %v5720_v24, %v5720_v24 }
 0x329   :  { %v5845_v49 = vcombine.high %v10526_v15, %v10526_v15  ;;  %v10543_v32 = vrot.slane %v5863_v41, %v9029_v25  ;;  %v5878_v34 = vcombine.high %v10531_v59, %v10531_v59  ;;  %v10548_v3 = vrot.slane %v5720_v24, %v9029_v25 }
 0x32a   :  { %v5862_v62 = vcombine.high %v10536_v38, %v10536_v38  ;;  %v10553_v36 = vrot.slane %v5880_v57, %v9029_v25  ;;  %v5897_v61 = vcombine.high %v5721_v26, %v5721_v26  ;;  %v10556_v0 = vrot.slane %v5721_v26, %v9029_v25 }
 0x32b   :  { %v5879_v58 = vcombine.high %v10543_v32, %v10543_v32  ;;  %v5895_v12 = vcombine.high %v10548_v3, %v10548_v3  ;;  %v5914_v4 = vcombine.high %v5722_v14, %v5722_v14  ;;  %v10563_v51 = vrot.slane %v5722_v14, %v9029_v25 }
 0x32c   :  { %v5896_v9 = vcombine.high %v10553_v36, %v10553_v36  ;;  %v10568_v44 = vrot.slane %v5897_v61, %v9029_v25  ;;  %v5912_v43 = vcombine.high %v10556_v0, %v10556_v0  ;;  %v5931_v63 = vcombine.high %v10461_v11, %v10461_v11 }
 0x32d   :  { %v10575_v48 = vrot.slane %v5914_v4, %v9029_v25  ;;  %v5929_v7 = vcombine.high %v10563_v51, %v10563_v51  ;;  %v10581_v24 = vrot.slane %v10461_v11, %v9029_v25  ;;  %v5948_v26 = vcombine.high %v10463_v30, %v10463_v30 }
 0x32e   :  { %v5913_v14 = vcombine.high %v10568_v44, %v10568_v44  ;;  %v10588_v35 = vrot.slane %v5931_v63, %v9029_v25  ;;  %v10592_v47 = vrot.slane %v10463_v30, %v9029_v25  ;;  %v5965_v10 = vcombine.high %v10465_v53, %v10465_v53 }
 0x32f   :  { %v5930_v11 = vcombine.high %v10575_v48, %v10575_v48  ;;  %v5946_v29 = vcombine.high %v10581_v24, %v10581_v24  ;;  %v10601_v27 = vrot.slane %v5948_v26, %v9029_v25  ;;  %v10605_v31 = vrot.slane %v10465_v53, %v9029_v25 }
 0x330   :  { %v10612_v41 = vrot.slane %v5965_v10, %v9029_v25  ;;  %v5982_v57 = vcombine.high %v10467_v50, %v10467_v50  ;;  %v10622_v53 = vrot.slane %v10467_v50, %v9029_v25  ;;  %v5999_v63 = vcombine.high %v10469_v6, %v10469_v6 }
 0x331   :  { %v10633_v54 = vrot.slane %v10469_v6, %v9029_v25  ;;  %v7542_v4 = vpack.c.bf16 %v5759_v16, %v10472_v5  ;;  %v7543_v26 = vpack.c.bf16 %v5760_v56, %v10484_v1 }
 0x332   :  { %v10629_v10 = vrot.slane %v5982_v57, %v9029_v25  ;;  %v5997_v50 = vcombine.high %v10622_v53, %v10622_v53  ;;  %v10642_v61 = vrot.slane %v5999_v63, %v9029_v25  ;;  %v7544_v57 = vpack.c.bf16 %v5776_v19, %v10475_v60 }
 0x333   :  { %v6014_v30 = vcombine.high %v10633_v54, %v10633_v54  ;;  %v6216_v5 = vrot.slane %v7542_v4, %v10443_v55  ;;  %v7545_v25 = vpack.c.bf16 %v5777_v45, %v10489_v17  ;;  %v6223_v16 = vrot.slane %v7543_v26, %v10443_v55 }
 0x334   :  { %v5998_v6 = vcombine.high %v10629_v10, %v10629_v10  ;;  %v6015_v1 = vcombine.high %v10642_v61, %v10642_v61  ;;  %v6240_v60 = vrot.slane %v7544_v57, %v10443_v55  ;;  %v7546_v19 = vpack.c.bf16 %v5793_v21, %v10478_v23 }
 0x335   :  { %v6247_v56 = vrot.slane %v7545_v25, %v10443_v55  ;;  %v7547_v4 = vpack.c.bf16 %v5794_v8, %v10494_v20  ;;  %v7548_v17 = vpack.c.bf16 %v5810_v22, %v10481_v18  ;;  %v7549_v45 = vpack.c.bf16 %v5811_v39, %v10499_v13 }
 0x336   :  { %v6224_v63 = vcombine.low %v6216_v5, %v6223_v16  ;;  %v6264_v23 = vrot.slane %v7546_v19, %v10443_v55  ;;  %v7550_v21 = vpack.c.bf16 %v5827_v42, %v10508_v33  ;;  %v7551_v20 = vpack.c.bf16 %v5828_v37, %v10518_v28 }
 0x337   :  { %v6248_v8 = vcombine.low %v6240_v60, %v6247_v56  ;;  %v6271_v18 = vrot.slane %v7547_v4, %v10443_v55  ;;  %v6288_v22 = vrot.slane %v7548_v17, %v10443_v55  ;;  %v6295_v13 = vrot.slane %v7549_v45, %v10443_v55 }
 0x338   :  { %v6312_v39 = vrot.slane %v7550_v21, %v10443_v55  ;;  %v6319_v26 = vrot.slane %v7551_v20, %v10443_v55  ;;  %v7552_v33 = vpack.c.bf16 %v5844_v52, %v10515_v40  ;;  %v7553_v28 = vpack.c.bf16 %v5845_v49, %v10526_v15  ;;  %7574 = vst.sshfl [vmem:[#allocation3] sm:$0x55 pattern:$0x73625140] %v6224_v63 }
 0x339   :  { %v6272_v42 = vcombine.low %v6264_v23, %v6271_v18  ;;  %v6296_v37 = vcombine.low %v6288_v22, %v6295_v13  ;;  %v7554_v57 = vpack.c.bf16 %v5861_v2, %v10523_v46  ;;  %v7555_v5 = vpack.c.bf16 %v5862_v62, %v10536_v38  ;;  %7575 = vst.sshfl [vmem:[#allocation3 + $0x4] sm:$0x55 pattern:$0x73625140] %v6248_v8 }
 0x33a   :  { %v6320_v40 = vcombine.low %v6312_v39, %v6319_v26  ;;  %v6336_v52 = vrot.slane %v7552_v33, %v10443_v55  ;;  %v6343_v25 = vrot.slane %v7553_v28, %v10443_v55  ;;  %v7556_v15 = vpack.c.bf16 %v5878_v34, %v10531_v59 }
 0x33b   :  { %v6360_v49 = vrot.slane %v7554_v57, %v10443_v55  ;;  %v6367_v46 = vrot.slane %v7555_v5, %v10443_v55  ;;  %v7557_v38 = vpack.c.bf16 %v5879_v58, %v10543_v32  ;;  %v7558_v2 = vpack.c.bf16 %v5895_v12, %v10548_v3  ;;  %7576 = vst.sshfl [vmem:[#allocation3 + $0x8] sm:$0x55 pattern:$0x73625140] %v6272_v42 }
 0x33c   :  { %7577 = vst.sshfl [vmem:[#allocation3 + $0xc] sm:$0x55 pattern:$0x73625140] %v6296_v37  ;;  %v6344_v62 = vcombine.low %v6336_v52, %v6343_v25  ;;  %v6384_v16 = vrot.slane %v7556_v15, %v10443_v55  ;;  %v7559_v59 = vpack.c.bf16 %v5896_v9, %v10553_v36  ;;  %v7560_v32 = vpack.c.bf16 %v5912_v43, %v10556_v0 }
 0x33d   :  { %7578 = vst.sshfl [vmem:[#allocation3 + $0x10] sm:$0x55 pattern:$0x73625140] %v6320_v40  ;;  %v6368_v34 = vcombine.low %v6360_v49, %v6367_v46  ;;  %v6391_v58 = vrot.slane %v7557_v38, %v10443_v55  ;;  %v6408_v3 = vrot.slane %v7558_v2, %v10443_v55  ;;  %v7561_v12 = vpack.c.bf16 %v5913_v14, %v10568_v44 }
 0x33e   :  { %v6415_v60 = vrot.slane %v7559_v59, %v10443_v55  ;;  %v6432_v36 = vrot.slane %v7560_v32, %v10443_v55  ;;  %v7562_v0 = vpack.c.bf16 %v5929_v7, %v10563_v51  ;;  %v7563_v9 = vpack.c.bf16 %v5930_v11, %v10575_v48  ;;  %7579 = vst.sshfl [vmem:[#allocation3 + $0x14] sm:$0x55 pattern:$0x73625140] %v6344_v62 }
 0x33f   :  { %v6392_v43 = vcombine.low %v6384_v16, %v6391_v58  ;;  %v6439_v19 = vrot.slane %v7561_v12, %v10443_v55  ;;  %v7564_v44 = vpack.c.bf16 %v5946_v29, %v10581_v24  ;;  %v10828_v14 = vcombine.high %v10588_v35, %v10588_v35  ;;  %7580 = vst.sshfl [vmem:[#allocation3 + $0x18] sm:$0x55 pattern:$0x73625140] %v6368_v34 }
 0x340   :  { %v6416_v51 = vcombine.low %v6408_v3, %v6415_v60  ;;  %v6456_v7 = vrot.slane %v7562_v0, %v10443_v55  ;;  %v6463_v48 = vrot.slane %v7563_v9, %v10443_v55  ;;  %v10829_v11 = vcombine.high %v10592_v47, %v10592_v47 }
 0x341   :  { %v7565_v56 = vpack.c.bf16 %v10828_v14, %v10588_v35  ;;  %v6440_v17 = vcombine.low %v6432_v36, %v6439_v19  ;;  %v6480_v45 = vrot.slane %v7564_v44, %v10443_v55  ;;  %v10830_v35 = vcombine.high %v10601_v27, %v10601_v27  ;;  %7581 = vst.sshfl [vmem:[#allocation3 + $0x1c] sm:$0x55 pattern:$0x73625140] %v6392_v43 }
 0x342   :  { %v7566_v4 = vpack.c.bf16 %v10829_v11, %v10592_v47  ;;  %v6464_v63 = vcombine.low %v6456_v7, %v6463_v48  ;;  %v10831_v21 = vcombine.high %v10605_v31, %v10605_v31  ;;  %v10832_v47 = vcombine.high %v10612_v41, %v10612_v41  ;;  %7582 = vst.sshfl [vmem:[#allocation3 + $0x20] sm:$0x55 pattern:$0x73625140] %v6416_v51 }
 0x343   :  { %v6487_v24 = vrot.slane %v7565_v56, %v10443_v55  ;;  %v7567_v29 = vpack.c.bf16 %v10830_v35, %v10601_v27  ;;  %v7570_v27 = vpack.c.bf16 %v5997_v50, %v10622_v53  ;;  %v7571_v13 = vpack.c.bf16 %v5998_v6, %v10629_v10  ;;  %7583 = vst.sshfl [vmem:[#allocation3 + $0x24] sm:$0x55 pattern:$0x73625140] %v6440_v17 }
 0x344   :  { %v6504_v23 = vrot.slane %v7566_v4, %v10443_v55  ;;  %v7568_v20 = vpack.c.bf16 %v10831_v21, %v10605_v31  ;;  %v7569_v8 = vpack.c.bf16 %v10832_v47, %v10612_v41  ;;  %v7572_v41 = vpack.c.bf16 %v6014_v30, %v10633_v54  ;;  %7584 = vst.sshfl [vmem:[#allocation3 + $0x28] sm:$0x55 pattern:$0x73625140] %v6464_v63 }
 0x345   :  { %v6488_v18 = vcombine.low %v6480_v45, %v6487_v24  ;;  %v6511_v22 = vrot.slane %v7567_v29, %v10443_v55  ;;  %v7573_v53 = vpack.c.bf16 %v6015_v1, %v10642_v61  ;;  %v6552_v26 = vrot.slane %v7570_v27, %v10443_v55 }
 0x346   :  { %v6528_v31 = vrot.slane %v7568_v20, %v10443_v55  ;;  %v6535_v39 = vrot.slane %v7569_v8, %v10443_v55  ;;  %v6559_v10 = vrot.slane %v7571_v13, %v10443_v55  ;;  %v6576_v33 = vrot.slane %v7572_v41, %v10443_v55 }
 0x347   :  { %v6512_v50 = vcombine.low %v6504_v23, %v6511_v22  ;;  %7585 = vst.sshfl [vmem:[#allocation3 + $0x2c] sm:$0x55 pattern:$0x73625140] %v6488_v18  ;;  %v6583_v28 = vrot.slane %v7573_v53, %v10443_v55 }
 0x348   :  { %v6536_v6 = vcombine.low %v6528_v31, %v6535_v39  ;;  %v6560_v30 = vcombine.low %v6552_v26, %v6559_v10 }
 0x349   :  { %7586 = vst.sshfl [vmem:[#allocation3 + $0x30] sm:$0x55 pattern:$0x73625140] %v6512_v50  ;;  %v6584_v54 = vcombine.low %v6576_v33, %v6583_v28 }
 0x34a   :  { %7587 = vst.sshfl [vmem:[#allocation3 + $0x34] sm:$0x55 pattern:$0x73625140] %v6536_v6 }
 0x34b   :  { %7588 = vst.sshfl [vmem:[#allocation3 + $0x38] sm:$0x55 pattern:$0x73625140] %v6560_v30 }
 0x34c   :  { %7589 = vst.sshfl [vmem:[#allocation3 + $0x3c] sm:$0x55 pattern:$0x73625140] %v6584_v54 }
 0x34d   :  { %8271 = shalt.err (!%p8268_p4)
}
 0x34e   :  { %s8286_s24 = smov 64   ;;  %s8287_s25 = smov 4  }
 0x34f   :  { %6635 = dma.vmem_to_hbm [thread:$0]  %s6630_s3, 1024, %s10810_s4, [#allocation4], %s8286_s24, %s8286_s24, %s8287_s25  }
 0x350   :  { %8280 = dma.done.wait [#allocation4], 1024  }
 0x351   :  { %8281 = vsyncadd [#allocation4], 4294966272 }
 0x352   :  { %6639 = vsyncpa [#allocation4], 1 }

</bundles_post_ra>
